<compile_context>
chip_gen: v6e
topology: v6e:2x2x1
jax: 0.10.0
libtpu: 0.0.40
codegen_flags: <defaults>
</compile_context>

<pallas_src>
import functools

import jax
import jax.numpy as jnp
from jax.experimental import pallas as pl
from jax.experimental.pallas import tpu as pltpu

K = 4    # ConvTranspose3d kernel size
PT = 1   # ConvTranspose3d padding
P2 = 1   # Conv2d padding (1x1 kernel)
DB = 8   # depth rows per output block (one sublane tile)


def _round_up(n, m):
    return ((n + m - 1) // m) * m


def fused_kernel(xs_ref, wflip_ref, scal_ref, wm_ref, out_ref, *, wp, lw, l):
    """One DB-deep block of fused ConvT3d(4, pad=1)+ReLU and 1x1 Conv2d(pad=1)+ReLU.

    xs_ref   : (K, DB, L) f32 VMEM  K depth-shifted, zero-padded, (H,W)-flattened
                                    input windows for this output block
    wflip_ref: (64,)      f32 SMEM  spatially flipped ConvTranspose3d kernel
    scal_ref : (2,)       f32 SMEM  [convT bias b0, conv2d bias b1]
    wm_ref   : (1, lw)    f32 VMEM  conv2d weight * interior mask
    out_ref  : (DB, lw)   f32 VMEM  lane-dense output block (cropped in wrapper)
    """
    b0 = scal_ref[0]
    b1 = scal_ref[1]
    wm = wm_ref[...]                                  # (1, lw)

    db = out_ref.shape[0]
    acc = jnp.zeros((db, lw), jnp.float32) + b0       # fold ConvT bias into init
    for a in range(K):                                # depth taps
        win = xs_ref[a]                               # aligned (DB, L) window load
        # Hoist only this depth tap's 16 weights (keeps scalar live ranges short).
        wa = [wflip_ref[a * K * K + t] for t in range(K * K)]
        for b in range(K):                            # in-plane row taps
            for c in range(K):                        # in-plane col taps
                off = b * wp + c
                # Left-shift the window by `off` lanes: roll by (l - off) == -off.
                sh = win if off == 0 else pltpu.roll(win, shift=l - off, axis=1)
                acc = acc + sh[:, :lw] * wa[b * K + c]
    # ConvTranspose3d ReLU, then 1x1 Conv2d(pad=1) + ReLU.  Border / junk lanes
    # have wm == 0, so they evaluate to relu(b1) exactly (and are cropped later).
    out_ref[...] = jnp.maximum(jnp.maximum(acc, 0.0) * wm + b1, 0.0)


def model_forward(x, wt, b0, w2, b1):
    """x: (1, 1, D, H, W) f32. Returns (1, 1, D+1, H+3, W+3) f32."""
    N, C, D, H, W = x.shape
    assert N == 1 and C == 1
    Do, Ho, Wo = D + 1, H + 1, W + 1                   # ConvTranspose3d output
    Ho2, Wo2 = Ho + 2 * P2, Wo + 2 * P2                # after Conv2d pad=1

    pad_d = K - 1 - PT                                 # = 2 (correlation identity)
    pad_hw = pad_d + P2                                # = 3 (adds Conv2d zero frame)
    WP = W + 2 * pad_hw                                # padded plane row stride
    HP = H + 2 * pad_hw

    LW = _round_up(Ho2 * WP, 128)                      # lane-dense output width
    L = _round_up((K - 1) * (WP + 1) + LW, 128)        # flat input width (roll-safe)
    nblk = pl.cdiv(Do, DB)
    Do_pad = nblk * DB
    Dp = Do_pad + (K - 1)

    # ---- wrapper-side layout plumbing (done once, outside the kernel) ----
    vol = x[0, 0].astype(jnp.float32)
    xpad = jnp.pad(vol, ((pad_d, Dp - pad_d - D),
                         (pad_hw, pad_hw),
                         (pad_hw, pad_hw)))            # (Dp, HP, WP)
    xflat = jnp.pad(xpad.reshape(Dp, HP * WP), ((0, 0), (0, L - HP * WP)))
    # K depth-shifted copies so every in-kernel load is (8,128)-aligned.
    xsh = jnp.stack([xflat[a:a + Do_pad] for a in range(K)], axis=0)  # (K, Do_pad, L)

    wflip = wt[0, 0, ::-1, ::-1, ::-1].reshape(-1).astype(jnp.float32)
    scal = jnp.concatenate([b0.reshape(-1), b1.reshape(-1)]).astype(jnp.float32)

    p = jnp.arange(LW, dtype=jnp.int32)
    hh, ww = p // WP, p % WP
    interior = (hh >= 1) & (hh <= Ho2 - 2) & (ww >= 1) & (ww <= Wo2 - 2)
    wm = (w2.reshape(()).astype(jnp.float32)
          * interior.astype(jnp.float32)).reshape(1, LW)   # conv2d weight * mask

    out_flat = pl.pallas_call(
        functools.partial(fused_kernel, wp=WP, lw=LW, l=L),
        out_shape=jax.ShapeDtypeStruct((Do_pad, LW), jnp.float32),
        grid=(nblk,),
        in_specs=[
            pl.BlockSpec((K, DB, L), lambda i: (0, i, 0)),            # shifted input
            pl.BlockSpec(memory_space=pltpu.MemorySpace.SMEM),        # 64 flipped taps
            pl.BlockSpec(memory_space=pltpu.MemorySpace.SMEM),        # b0, b1
            pl.BlockSpec((1, LW), lambda i: (0, 0)),                  # w2 * mask
        ],
        out_specs=pl.BlockSpec((DB, LW), lambda i: (i, 0)),
        compiler_params=pltpu.CompilerParams(
            dimension_semantics=("parallel",)),
    )(xsh, wflip, scal, wm)

    # Crop padded depth rows + junk columns, restore (Do, Ho2, Wo2).
    y = out_flat[:Do, :Ho2 * WP].reshape(Do, Ho2, WP)[:, :, :Wo2]
    return y.reshape(1, 1, Do, Ho2, Wo2)


def reference_forward(x, wt, b0, w2, b1):
    """Independent pure-JAX reference (scatter definition of ConvTranspose3d)."""
    D, H, Wd = x.shape[2:]
    Do, Ho, Wo = D + 1, H + 1, Wd + 1
    xv = x[0, 0].astype(jnp.float32)
    w3 = wt[0, 0].astype(jnp.float32)
    y1 = jnp.zeros((Do, Ho, Wo), jnp.float32)
    for md in range(K):
        for mh in range(K):
            for mw in range(K):
                od0 = max(0, md - PT); id0 = od0 - (md - PT); ld = min(D - id0, Do - od0)
                oh0 = max(0, mh - PT); ih0 = oh0 - (mh - PT); lh = min(H - ih0, Ho - oh0)
                ow0 = max(0, mw - PT); iw0 = ow0 - (mw - PT); lw = min(Wd - iw0, Wo - ow0)
                y1 = y1.at[od0:od0 + ld, oh0:oh0 + lh, ow0:ow0 + lw].add(
                    xv[id0:id0 + ld, ih0:ih0 + lh, iw0:iw0 + lw] * w3[md, mh, mw])
    y1 = jnp.maximum(y1 + b0[0], 0.0)
    y1p = jnp.pad(y1, ((0, 0), (P2, P2), (P2, P2)))
    y2 = jnp.maximum(w2.reshape(()) * y1p + b1[0], 0.0)
    return y2.reshape(1, 1, Do, Ho + 2, Wo + 2)


if __name__ == "__main__":
    key = jax.random.PRNGKey(0)
    k1, k2, k3, k4, k5 = jax.random.split(key, 5)

    # Small shapes consistent with the module (original repro was 1x1x32x32x32).
    x1 = jax.random.normal(k1, (1, 1, 16, 16, 16), jnp.float32)

    # Deterministic synthetic parameters (shapes match the PyTorch module).
    wt = jax.random.normal(k2, (1, 1, K, K, K), jnp.float32) * 0.2   # ConvTranspose3d weight
    b0 = jax.random.normal(k3, (1,), jnp.float32) * 0.1              # ConvTranspose3d bias
    w2 = jax.random.normal(k4, (1, 1, 1, 1), jnp.float32)            # Conv2d 1x1 weight
    b1 = jax.random.normal(k5, (1,), jnp.float32) * 0.1              # Conv2d bias

    fwd = jax.jit(model_forward)
    out = jax.block_until_ready(fwd(x1, wt, b0, w2, b1))
    ref = jax.block_until_ready(reference_forward(x1, wt, b0, w2, b1))

    assert out.shape == (1, 1, 17, 19, 19), out.shape
    assert jnp.allclose(out, ref, rtol=1e-4, atol=1e-4), float(jnp.max(jnp.abs(out - ref)))

    print("KERNEL_OK")
</pallas_src>

<mosaic_0001>
module attributes {stable_mosaic.version = 11 : i64} {
  func.func @fused_kernel(%arg0: i32, %arg1: memref<4x8x640xf32, #tpu.memory_space<vmem>>, %arg2: memref<64xf32, #tpu.memory_space<smem>>, %arg3: memref<2xf32, #tpu.memory_space<smem>>, %arg4: memref<1x512xf32, #tpu.memory_space<vmem>>, %arg5: memref<8x512xf32, #tpu.memory_space<vmem>>) attributes {dimension_semantics = [#tpu.dimension_semantics<parallel>], iteration_bounds = array<i64: 3>, scalar_prefetch = 0 : i64, scratch_operands = 0 : i64, tpu.core_type = #tpu.core_type<tc>, window_params = [{transform_indices = @transform_0, window_bounds = array<i64: 4, 8, 640>}, {transform_indices = @transform_1, window_bounds = array<i64: 64>}, {transform_indices = @transform_2, window_bounds = array<i64: 2>}, {pipeline_mode = #tpu.pipeline_mode<synchronous>, transform_indices = @transform_3, window_bounds = array<i64: 1, 512>}, {transform_indices = @transform_4, window_bounds = array<i64: 8, 512>}]} {
    %c0 = arith.constant 0 : index
    %0 = memref.load %arg3[%c0] : memref<2xf32, #tpu.memory_space<smem>>
    %c1 = arith.constant 1 : index
    %1 = memref.load %arg3[%c1] : memref<2xf32, #tpu.memory_space<smem>>
    %c0_0 = arith.constant 0 : index
    %c0_1 = arith.constant 0 : index
    %2 = vector.load %arg4[%c0_0, %c0_1] : memref<1x512xf32, #tpu.memory_space<vmem>>, vector<1x512xf32>
    %cst = arith.constant 0.000000e+00 : f32
    %3 = vector.broadcast %cst : f32 to vector<8x512xf32>
    %4 = vector.broadcast %0 : f32 to vector<8x512xf32>
    %5 = arith.addf %3, %4 : vector<8x512xf32>
    %c0_2 = arith.constant 0 : index
    %c0_3 = arith.constant 0 : index
    %c0_4 = arith.constant 0 : index
    %6 = vector.load %arg1[%c0_2, %c0_3, %c0_4] : memref<4x8x640xf32, #tpu.memory_space<vmem>>, vector<1x8x640xf32>
    %7 = vector.shape_cast %6 : vector<1x8x640xf32> to vector<8x640xf32>
    %c0_5 = arith.constant 0 : index
    %8 = memref.load %arg2[%c0_5] : memref<64xf32, #tpu.memory_space<smem>>
    %c1_6 = arith.constant 1 : index
    %9 = memref.load %arg2[%c1_6] : memref<64xf32, #tpu.memory_space<smem>>
    %c2 = arith.constant 2 : index
    %10 = memref.load %arg2[%c2] : memref<64xf32, #tpu.memory_space<smem>>
    %c3 = arith.constant 3 : index
    %11 = memref.load %arg2[%c3] : memref<64xf32, #tpu.memory_space<smem>>
    %c4 = arith.constant 4 : index
    %12 = memref.load %arg2[%c4] : memref<64xf32, #tpu.memory_space<smem>>
    %c5 = arith.constant 5 : index
    %13 = memref.load %arg2[%c5] : memref<64xf32, #tpu.memory_space<smem>>
    %c6 = arith.constant 6 : index
    %14 = memref.load %arg2[%c6] : memref<64xf32, #tpu.memory_space<smem>>
    %c7 = arith.constant 7 : index
    %15 = memref.load %arg2[%c7] : memref<64xf32, #tpu.memory_space<smem>>
    %c8 = arith.constant 8 : index
    %16 = memref.load %arg2[%c8] : memref<64xf32, #tpu.memory_space<smem>>
    %c9 = arith.constant 9 : index
    %17 = memref.load %arg2[%c9] : memref<64xf32, #tpu.memory_space<smem>>
    %c10 = arith.constant 10 : index
    %18 = memref.load %arg2[%c10] : memref<64xf32, #tpu.memory_space<smem>>
    %c11 = arith.constant 11 : index
    %19 = memref.load %arg2[%c11] : memref<64xf32, #tpu.memory_space<smem>>
    %c12 = arith.constant 12 : index
    %20 = memref.load %arg2[%c12] : memref<64xf32, #tpu.memory_space<smem>>
    %c13 = arith.constant 13 : index
    %21 = memref.load %arg2[%c13] : memref<64xf32, #tpu.memory_space<smem>>
    %c14 = arith.constant 14 : index
    %22 = memref.load %arg2[%c14] : memref<64xf32, #tpu.memory_space<smem>>
    %c15 = arith.constant 15 : index
    %23 = memref.load %arg2[%c15] : memref<64xf32, #tpu.memory_space<smem>>
    %24 = vector.extract_strided_slice %7 {offsets = [0, 0], sizes = [8, 512], strides = [1, 1]} : vector<8x640xf32> to vector<8x512xf32>
    %25 = vector.broadcast %8 : f32 to vector<8x512xf32>
    %26 = arith.mulf %24, %25 : vector<8x512xf32>
    %27 = arith.addf %5, %26 : vector<8x512xf32>
    %c639_i32 = arith.constant 639 : i32
    %28 = tpu.dynamic_rotate %7 by %c639_i32 dim 1 : vector<8x640xf32>, i32 -> vector<8x640xf32>
    %29 = vector.extract_strided_slice %28 {offsets = [0, 0], sizes = [8, 512], strides = [1, 1]} : vector<8x640xf32> to vector<8x512xf32>
    %30 = vector.broadcast %9 : f32 to vector<8x512xf32>
    %31 = arith.mulf %29, %30 : vector<8x512xf32>
    %32 = arith.addf %27, %31 : vector<8x512xf32>
    %c638_i32 = arith.constant 638 : i32
    %33 = tpu.dynamic_rotate %7 by %c638_i32 dim 1 : vector<8x640xf32>, i32 -> vector<8x640xf32>
    %34 = vector.extract_strided_slice %33 {offsets = [0, 0], sizes = [8, 512], strides = [1, 1]} : vector<8x640xf32> to vector<8x512xf32>
    %35 = vector.broadcast %10 : f32 to vector<8x512xf32>
    %36 = arith.mulf %34, %35 : vector<8x512xf32>
    %37 = arith.addf %32, %36 : vector<8x512xf32>
    %c637_i32 = arith.constant 637 : i32
    %38 = tpu.dynamic_rotate %7 by %c637_i32 dim 1 : vector<8x640xf32>, i32 -> vector<8x640xf32>
    %39 = vector.extract_strided_slice %38 {offsets = [0, 0], sizes = [8, 512], strides = [1, 1]} : vector<8x640xf32> to vector<8x512xf32>
    %40 = vector.broadcast %11 : f32 to vector<8x512xf32>
    %41 = arith.mulf %39, %40 : vector<8x512xf32>
    %42 = arith.addf %37, %41 : vector<8x512xf32>
    %c618_i32 = arith.constant 618 : i32
    %43 = tpu.dynamic_rotate %7 by %c618_i32 dim 1 : vector<8x640xf32>, i32 -> vector<8x640xf32>
    %44 = vector.extract_strided_slice %43 {offsets = [0, 0], sizes = [8, 512], strides = [1, 1]} : vector<8x640xf32> to vector<8x512xf32>
    %45 = vector.broadcast %12 : f32 to vector<8x512xf32>
    %46 = arith.mulf %44, %45 : vector<8x512xf32>
    %47 = arith.addf %42, %46 : vector<8x512xf32>
    %c617_i32 = arith.constant 617 : i32
    %48 = tpu.dynamic_rotate %7 by %c617_i32 dim 1 : vector<8x640xf32>, i32 -> vector<8x640xf32>
    %49 = vector.extract_strided_slice %48 {offsets = [0, 0], sizes = [8, 512], strides = [1, 1]} : vector<8x640xf32> to vector<8x512xf32>
    %50 = vector.broadcast %13 : f32 to vector<8x512xf32>
    %51 = arith.mulf %49, %50 : vector<8x512xf32>
    %52 = arith.addf %47, %51 : vector<8x512xf32>
    %c616_i32 = arith.constant 616 : i32
    %53 = tpu.dynamic_rotate %7 by %c616_i32 dim 1 : vector<8x640xf32>, i32 -> vector<8x640xf32>
    %54 = vector.extract_strided_slice %53 {offsets = [0, 0], sizes = [8, 512], strides = [1, 1]} : vector<8x640xf32> to vector<8x512xf32>
    %55 = vector.broadcast %14 : f32 to vector<8x512xf32>
    %56 = arith.mulf %54, %55 : vector<8x512xf32>
    %57 = arith.addf %52, %56 : vector<8x512xf32>
    %c615_i32 = arith.constant 615 : i32
    %58 = tpu.dynamic_rotate %7 by %c615_i32 dim 1 : vector<8x640xf32>, i32 -> vector<8x640xf32>
    %59 = vector.extract_strided_slice %58 {offsets = [0, 0], sizes = [8, 512], strides = [1, 1]} : vector<8x640xf32> to vector<8x512xf32>
    %60 = vector.broadcast %15 : f32 to vector<8x512xf32>
    %61 = arith.mulf %59, %60 : vector<8x512xf32>
    %62 = arith.addf %57, %61 : vector<8x512xf32>
    %c596_i32 = arith.constant 596 : i32
    %63 = tpu.dynamic_rotate %7 by %c596_i32 dim 1 : vector<8x640xf32>, i32 -> vector<8x640xf32>
    %64 = vector.extract_strided_slice %63 {offsets = [0, 0], sizes = [8, 512], strides = [1, 1]} : vector<8x640xf32> to vector<8x512xf32>
    %65 = vector.broadcast %16 : f32 to vector<8x512xf32>
    %66 = arith.mulf %64, %65 : vector<8x512xf32>
    %67 = arith.addf %62, %66 : vector<8x512xf32>
    %c595_i32 = arith.constant 595 : i32
    %68 = tpu.dynamic_rotate %7 by %c595_i32 dim 1 : vector<8x640xf32>, i32 -> vector<8x640xf32>
    %69 = vector.extract_strided_slice %68 {offsets = [0, 0], sizes = [8, 512], strides = [1, 1]} : vector<8x640xf32> to vector<8x512xf32>
    %70 = vector.broadcast %17 : f32 to vector<8x512xf32>
    %71 = arith.mulf %69, %70 : vector<8x512xf32>
    %72 = arith.addf %67, %71 : vector<8x512xf32>
    %c594_i32 = arith.constant 594 : i32
    %73 = tpu.dynamic_rotate %7 by %c594_i32 dim 1 : vector<8x640xf32>, i32 -> vector<8x640xf32>
    %74 = vector.extract_strided_slice %73 {offsets = [0, 0], sizes = [8, 512], strides = [1, 1]} : vector<8x640xf32> to vector<8x512xf32>
    %75 = vector.broadcast %18 : f32 to vector<8x512xf32>
    %76 = arith.mulf %74, %75 : vector<8x512xf32>
    %77 = arith.addf %72, %76 : vector<8x512xf32>
    %c593_i32 = arith.constant 593 : i32
    %78 = tpu.dynamic_rotate %7 by %c593_i32 dim 1 : vector<8x640xf32>, i32 -> vector<8x640xf32>
    %79 = vector.extract_strided_slice %78 {offsets = [0, 0], sizes = [8, 512], strides = [1, 1]} : vector<8x640xf32> to vector<8x512xf32>
    %80 = vector.broadcast %19 : f32 to vector<8x512xf32>
    %81 = arith.mulf %79, %80 : vector<8x512xf32>
    %82 = arith.addf %77, %81 : vector<8x512xf32>
    %c574_i32 = arith.constant 574 : i32
    %83 = tpu.dynamic_rotate %7 by %c574_i32 dim 1 : vector<8x640xf32>, i32 -> vector<8x640xf32>
    %84 = vector.extract_strided_slice %83 {offsets = [0, 0], sizes = [8, 512], strides = [1, 1]} : vector<8x640xf32> to vector<8x512xf32>
    %85 = vector.broadcast %20 : f32 to vector<8x512xf32>
    %86 = arith.mulf %84, %85 : vector<8x512xf32>
    %87 = arith.addf %82, %86 : vector<8x512xf32>
    %c573_i32 = arith.constant 573 : i32
    %88 = tpu.dynamic_rotate %7 by %c573_i32 dim 1 : vector<8x640xf32>, i32 -> vector<8x640xf32>
    %89 = vector.extract_strided_slice %88 {offsets = [0, 0], sizes = [8, 512], strides = [1, 1]} : vector<8x640xf32> to vector<8x512xf32>
    %90 = vector.broadcast %21 : f32 to vector<8x512xf32>
    %91 = arith.mulf %89, %90 : vector<8x512xf32>
    %92 = arith.addf %87, %91 : vector<8x512xf32>
    %c572_i32 = arith.constant 572 : i32
    %93 = tpu.dynamic_rotate %7 by %c572_i32 dim 1 : vector<8x640xf32>, i32 -> vector<8x640xf32>
    %94 = vector.extract_strided_slice %93 {offsets = [0, 0], sizes = [8, 512], strides = [1, 1]} : vector<8x640xf32> to vector<8x512xf32>
    %95 = vector.broadcast %22 : f32 to vector<8x512xf32>
    %96 = arith.mulf %94, %95 : vector<8x512xf32>
    %97 = arith.addf %92, %96 : vector<8x512xf32>
    %c571_i32 = arith.constant 571 : i32
    %98 = tpu.dynamic_rotate %7 by %c571_i32 dim 1 : vector<8x640xf32>, i32 -> vector<8x640xf32>
    %99 = vector.extract_strided_slice %98 {offsets = [0, 0], sizes = [8, 512], strides = [1, 1]} : vector<8x640xf32> to vector<8x512xf32>
    %100 = vector.broadcast %23 : f32 to vector<8x512xf32>
    %101 = arith.mulf %99, %100 : vector<8x512xf32>
    %102 = arith.addf %97, %101 : vector<8x512xf32>
    %c1_7 = arith.constant 1 : index
    %c0_8 = arith.constant 0 : index
    %c0_9 = arith.constant 0 : index
    %103 = vector.load %arg1[%c1_7, %c0_8, %c0_9] : memref<4x8x640xf32, #tpu.memory_space<vmem>>, vector<1x8x640xf32>
    %104 = vector.shape_cast %103 : vector<1x8x640xf32> to vector<8x640xf32>
    %c16 = arith.constant 16 : index
    %105 = memref.load %arg2[%c16] : memref<64xf32, #tpu.memory_space<smem>>
    %c17 = arith.constant 17 : index
    %106 = memref.load %arg2[%c17] : memref<64xf32, #tpu.memory_space<smem>>
    %c18 = arith.constant 18 : index
    %107 = memref.load %arg2[%c18] : memref<64xf32, #tpu.memory_space<smem>>
    %c19 = arith.constant 19 : index
    %108 = memref.load %arg2[%c19] : memref<64xf32, #tpu.memory_space<smem>>
    %c20 = arith.constant 20 : index
    %109 = memref.load %arg2[%c20] : memref<64xf32, #tpu.memory_space<smem>>
    %c21 = arith.constant 21 : index
    %110 = memref.load %arg2[%c21] : memref<64xf32, #tpu.memory_space<smem>>
    %c22 = arith.constant 22 : index
    %111 = memref.load %arg2[%c22] : memref<64xf32, #tpu.memory_space<smem>>
    %c23 = arith.constant 23 : index
    %112 = memref.load %arg2[%c23] : memref<64xf32, #tpu.memory_space<smem>>
    %c24 = arith.constant 24 : index
    %113 = memref.load %arg2[%c24] : memref<64xf32, #tpu.memory_space<smem>>
    %c25 = arith.constant 25 : index
    %114 = memref.load %arg2[%c25] : memref<64xf32, #tpu.memory_space<smem>>
    %c26 = arith.constant 26 : index
    %115 = memref.load %arg2[%c26] : memref<64xf32, #tpu.memory_space<smem>>
    %c27 = arith.constant 27 : index
    %116 = memref.load %arg2[%c27] : memref<64xf32, #tpu.memory_space<smem>>
    %c28 = arith.constant 28 : index
    %117 = memref.load %arg2[%c28] : memref<64xf32, #tpu.memory_space<smem>>
    %c29 = arith.constant 29 : index
    %118 = memref.load %arg2[%c29] : memref<64xf32, #tpu.memory_space<smem>>
    %c30 = arith.constant 30 : index
    %119 = memref.load %arg2[%c30] : memref<64xf32, #tpu.memory_space<smem>>
    %c31 = arith.constant 31 : index
    %120 = memref.load %arg2[%c31] : memref<64xf32, #tpu.memory_space<smem>>
    %121 = vector.extract_strided_slice %104 {offsets = [0, 0], sizes = [8, 512], strides = [1, 1]} : vector<8x640xf32> to vector<8x512xf32>
    %122 = vector.broadcast %105 : f32 to vector<8x512xf32>
    %123 = arith.mulf %121, %122 : vector<8x512xf32>
    %124 = arith.addf %102, %123 : vector<8x512xf32>
    %c639_i32_10 = arith.constant 639 : i32
    %125 = tpu.dynamic_rotate %104 by %c639_i32_10 dim 1 : vector<8x640xf32>, i32 -> vector<8x640xf32>
    %126 = vector.extract_strided_slice %125 {offsets = [0, 0], sizes = [8, 512], strides = [1, 1]} : vector<8x640xf32> to vector<8x512xf32>
    %127 = vector.broadcast %106 : f32 to vector<8x512xf32>
    %128 = arith.mulf %126, %127 : vector<8x512xf32>
    %129 = arith.addf %124, %128 : vector<8x512xf32>
    %c638_i32_11 = arith.constant 638 : i32
    %130 = tpu.dynamic_rotate %104 by %c638_i32_11 dim 1 : vector<8x640xf32>, i32 -> vector<8x640xf32>
    %131 = vector.extract_strided_slice %130 {offsets = [0, 0], sizes = [8, 512], strides = [1, 1]} : vector<8x640xf32> to vector<8x512xf32>
    %132 = vector.broadcast %107 : f32 to vector<8x512xf32>
    %133 = arith.mulf %131, %132 : vector<8x512xf32>
    %134 = arith.addf %129, %133 : vector<8x512xf32>
    %c637_i32_12 = arith.constant 637 : i32
    %135 = tpu.dynamic_rotate %104 by %c637_i32_12 dim 1 : vector<8x640xf32>, i32 -> vector<8x640xf32>
    %136 = vector.extract_strided_slice %135 {offsets = [0, 0], sizes = [8, 512], strides = [1, 1]} : vector<8x640xf32> to vector<8x512xf32>
    %137 = vector.broadcast %108 : f32 to vector<8x512xf32>
    %138 = arith.mulf %136, %137 : vector<8x512xf32>
    %139 = arith.addf %134, %138 : vector<8x512xf32>
    %c618_i32_13 = arith.constant 618 : i32
    %140 = tpu.dynamic_rotate %104 by %c618_i32_13 dim 1 : vector<8x640xf32>, i32 -> vector<8x640xf32>
    %141 = vector.extract_strided_slice %140 {offsets = [0, 0], sizes = [8, 512], strides = [1, 1]} : vector<8x640xf32> to vector<8x512xf32>
    %142 = vector.broadcast %109 : f32 to vector<8x512xf32>
    %143 = arith.mulf %141, %142 : vector<8x512xf32>
    %144 = arith.addf %139, %143 : vector<8x512xf32>
    %c617_i32_14 = arith.constant 617 : i32
    %145 = tpu.dynamic_rotate %104 by %c617_i32_14 dim 1 : vector<8x640xf32>, i32 -> vector<8x640xf32>
    %146 = vector.extract_strided_slice %145 {offsets = [0, 0], sizes = [8, 512], strides = [1, 1]} : vector<8x640xf32> to vector<8x512xf32>
    %147 = vector.broadcast %110 : f32 to vector<8x512xf32>
    %148 = arith.mulf %146, %147 : vector<8x512xf32>
    %149 = arith.addf %144, %148 : vector<8x512xf32>
    %c616_i32_15 = arith.constant 616 : i32
    %150 = tpu.dynamic_rotate %104 by %c616_i32_15 dim 1 : vector<8x640xf32>, i32 -> vector<8x640xf32>
    %151 = vector.extract_strided_slice %150 {offsets = [0, 0], sizes = [8, 512], strides = [1, 1]} : vector<8x640xf32> to vector<8x512xf32>
    %152 = vector.broadcast %111 : f32 to vector<8x512xf32>
    %153 = arith.mulf %151, %152 : vector<8x512xf32>
    %154 = arith.addf %149, %153 : vector<8x512xf32>
    %c615_i32_16 = arith.constant 615 : i32
    %155 = tpu.dynamic_rotate %104 by %c615_i32_16 dim 1 : vector<8x640xf32>, i32 -> vector<8x640xf32>
    %156 = vector.extract_strided_slice %155 {offsets = [0, 0], sizes = [8, 512], strides = [1, 1]} : vector<8x640xf32> to vector<8x512xf32>
    %157 = vector.broadcast %112 : f32 to vector<8x512xf32>
    %158 = arith.mulf %156, %157 : vector<8x512xf32>
    %159 = arith.addf %154, %158 : vector<8x512xf32>
    %c596_i32_17 = arith.constant 596 : i32
    %160 = tpu.dynamic_rotate %104 by %c596_i32_17 dim 1 : vector<8x640xf32>, i32 -> vector<8x640xf32>
    %161 = vector.extract_strided_slice %160 {offsets = [0, 0], sizes = [8, 512], strides = [1, 1]} : vector<8x640xf32> to vector<8x512xf32>
    %162 = vector.broadcast %113 : f32 to vector<8x512xf32>
    %163 = arith.mulf %161, %162 : vector<8x512xf32>
    %164 = arith.addf %159, %163 : vector<8x512xf32>
    %c595_i32_18 = arith.constant 595 : i32
    %165 = tpu.dynamic_rotate %104 by %c595_i32_18 dim 1 : vector<8x640xf32>, i32 -> vector<8x640xf32>
    %166 = vector.extract_strided_slice %165 {offsets = [0, 0], sizes = [8, 512], strides = [1, 1]} : vector<8x640xf32> to vector<8x512xf32>
    %167 = vector.broadcast %114 : f32 to vector<8x512xf32>
    %168 = arith.mulf %166, %167 : vector<8x512xf32>
    %169 = arith.addf %164, %168 : vector<8x512xf32>
    %c594_i32_19 = arith.constant 594 : i32
    %170 = tpu.dynamic_rotate %104 by %c594_i32_19 dim 1 : vector<8x640xf32>, i32 -> vector<8x640xf32>
    %171 = vector.extract_strided_slice %170 {offsets = [0, 0], sizes = [8, 512], strides = [1, 1]} : vector<8x640xf32> to vector<8x512xf32>
    %172 = vector.broadcast %115 : f32 to vector<8x512xf32>
    %173 = arith.mulf %171, %172 : vector<8x512xf32>
    %174 = arith.addf %169, %173 : vector<8x512xf32>
    %c593_i32_20 = arith.constant 593 : i32
    %175 = tpu.dynamic_rotate %104 by %c593_i32_20 dim 1 : vector<8x640xf32>, i32 -> vector<8x640xf32>
    %176 = vector.extract_strided_slice %175 {offsets = [0, 0], sizes = [8, 512], strides = [1, 1]} : vector<8x640xf32> to vector<8x512xf32>
    %177 = vector.broadcast %116 : f32 to vector<8x512xf32>
    %178 = arith.mulf %176, %177 : vector<8x512xf32>
    %179 = arith.addf %174, %178 : vector<8x512xf32>
    %c574_i32_21 = arith.constant 574 : i32
    %180 = tpu.dynamic_rotate %104 by %c574_i32_21 dim 1 : vector<8x640xf32>, i32 -> vector<8x640xf32>
    %181 = vector.extract_strided_slice %180 {offsets = [0, 0], sizes = [8, 512], strides = [1, 1]} : vector<8x640xf32> to vector<8x512xf32>
    %182 = vector.broadcast %117 : f32 to vector<8x512xf32>
    %183 = arith.mulf %181, %182 : vector<8x512xf32>
    %184 = arith.addf %179, %183 : vector<8x512xf32>
    %c573_i32_22 = arith.constant 573 : i32
    %185 = tpu.dynamic_rotate %104 by %c573_i32_22 dim 1 : vector<8x640xf32>, i32 -> vector<8x640xf32>
    %186 = vector.extract_strided_slice %185 {offsets = [0, 0], sizes = [8, 512], strides = [1, 1]} : vector<8x640xf32> to vector<8x512xf32>
    %187 = vector.broadcast %118 : f32 to vector<8x512xf32>
    %188 = arith.mulf %186, %187 : vector<8x512xf32>
    %189 = arith.addf %184, %188 : vector<8x512xf32>
    %c572_i32_23 = arith.constant 572 : i32
    %190 = tpu.dynamic_rotate %104 by %c572_i32_23 dim 1 : vector<8x640xf32>, i32 -> vector<8x640xf32>
    %191 = vector.extract_strided_slice %190 {offsets = [0, 0], sizes = [8, 512], strides = [1, 1]} : vector<8x640xf32> to vector<8x512xf32>
    %192 = vector.broadcast %119 : f32 to vector<8x512xf32>
    %193 = arith.mulf %191, %192 : vector<8x512xf32>
    %194 = arith.addf %189, %193 : vector<8x512xf32>
    %c571_i32_24 = arith.constant 571 : i32
    %195 = tpu.dynamic_rotate %104 by %c571_i32_24 dim 1 : vector<8x640xf32>, i32 -> vector<8x640xf32>
    %196 = vector.extract_strided_slice %195 {offsets = [0, 0], sizes = [8, 512], strides = [1, 1]} : vector<8x640xf32> to vector<8x512xf32>
    %197 = vector.broadcast %120 : f32 to vector<8x512xf32>
    %198 = arith.mulf %196, %197 : vector<8x512xf32>
    %199 = arith.addf %194, %198 : vector<8x512xf32>
    %c2_25 = arith.constant 2 : index
    %c0_26 = arith.constant 0 : index
    %c0_27 = arith.constant 0 : index
    %200 = vector.load %arg1[%c2_25, %c0_26, %c0_27] : memref<4x8x640xf32, #tpu.memory_space<vmem>>, vector<1x8x640xf32>
    %201 = vector.shape_cast %200 : vector<1x8x640xf32> to vector<8x640xf32>
    %c32 = arith.constant 32 : index
    %202 = memref.load %arg2[%c32] : memref<64xf32, #tpu.memory_space<smem>>
    %c33 = arith.constant 33 : index
    %203 = memref.load %arg2[%c33] : memref<64xf32, #tpu.memory_space<smem>>
    %c34 = arith.constant 34 : index
    %204 = memref.load %arg2[%c34] : memref<64xf32, #tpu.memory_space<smem>>
    %c35 = arith.constant 35 : index
    %205 = memref.load %arg2[%c35] : memref<64xf32, #tpu.memory_space<smem>>
    %c36 = arith.constant 36 : index
    %206 = memref.load %arg2[%c36] : memref<64xf32, #tpu.memory_space<smem>>
    %c37 = arith.constant 37 : index
    %207 = memref.load %arg2[%c37] : memref<64xf32, #tpu.memory_space<smem>>
    %c38 = arith.constant 38 : index
    %208 = memref.load %arg2[%c38] : memref<64xf32, #tpu.memory_space<smem>>
    %c39 = arith.constant 39 : index
    %209 = memref.load %arg2[%c39] : memref<64xf32, #tpu.memory_space<smem>>
    %c40 = arith.constant 40 : index
    %210 = memref.load %arg2[%c40] : memref<64xf32, #tpu.memory_space<smem>>
    %c41 = arith.constant 41 : index
    %211 = memref.load %arg2[%c41] : memref<64xf32, #tpu.memory_space<smem>>
    %c42 = arith.constant 42 : index
    %212 = memref.load %arg2[%c42] : memref<64xf32, #tpu.memory_space<smem>>
    %c43 = arith.constant 43 : index
    %213 = memref.load %arg2[%c43] : memref<64xf32, #tpu.memory_space<smem>>
    %c44 = arith.constant 44 : index
    %214 = memref.load %arg2[%c44] : memref<64xf32, #tpu.memory_space<smem>>
    %c45 = arith.constant 45 : index
    %215 = memref.load %arg2[%c45] : memref<64xf32, #tpu.memory_space<smem>>
    %c46 = arith.constant 46 : index
    %216 = memref.load %arg2[%c46] : memref<64xf32, #tpu.memory_space<smem>>
    %c47 = arith.constant 47 : index
    %217 = memref.load %arg2[%c47] : memref<64xf32, #tpu.memory_space<smem>>
    %218 = vector.extract_strided_slice %201 {offsets = [0, 0], sizes = [8, 512], strides = [1, 1]} : vector<8x640xf32> to vector<8x512xf32>
    %219 = vector.broadcast %202 : f32 to vector<8x512xf32>
    %220 = arith.mulf %218, %219 : vector<8x512xf32>
    %221 = arith.addf %199, %220 : vector<8x512xf32>
    %c639_i32_28 = arith.constant 639 : i32
    %222 = tpu.dynamic_rotate %201 by %c639_i32_28 dim 1 : vector<8x640xf32>, i32 -> vector<8x640xf32>
    %223 = vector.extract_strided_slice %222 {offsets = [0, 0], sizes = [8, 512], strides = [1, 1]} : vector<8x640xf32> to vector<8x512xf32>
    %224 = vector.broadcast %203 : f32 to vector<8x512xf32>
    %225 = arith.mulf %223, %224 : vector<8x512xf32>
    %226 = arith.addf %221, %225 : vector<8x512xf32>
    %c638_i32_29 = arith.constant 638 : i32
    %227 = tpu.dynamic_rotate %201 by %c638_i32_29 dim 1 : vector<8x640xf32>, i32 -> vector<8x640xf32>
    %228 = vector.extract_strided_slice %227 {offsets = [0, 0], sizes = [8, 512], strides = [1, 1]} : vector<8x640xf32> to vector<8x512xf32>
    %229 = vector.broadcast %204 : f32 to vector<8x512xf32>
    %230 = arith.mulf %228, %229 : vector<8x512xf32>
    %231 = arith.addf %226, %230 : vector<8x512xf32>
    %c637_i32_30 = arith.constant 637 : i32
    %232 = tpu.dynamic_rotate %201 by %c637_i32_30 dim 1 : vector<8x640xf32>, i32 -> vector<8x640xf32>
    %233 = vector.extract_strided_slice %232 {offsets = [0, 0], sizes = [8, 512], strides = [1, 1]} : vector<8x640xf32> to vector<8x512xf32>
    %234 = vector.broadcast %205 : f32 to vector<8x512xf32>
    %235 = arith.mulf %233, %234 : vector<8x512xf32>
    %236 = arith.addf %231, %235 : vector<8x512xf32>
    %c618_i32_31 = arith.constant 618 : i32
    %237 = tpu.dynamic_rotate %201 by %c618_i32_31 dim 1 : vector<8x640xf32>, i32 -> vector<8x640xf32>
    %238 = vector.extract_strided_slice %237 {offsets = [0, 0], sizes = [8, 512], strides = [1, 1]} : vector<8x640xf32> to vector<8x512xf32>
    %239 = vector.broadcast %206 : f32 to vector<8x512xf32>
    %240 = arith.mulf %238, %239 : vector<8x512xf32>
    %241 = arith.addf %236, %240 : vector<8x512xf32>
    %c617_i32_32 = arith.constant 617 : i32
    %242 = tpu.dynamic_rotate %201 by %c617_i32_32 dim 1 : vector<8x640xf32>, i32 -> vector<8x640xf32>
    %243 = vector.extract_strided_slice %242 {offsets = [0, 0], sizes = [8, 512], strides = [1, 1]} : vector<8x640xf32> to vector<8x512xf32>
    %244 = vector.broadcast %207 : f32 to vector<8x512xf32>
    %245 = arith.mulf %243, %244 : vector<8x512xf32>
    %246 = arith.addf %241, %245 : vector<8x512xf32>
    %c616_i32_33 = arith.constant 616 : i32
    %247 = tpu.dynamic_rotate %201 by %c616_i32_33 dim 1 : vector<8x640xf32>, i32 -> vector<8x640xf32>
    %248 = vector.extract_strided_slice %247 {offsets = [0, 0], sizes = [8, 512], strides = [1, 1]} : vector<8x640xf32> to vector<8x512xf32>
    %249 = vector.broadcast %208 : f32 to vector<8x512xf32>
    %250 = arith.mulf %248, %249 : vector<8x512xf32>
    %251 = arith.addf %246, %250 : vector<8x512xf32>
    %c615_i32_34 = arith.constant 615 : i32
    %252 = tpu.dynamic_rotate %201 by %c615_i32_34 dim 1 : vector<8x640xf32>, i32 -> vector<8x640xf32>
    %253 = vector.extract_strided_slice %252 {offsets = [0, 0], sizes = [8, 512], strides = [1, 1]} : vector<8x640xf32> to vector<8x512xf32>
    %254 = vector.broadcast %209 : f32 to vector<8x512xf32>
    %255 = arith.mulf %253, %254 : vector<8x512xf32>
    %256 = arith.addf %251, %255 : vector<8x512xf32>
    %c596_i32_35 = arith.constant 596 : i32
    %257 = tpu.dynamic_rotate %201 by %c596_i32_35 dim 1 : vector<8x640xf32>, i32 -> vector<8x640xf32>
    %258 = vector.extract_strided_slice %257 {offsets = [0, 0], sizes = [8, 512], strides = [1, 1]} : vector<8x640xf32> to vector<8x512xf32>
    %259 = vector.broadcast %210 : f32 to vector<8x512xf32>
    %260 = arith.mulf %258, %259 : vector<8x512xf32>
    %261 = arith.addf %256, %260 : vector<8x512xf32>
    %c595_i32_36 = arith.constant 595 : i32
    %262 = tpu.dynamic_rotate %201 by %c595_i32_36 dim 1 : vector<8x640xf32>, i32 -> vector<8x640xf32>
    %263 = vector.extract_strided_slice %262 {offsets = [0, 0], sizes = [8, 512], strides = [1, 1]} : vector<8x640xf32> to vector<8x512xf32>
    %264 = vector.broadcast %211 : f32 to vector<8x512xf32>
    %265 = arith.mulf %263, %264 : vector<8x512xf32>
    %266 = arith.addf %261, %265 : vector<8x512xf32>
    %c594_i32_37 = arith.constant 594 : i32
    %267 = tpu.dynamic_rotate %201 by %c594_i32_37 dim 1 : vector<8x640xf32>, i32 -> vector<8x640xf32>
    %268 = vector.extract_strided_slice %267 {offsets = [0, 0], sizes = [8, 512], strides = [1, 1]} : vector<8x640xf32> to vector<8x512xf32>
    %269 = vector.broadcast %212 : f32 to vector<8x512xf32>
    %270 = arith.mulf %268, %269 : vector<8x512xf32>
    %271 = arith.addf %266, %270 : vector<8x512xf32>
    %c593_i32_38 = arith.constant 593 : i32
    %272 = tpu.dynamic_rotate %201 by %c593_i32_38 dim 1 : vector<8x640xf32>, i32 -> vector<8x640xf32>
    %273 = vector.extract_strided_slice %272 {offsets = [0, 0], sizes = [8, 512], strides = [1, 1]} : vector<8x640xf32> to vector<8x512xf32>
    %274 = vector.broadcast %213 : f32 to vector<8x512xf32>
    %275 = arith.mulf %273, %274 : vector<8x512xf32>
    %276 = arith.addf %271, %275 : vector<8x512xf32>
    %c574_i32_39 = arith.constant 574 : i32
    %277 = tpu.dynamic_rotate %201 by %c574_i32_39 dim 1 : vector<8x640xf32>, i32 -> vector<8x640xf32>
    %278 = vector.extract_strided_slice %277 {offsets = [0, 0], sizes = [8, 512], strides = [1, 1]} : vector<8x640xf32> to vector<8x512xf32>
    %279 = vector.broadcast %214 : f32 to vector<8x512xf32>
    %280 = arith.mulf %278, %279 : vector<8x512xf32>
    %281 = arith.addf %276, %280 : vector<8x512xf32>
    %c573_i32_40 = arith.constant 573 : i32
    %282 = tpu.dynamic_rotate %201 by %c573_i32_40 dim 1 : vector<8x640xf32>, i32 -> vector<8x640xf32>
    %283 = vector.extract_strided_slice %282 {offsets = [0, 0], sizes = [8, 512], strides = [1, 1]} : vector<8x640xf32> to vector<8x512xf32>
    %284 = vector.broadcast %215 : f32 to vector<8x512xf32>
    %285 = arith.mulf %283, %284 : vector<8x512xf32>
    %286 = arith.addf %281, %285 : vector<8x512xf32>
    %c572_i32_41 = arith.constant 572 : i32
    %287 = tpu.dynamic_rotate %201 by %c572_i32_41 dim 1 : vector<8x640xf32>, i32 -> vector<8x640xf32>
    %288 = vector.extract_strided_slice %287 {offsets = [0, 0], sizes = [8, 512], strides = [1, 1]} : vector<8x640xf32> to vector<8x512xf32>
    %289 = vector.broadcast %216 : f32 to vector<8x512xf32>
    %290 = arith.mulf %288, %289 : vector<8x512xf32>
    %291 = arith.addf %286, %290 : vector<8x512xf32>
    %c571_i32_42 = arith.constant 571 : i32
    %292 = tpu.dynamic_rotate %201 by %c571_i32_42 dim 1 : vector<8x640xf32>, i32 -> vector<8x640xf32>
    %293 = vector.extract_strided_slice %292 {offsets = [0, 0], sizes = [8, 512], strides = [1, 1]} : vector<8x640xf32> to vector<8x512xf32>
    %294 = vector.broadcast %217 : f32 to vector<8x512xf32>
    %295 = arith.mulf %293, %294 : vector<8x512xf32>
    %296 = arith.addf %291, %295 : vector<8x512xf32>
    %c3_43 = arith.constant 3 : index
    %c0_44 = arith.constant 0 : index
    %c0_45 = arith.constant 0 : index
    %297 = vector.load %arg1[%c3_43, %c0_44, %c0_45] : memref<4x8x640xf32, #tpu.memory_space<vmem>>, vector<1x8x640xf32>
    %298 = vector.shape_cast %297 : vector<1x8x640xf32> to vector<8x640xf32>
    %c48 = arith.constant 48 : index
    %299 = memref.load %arg2[%c48] : memref<64xf32, #tpu.memory_space<smem>>
    %c49 = arith.constant 49 : index
    %300 = memref.load %arg2[%c49] : memref<64xf32, #tpu.memory_space<smem>>
    %c50 = arith.constant 50 : index
    %301 = memref.load %arg2[%c50] : memref<64xf32, #tpu.memory_space<smem>>
    %c51 = arith.constant 51 : index
    %302 = memref.load %arg2[%c51] : memref<64xf32, #tpu.memory_space<smem>>
    %c52 = arith.constant 52 : index
    %303 = memref.load %arg2[%c52] : memref<64xf32, #tpu.memory_space<smem>>
    %c53 = arith.constant 53 : index
    %304 = memref.load %arg2[%c53] : memref<64xf32, #tpu.memory_space<smem>>
    %c54 = arith.constant 54 : index
    %305 = memref.load %arg2[%c54] : memref<64xf32, #tpu.memory_space<smem>>
    %c55 = arith.constant 55 : index
    %306 = memref.load %arg2[%c55] : memref<64xf32, #tpu.memory_space<smem>>
    %c56 = arith.constant 56 : index
    %307 = memref.load %arg2[%c56] : memref<64xf32, #tpu.memory_space<smem>>
    %c57 = arith.constant 57 : index
    %308 = memref.load %arg2[%c57] : memref<64xf32, #tpu.memory_space<smem>>
    %c58 = arith.constant 58 : index
    %309 = memref.load %arg2[%c58] : memref<64xf32, #tpu.memory_space<smem>>
    %c59 = arith.constant 59 : index
    %310 = memref.load %arg2[%c59] : memref<64xf32, #tpu.memory_space<smem>>
    %c60 = arith.constant 60 : index
    %311 = memref.load %arg2[%c60] : memref<64xf32, #tpu.memory_space<smem>>
    %c61 = arith.constant 61 : index
    %312 = memref.load %arg2[%c61] : memref<64xf32, #tpu.memory_space<smem>>
    %c62 = arith.constant 62 : index
    %313 = memref.load %arg2[%c62] : memref<64xf32, #tpu.memory_space<smem>>
    %c63 = arith.constant 63 : index
    %314 = memref.load %arg2[%c63] : memref<64xf32, #tpu.memory_space<smem>>
    %315 = vector.extract_strided_slice %298 {offsets = [0, 0], sizes = [8, 512], strides = [1, 1]} : vector<8x640xf32> to vector<8x512xf32>
    %316 = vector.broadcast %299 : f32 to vector<8x512xf32>
    %317 = arith.mulf %315, %316 : vector<8x512xf32>
    %318 = arith.addf %296, %317 : vector<8x512xf32>
    %c639_i32_46 = arith.constant 639 : i32
    %319 = tpu.dynamic_rotate %298 by %c639_i32_46 dim 1 : vector<8x640xf32>, i32 -> vector<8x640xf32>
    %320 = vector.extract_strided_slice %319 {offsets = [0, 0], sizes = [8, 512], strides = [1, 1]} : vector<8x640xf32> to vector<8x512xf32>
    %321 = vector.broadcast %300 : f32 to vector<8x512xf32>
    %322 = arith.mulf %320, %321 : vector<8x512xf32>
    %323 = arith.addf %318, %322 : vector<8x512xf32>
    %c638_i32_47 = arith.constant 638 : i32
    %324 = tpu.dynamic_rotate %298 by %c638_i32_47 dim 1 : vector<8x640xf32>, i32 -> vector<8x640xf32>
    %325 = vector.extract_strided_slice %324 {offsets = [0, 0], sizes = [8, 512], strides = [1, 1]} : vector<8x640xf32> to vector<8x512xf32>
    %326 = vector.broadcast %301 : f32 to vector<8x512xf32>
    %327 = arith.mulf %325, %326 : vector<8x512xf32>
    %328 = arith.addf %323, %327 : vector<8x512xf32>
    %c637_i32_48 = arith.constant 637 : i32
    %329 = tpu.dynamic_rotate %298 by %c637_i32_48 dim 1 : vector<8x640xf32>, i32 -> vector<8x640xf32>
    %330 = vector.extract_strided_slice %329 {offsets = [0, 0], sizes = [8, 512], strides = [1, 1]} : vector<8x640xf32> to vector<8x512xf32>
    %331 = vector.broadcast %302 : f32 to vector<8x512xf32>
    %332 = arith.mulf %330, %331 : vector<8x512xf32>
    %333 = arith.addf %328, %332 : vector<8x512xf32>
    %c618_i32_49 = arith.constant 618 : i32
    %334 = tpu.dynamic_rotate %298 by %c618_i32_49 dim 1 : vector<8x640xf32>, i32 -> vector<8x640xf32>
    %335 = vector.extract_strided_slice %334 {offsets = [0, 0], sizes = [8, 512], strides = [1, 1]} : vector<8x640xf32> to vector<8x512xf32>
    %336 = vector.broadcast %303 : f32 to vector<8x512xf32>
    %337 = arith.mulf %335, %336 : vector<8x512xf32>
    %338 = arith.addf %333, %337 : vector<8x512xf32>
    %c617_i32_50 = arith.constant 617 : i32
    %339 = tpu.dynamic_rotate %298 by %c617_i32_50 dim 1 : vector<8x640xf32>, i32 -> vector<8x640xf32>
    %340 = vector.extract_strided_slice %339 {offsets = [0, 0], sizes = [8, 512], strides = [1, 1]} : vector<8x640xf32> to vector<8x512xf32>
    %341 = vector.broadcast %304 : f32 to vector<8x512xf32>
    %342 = arith.mulf %340, %341 : vector<8x512xf32>
    %343 = arith.addf %338, %342 : vector<8x512xf32>
    %c616_i32_51 = arith.constant 616 : i32
    %344 = tpu.dynamic_rotate %298 by %c616_i32_51 dim 1 : vector<8x640xf32>, i32 -> vector<8x640xf32>
    %345 = vector.extract_strided_slice %344 {offsets = [0, 0], sizes = [8, 512], strides = [1, 1]} : vector<8x640xf32> to vector<8x512xf32>
    %346 = vector.broadcast %305 : f32 to vector<8x512xf32>
    %347 = arith.mulf %345, %346 : vector<8x512xf32>
    %348 = arith.addf %343, %347 : vector<8x512xf32>
    %c615_i32_52 = arith.constant 615 : i32
    %349 = tpu.dynamic_rotate %298 by %c615_i32_52 dim 1 : vector<8x640xf32>, i32 -> vector<8x640xf32>
    %350 = vector.extract_strided_slice %349 {offsets = [0, 0], sizes = [8, 512], strides = [1, 1]} : vector<8x640xf32> to vector<8x512xf32>
    %351 = vector.broadcast %306 : f32 to vector<8x512xf32>
    %352 = arith.mulf %350, %351 : vector<8x512xf32>
    %353 = arith.addf %348, %352 : vector<8x512xf32>
    %c596_i32_53 = arith.constant 596 : i32
    %354 = tpu.dynamic_rotate %298 by %c596_i32_53 dim 1 : vector<8x640xf32>, i32 -> vector<8x640xf32>
    %355 = vector.extract_strided_slice %354 {offsets = [0, 0], sizes = [8, 512], strides = [1, 1]} : vector<8x640xf32> to vector<8x512xf32>
    %356 = vector.broadcast %307 : f32 to vector<8x512xf32>
    %357 = arith.mulf %355, %356 : vector<8x512xf32>
    %358 = arith.addf %353, %357 : vector<8x512xf32>
    %c595_i32_54 = arith.constant 595 : i32
    %359 = tpu.dynamic_rotate %298 by %c595_i32_54 dim 1 : vector<8x640xf32>, i32 -> vector<8x640xf32>
    %360 = vector.extract_strided_slice %359 {offsets = [0, 0], sizes = [8, 512], strides = [1, 1]} : vector<8x640xf32> to vector<8x512xf32>
    %361 = vector.broadcast %308 : f32 to vector<8x512xf32>
    %362 = arith.mulf %360, %361 : vector<8x512xf32>
    %363 = arith.addf %358, %362 : vector<8x512xf32>
    %c594_i32_55 = arith.constant 594 : i32
    %364 = tpu.dynamic_rotate %298 by %c594_i32_55 dim 1 : vector<8x640xf32>, i32 -> vector<8x640xf32>
    %365 = vector.extract_strided_slice %364 {offsets = [0, 0], sizes = [8, 512], strides = [1, 1]} : vector<8x640xf32> to vector<8x512xf32>
    %366 = vector.broadcast %309 : f32 to vector<8x512xf32>
    %367 = arith.mulf %365, %366 : vector<8x512xf32>
    %368 = arith.addf %363, %367 : vector<8x512xf32>
    %c593_i32_56 = arith.constant 593 : i32
    %369 = tpu.dynamic_rotate %298 by %c593_i32_56 dim 1 : vector<8x640xf32>, i32 -> vector<8x640xf32>
    %370 = vector.extract_strided_slice %369 {offsets = [0, 0], sizes = [8, 512], strides = [1, 1]} : vector<8x640xf32> to vector<8x512xf32>
    %371 = vector.broadcast %310 : f32 to vector<8x512xf32>
    %372 = arith.mulf %370, %371 : vector<8x512xf32>
    %373 = arith.addf %368, %372 : vector<8x512xf32>
    %c574_i32_57 = arith.constant 574 : i32
    %374 = tpu.dynamic_rotate %298 by %c574_i32_57 dim 1 : vector<8x640xf32>, i32 -> vector<8x640xf32>
    %375 = vector.extract_strided_slice %374 {offsets = [0, 0], sizes = [8, 512], strides = [1, 1]} : vector<8x640xf32> to vector<8x512xf32>
    %376 = vector.broadcast %311 : f32 to vector<8x512xf32>
    %377 = arith.mulf %375, %376 : vector<8x512xf32>
    %378 = arith.addf %373, %377 : vector<8x512xf32>
    %c573_i32_58 = arith.constant 573 : i32
    %379 = tpu.dynamic_rotate %298 by %c573_i32_58 dim 1 : vector<8x640xf32>, i32 -> vector<8x640xf32>
    %380 = vector.extract_strided_slice %379 {offsets = [0, 0], sizes = [8, 512], strides = [1, 1]} : vector<8x640xf32> to vector<8x512xf32>
    %381 = vector.broadcast %312 : f32 to vector<8x512xf32>
    %382 = arith.mulf %380, %381 : vector<8x512xf32>
    %383 = arith.addf %378, %382 : vector<8x512xf32>
    %c572_i32_59 = arith.constant 572 : i32
    %384 = tpu.dynamic_rotate %298 by %c572_i32_59 dim 1 : vector<8x640xf32>, i32 -> vector<8x640xf32>
    %385 = vector.extract_strided_slice %384 {offsets = [0, 0], sizes = [8, 512], strides = [1, 1]} : vector<8x640xf32> to vector<8x512xf32>
    %386 = vector.broadcast %313 : f32 to vector<8x512xf32>
    %387 = arith.mulf %385, %386 : vector<8x512xf32>
    %388 = arith.addf %383, %387 : vector<8x512xf32>
    %c571_i32_60 = arith.constant 571 : i32
    %389 = tpu.dynamic_rotate %298 by %c571_i32_60 dim 1 : vector<8x640xf32>, i32 -> vector<8x640xf32>
    %390 = vector.extract_strided_slice %389 {offsets = [0, 0], sizes = [8, 512], strides = [1, 1]} : vector<8x640xf32> to vector<8x512xf32>
    %391 = vector.broadcast %314 : f32 to vector<8x512xf32>
    %392 = arith.mulf %390, %391 : vector<8x512xf32>
    %393 = arith.addf %388, %392 : vector<8x512xf32>
    %cst_61 = arith.constant 0.000000e+00 : f32
    %394 = vector.broadcast %cst_61 : f32 to vector<8x512xf32>
    %395 = arith.maximumf %393, %394 : vector<8x512xf32>
    %396 = vector.broadcast %2 : vector<1x512xf32> to vector<8x512xf32>
    %397 = arith.mulf %395, %396 : vector<8x512xf32>
    %398 = vector.broadcast %1 : f32 to vector<8x512xf32>
    %399 = arith.addf %397, %398 : vector<8x512xf32>
    %cst_62 = arith.constant 0.000000e+00 : f32
    %400 = vector.broadcast %cst_62 : f32 to vector<8x512xf32>
    %401 = arith.maximumf %399, %400 : vector<8x512xf32>
    %c0_63 = arith.constant 0 : index
    %c0_64 = arith.constant 0 : index
    %402 = vector.load %arg5[%c0_63, %c0_64] : memref<8x512xf32, #tpu.memory_space<vmem>>, vector<8x512xf32>
    tpu.vector_store %arg5[%c0_63, %c0_64], %401 {strides = array<i32>} : memref<8x512xf32, #tpu.memory_space<vmem>>, vector<8x512xf32>,
    return
  }
  func.func @transform_0(%arg0: i32) -> (i32, i32, i32) {
    %c0_i32 = arith.constant 0 : i32
    %c0_i32_0 = arith.constant 0 : i32
    %c0_i32_1 = arith.constant 0 : i32
    return %c0_i32, %arg0, %c0_i32_0 : i32, i32, i32
  }
  func.func @transform_1(%arg0: i32) -> i32 {
    %c0_i32 = arith.constant 0 : i32
    %c0_i32_0 = arith.constant 0 : i32
    return %c0_i32 : i32
  }
  func.func @transform_2(%arg0: i32) -> i32 {
    %c0_i32 = arith.constant 0 : i32
    %c0_i32_0 = arith.constant 0 : i32
    return %c0_i32 : i32
  }
  func.func @transform_3(%arg0: i32) -> (i32, i32) {
    %c0_i32 = arith.constant 0 : i32
    %c0_i32_0 = arith.constant 0 : i32
    %c0_i32_1 = arith.constant 0 : i32
    return %c0_i32, %c0_i32_0 : i32, i32
  }
  func.func @transform_4(%arg0: i32) -> (i32, i32) {
    %c0_i32 = arith.constant 0 : i32
    %c0_i32_0 = arith.constant 0 : i32
    return %arg0, %c0_i32 : i32, i32
  }
}

</mosaic_0001>

<bundles_post_ra>
// kernel: squeeze.3
= control target key start
LH: loop header
LB: loop body
LE: loop exit
PB: predicated region body
PF: predicated region fallthrough
CT: control target
= control target key end

     0   :  { %s143_s14 = smov 52   ;;  %vm22_vm0 = vcmask 31744   ;;  %s144_s15 = smov 56   ;;  %vm28_vm1 = vcmask 523744   ;;  %vm34_vm2 = vcmask 490944   ;;  %vm40_vm3 = vcmask 458144   ;;  %s182_s0 = inlined_call_operand.vmem [shape: f32[1,1,4,4,4], index: 0, kind: input, shape index: {}]   ;;  %s183_s1 = inlined_call_operand.vmem [shape: f32[64], index: 1, kind: output, shape index: {}]  }
   0x1   :  { %v124_v0 = vld [vmem:[%s182_s0 + $0xc] sm:$0xf]  ;;  %v125_v1 = vld [vmem:[%s182_s0 + $0x8] sm:$0xf]  ;;  %v126_v2 = vld [vmem:[%s182_s0 + $0x4] sm:$0xf] }
   0x2   :  { %9 = vst [vmem:[#allocation1 + $0x18] sm:$0xf] %v124_v0  ;;  %14 = vst [vmem:[#allocation1 + $0x10] sm:$0xf] %v125_v1  ;;  %v19_v3 = vld [vmem:[%s182_s0] sm:$0xf] }
   0x3   :  { %18 = vst [vmem:[#allocation1 + $0x8] sm:$0xf] %v126_v2  ;;  %20 = vst [vmem:[#allocation1] sm:$0xf] %v19_v3  ;;  %s142_s0 = smov 60   ;;  %s145_s16 = smov 48  }
   0x4   :  { %s146_s17 = smov 44   ;;  %s147_s18 = smov 40   ;;  %vm46_vm4 = vcmask 425344   ;;  %vm52_vm5 = vcmask 392544   ;;  %vm58_vm6 = vcmask 359744   ;;  %vm64_vm7 = vcmask 326944  }
   0x5   :  { %s148_s19 = smov 36   ;;  %s149_s20 = smov 32   ;;  %vm70_vm8 = vcmask 294144   ;;  %vm76_vm9 = vcmask 261344   ;;  %vm82_vm10 = vcmask 228544   ;;  %vm88_vm11 = vcmask 195744  }
   0x6   :  { %s150_s21 = smov 28   ;;  %s151_s22 = smov 24   ;;  %vm94_vm12 = vcmask 162944   ;;  %vm100_vm13 = vcmask 130144   ;;  %vm106_vm14 = vcmask 97344   ;;  %vm112_vm15 = vcmask 64544  }
   0x7   :  { %s152_s23 = smov 20   ;;  %s153_s24 = smov 16  }
   0x8   :  { %s154_s25 = smov 12   ;;  %s155_s26 = smov 8  }
   0x9   :  { %v25_v4 = vld [vmem:[#allocation1 + $0x1b] sm:$0x1]   ;;  %v37_v5 = vld [vmem:[#allocation1 + $0x19] sm:$0x1]   ;;  %v31_v6 = vld [vmem:[#allocation1 + $0x1a] sm:$0x1]  }
   0xa   :  { %26 = vrot.lane.b32.xlu0 %v25_v4, %s142_s0  ;;  %38 = vrot.lane.b32.xlu1 %v37_v5, %s143_s14  ;;  %v43_v7 = vld [vmem:[#allocation1 + $0x18] sm:$0x1]   ;;  %v21_v8 = vld [vmem:[#allocation1] sm:$0x1]   ;;  %v49_v9 = vld [vmem:[#allocation1 + $0x13] sm:$0x1]  }
   0xb   :  { %v55_v10 = vld [vmem:[#allocation1 + $0x12] sm:$0x1]   ;;  %23 = vst.msk [vmem:[#allocation0] sm:$0x1] %vm22_vm0, %v21_v8   ;;  %v61_v11 = vld [vmem:[#allocation1 + $0x11] sm:$0x1]  }
   0xc   :  { %v67_v12 = vld [vmem:[#allocation1 + $0x10] sm:$0x1]   ;;  %v73_v13 = vld [vmem:[#allocation1 + $0xb] sm:$0x1]   ;;  %v79_v14 = vld [vmem:[#allocation1 + $0xa] sm:$0x1]  }
   0xd   :  { %v85_v15 = vld [vmem:[#allocation1 + $0x9] sm:$0x1]   ;;  %v91_v16 = vld [vmem:[#allocation1 + $0x8] sm:$0x1]   ;;  %v97_v17 = vld [vmem:[#allocation1 + $0x3] sm:$0x1]  }
   0xe   :  { %32 = vrot.lane.b32.xlu0 %v31_v6, %s144_s15  ;;  %44 = vrot.lane.b32.xlu1 %v43_v7, %s145_s16  ;;  %v103_v18 = vld [vmem:[#allocation1 + $0x2] sm:$0x1]   ;;  %v109_v19 = vld [vmem:[#allocation1 + $0x1] sm:$0x1]   ;;  %s156_s27 = smov 4  }
  0x12   :  { %50 = vrot.lane.b32.xlu0 %v49_v9, %s146_s17  ;;  %56 = vrot.lane.b32.xlu1 %v55_v10, %s147_s18 }
  0x16   :  { %62 = vrot.lane.b32.xlu0 %v61_v11, %s148_s19  ;;  %68 = vrot.lane.b32.xlu1 %v67_v12, %s149_s20 }
  0x1a   :  { %74 = vrot.lane.b32.xlu0 %v73_v13, %s150_s21  ;;  %80 = vrot.lane.b32.xlu1 %v79_v14, %s151_s22 }
  0x1e   :  { %86 = vrot.lane.b32.xlu0 %v85_v15, %s152_s23  ;;  %92 = vrot.lane.b32.xlu1 %v91_v16, %s153_s24 }
  0x22   :  { %98 = vrot.lane.b32.xlu0 %v97_v17, %s154_s25  ;;  %104 = vrot.lane.b32.xlu1 %v103_v18, %s155_s26 }
  0x26   :  { %110 = vrot.lane.b32.xlu0 %v109_v19, %s156_s27 }
  0x7c   :  { %v27_v20 = vpop.permute.xlu0 %26   ;;  %v39_v21 = vpop.permute.xlu1 %38  }
  0x7d   :  { %29 = vst.msk [vmem:[#allocation0] sm:$0x1] %vm28_vm1, %v27_v20  }
  0x80   :  { %v33_v22 = vpop.permute.xlu0 %32   ;;  %v45_v23 = vpop.permute.xlu1 %44  }
  0x81   :  { %35 = vst.msk [vmem:[#allocation0] sm:$0x1] %vm34_vm2, %v33_v22  }
  0x82   :  { %41 = vst.msk [vmem:[#allocation0] sm:$0x1] %vm40_vm3, %v39_v21  }
  0x83   :  { %47 = vst.msk [vmem:[#allocation0] sm:$0x1] %vm46_vm4, %v45_v23  }
  0x84   :  { %v51_v24 = vpop.permute.xlu0 %50   ;;  %v57_v25 = vpop.permute.xlu1 %56  }
  0x85   :  { %53 = vst.msk [vmem:[#allocation0] sm:$0x1] %vm52_vm5, %v51_v24  }
  0x86   :  { %59 = vst.msk [vmem:[#allocation0] sm:$0x1] %vm58_vm6, %v57_v25  }
  0x88   :  { %v63_v26 = vpop.permute.xlu0 %62   ;;  %v69_v27 = vpop.permute.xlu1 %68  }
  0x89   :  { %65 = vst.msk [vmem:[#allocation0] sm:$0x1] %vm64_vm7, %v63_v26  }
  0x8a   :  { %71 = vst.msk [vmem:[#allocation0] sm:$0x1] %vm70_vm8, %v69_v27  }
  0x8c   :  { %v75_v28 = vpop.permute.xlu0 %74   ;;  %v81_v29 = vpop.permute.xlu1 %80  }
  0x8d   :  { %77 = vst.msk [vmem:[#allocation0] sm:$0x1] %vm76_vm9, %v75_v28  }
  0x8e   :  { %83 = vst.msk [vmem:[#allocation0] sm:$0x1] %vm82_vm10, %v81_v29  }
  0x90   :  { %v87_v30 = vpop.permute.xlu0 %86   ;;  %v93_v31 = vpop.permute.xlu1 %92  }
  0x91   :  { %89 = vst.msk [vmem:[#allocation0] sm:$0x1] %vm88_vm11, %v87_v30  }
  0x92   :  { %95 = vst.msk [vmem:[#allocation0] sm:$0x1] %vm94_vm12, %v93_v31  }
  0x94   :  { %v99_v32 = vpop.permute.xlu0 %98   ;;  %v105_v33 = vpop.permute.xlu1 %104  }
  0x95   :  { %101 = vst.msk [vmem:[#allocation0] sm:$0x1] %vm100_vm13, %v99_v32  }
  0x96   :  { %107 = vst.msk [vmem:[#allocation0] sm:$0x1] %vm106_vm14, %v105_v33  }
  0x98   :  { %v111_v34 = vpop.permute.xlu0 %110  }
  0x99   :  { %113 = vst.msk [vmem:[#allocation0] sm:$0x1] %vm112_vm15, %v111_v34  }
  0xa0   :  { %v118_v35 = vld [vmem:[#allocation0] sm:$0x1] }
  0xa1   :  { %121 = vst [vmem:[%s183_s1] sm:$0x1] %v118_v35 }

// kernel: model_forward.1
= control target key start
LH: loop header
LB: loop body
LE: loop exit
PB: predicated region body
PF: predicated region fallthrough
CT: control target
= control target key end

     0   :  { %9 = vsyncpa [#allocation4], 0  ;;  %s4520_s0 = inlined_call_operand.vmem [shape: f32[4,24,640], index: 0, kind: input, shape index: {}]   ;;  %s4521_s1 = inlined_call_operand.vmem [shape: f32[64], index: 1, kind: input, shape index: {}]   ;;  %s4522_s2 = inlined_call_operand.vmem [shape: f32[2], index: 2, kind: input, shape index: {}]   ;;  %s4523_s3 = inlined_call_operand.vmem [shape: f32[1,512], index: 3, kind: input, shape index: {}]   ;;  %s4524_s4 = inlined_call_operand.vmem [shape: f32[24,512], index: 4, kind: output, shape index: {}]  }
   0x1   :  { %10 = vsyncpa [#allocation6], 0  ;;  %s2207_s15 = smov 0   ;;  %s2209_s16 = smov 0  }
   0x2   :  { %s2211_s17 = smov 0  }
   0x3 LB: > { %s2223_s18 = sadd.s32 4294967295, %s2163_s17   ;;  %s2226_s19 = sadd.s32 1, %s2163_s17   ;;  %s2163_s17 = sphi %s2211_s17, %s4836_s17   ;;  %s2159_s16 = sphi %s2209_s16, %s4835_s16   ;;  %s2155_s15 = sphi %s2207_s15, %s4834_s15  }
   0x4   : > { %s20_s20 = ssub.s32 %s2163_s17, %s2226_s19  ;;  %s23_s21 = sadd.s32 1, %s2159_s16 }
   0x5   : > { %p21_p0 = scmp.eq.s32.totalorder %s20_s20, 0  ;;  %p30_p1 = scmp.ne.s32.totalorder %s2159_s16, %s2155_s15 }
   0x6   : > { %p31_p2 = scmp.eq.s32.totalorder %s2163_s17, 0  ;;  %p1935_p3 = scmp.ge.s32.totalorder %s2163_s17, 1 }
   0x7   : > { %s2236_s22 = scalar_select %p21_p0, %s2159_s16, %s23_s21  }
   0x8   : > { %p2238_p4 = por %p31_p2, %p30_p1  ;;  %p136_p5 = scmp.lt.s32.totalorder %s2163_s17, 4 }
   0x9   : > { %p4525_p6 = scmp.eq.s32.totalorder %s2223_s18, 0  ;;  %s149_s27 = sshll.u32 %s4521_s1, 4  ;;  %s150_s27 = int_to_ptr.vmem [resolvable:$true] %s149_s27 }
   0xa   : > { %s4597_s23 = scalar_select %p2238_p4, 1, 0 }
   0xb   : > { %p2244_p7 = pnand %p1935_p3, %p136_p5  ;;  %s160_s30 = sshll.u32 %s4522_s2, 4  ;;  %s161_s30 = int_to_ptr.vmem [resolvable:$true] %s160_s30 }
   0xc   : > { %s2103_s6 = scalar_lea.vmem %s150_s27, 16  ;;  %p2111_p0 = scmp.lt.s32.totalorder %s150_s27, %s150_s27 }
   0xd   : > { %s4598_s24 = scalar_select %p2244_p7, 1, 0 }
   0xe   : > { %p2038_p8 = pneg %p2244_p7  ;;  %p2104_p10 = scmp.ne.s32.totalorder %s150_s27, %s2103_s6 }
   0xf   : > { %p2112_p1 = scmp.lt.s32.totalorder %s2103_s6, %s2103_s6 }
  0x10   : > { %p2258_p9 = pnand %p4525_p6, %p2038_p8 }
  0x11   : > { %p2113_p2 = por %p2112_p1, %p2111_p0 }
  0x12   : > { %p2105_p11 = pneg %p2258_p9 }
  0x14   : > { %p2106_p12 = pnand %p2105_p11, %p2104_p10 }
  0x16   : > { %p2107_p13 = pneg %p2106_p12 }
  0x18   : > { %p2114_p3 = pnand %p2113_p2, %p2107_p13 }
  0x1a   : > { %2117 = shalt.err (!%p2114_p3)
}
  0x1b   : > { %s2165_s7 = smov [#allocation3]   ;;  %s2118_s8 = scalar_lea.vmem %s161_s30, 16 }
  0x1c   : > { %2041 = dma.vmem_to_smem (!%p2258_p9), %s150_s27, 16, %s2165_s7, [#allocation4]  }
  0x1d   : > { %p2119_p5 = scmp.ne.s32.totalorder %s161_s30, %s2118_s8  ;;  %p2126_p7 = scmp.lt.s32.totalorder %s161_s30, %s161_s30 }
  0x1e   : > { %p2127_p4 = scmp.lt.s32.totalorder %s2118_s8, %s2118_s8 }
  0x1f   : > { %p2121_p8 = pnand %p2119_p5, %p2105_p11 }
  0x20   : > { %p2128_p10 = por %p2127_p4, %p2126_p7 }
  0x21   : > { %p2122_p6 = pneg %p2121_p8 }
  0x23   : > { %p2129_p12 = pnand %p2128_p10, %p2122_p6 }
  0x25   : > { %2132 = shalt.err (!%p2129_p12)
}
  0x26   : > { %s2166_s9 = smov [#allocation5]   ;;  %p1938_p13 = scmp.ge.s32.totalorder %s2163_s17, 3 }
  0x27   : > { %2044 = dma.vmem_to_smem (!%p2258_p9), %s161_s30, 16, %s2166_s9, [#allocation6]  }
  0x28   : > { %170 = sbr.rel (%p1938_p13) target bundleno = 60 (0x3c), region = 28  ;;  %p4600_p0 = scmp.ne.s32.totalorder (!%p1938_p13), %s4597_s23, 0 }
  0x2d   : > { %173 = sbr.rel (!%p4600_p0) target bundleno = 60 (0x3c), region = 32  ;;  %s175_s10 = sand.u32 (%p4600_p0), 1, %s2159_s16  }
  0x2e   : > { %s2028_s11 = smul.u32 (%p4600_p0), 40, %s2163_s17 }
  0x2f   : > { %s2027_s12 = smul.u32 (%p4600_p0), 160, %s175_s10 }
  0x30   : > { %s2276_s20 = scalar_lea.vmem (%p4600_p0), %s4520_s0, %s2028_s11 }
  0x31   : > { %v193_v0 = vld [vmem:[%s2276_s20] sm:$0xff] (%p4600_p0)  ;;  %v195_v1 = vld [vmem:[%s2276_s20 + $0x8] sm:$0xff] (%p4600_p0)  ;;  %v197_v2 = vld [vmem:[%s2276_s20 + $0x10] sm:$0xff] (%p4600_p0)  ;;  %s2281_s21 = scalar_lea.vmem (%p4600_p0), [#allocation2], %s2027_s12 }
  0x32   : > { %194 = vst [vmem:[%s2281_s21] sm:$0xff] %v193_v0  ;;  %196 = vst [vmem:[%s2281_s21 + $0x8] sm:$0xff] %v195_v1  ;;  %v199_v3 = vld [vmem:[%s2276_s20 + $0x18] sm:$0xff]  ;;  %v201_v4 = vld [vmem:[%s2276_s20 + $0x20] sm:$0xff] }
  0x33   : > { %198 = vst [vmem:[%s2281_s21 + $0x10] sm:$0xff] %v197_v2  ;;  %v203_v5 = vld [vmem:[%s2276_s20 + $0x78] sm:$0xff]  ;;  %200 = vst [vmem:[%s2281_s21 + $0x18] sm:$0xff] %v199_v3  ;;  %v205_v6 = vld [vmem:[%s2276_s20 + $0x80] sm:$0xff] }
  0x34   : > { %202 = vst [vmem:[%s2281_s21 + $0x20] sm:$0xff] %v201_v4  ;;  %204 = vst [vmem:[%s2281_s21 + $0x28] sm:$0xff] %v203_v5  ;;  %v207_v7 = vld [vmem:[%s2276_s20 + $0x88] sm:$0xff]  ;;  %v209_v8 = vld [vmem:[%s2276_s20 + $0x90] sm:$0xff] }
  0x35   : > { %206 = vst [vmem:[%s2281_s21 + $0x30] sm:$0xff] %v205_v6  ;;  %208 = vst [vmem:[%s2281_s21 + $0x38] sm:$0xff] %v207_v7  ;;  %v211_v9 = vld [vmem:[%s2276_s20 + $0x98] sm:$0xff]  ;;  %v213_v10 = vld [vmem:[%s2276_s20 + $0xf0] sm:$0xff] }
  0x36   : > { %210 = vst [vmem:[%s2281_s21 + $0x40] sm:$0xff] %v209_v8  ;;  %v215_v11 = vld [vmem:[%s2276_s20 + $0xf8] sm:$0xff]  ;;  %212 = vst [vmem:[%s2281_s21 + $0x48] sm:$0xff] %v211_v9  ;;  %v217_v12 = vld [vmem:[%s2276_s20 + $0x100] sm:$0xff] }
  0x37   : > { %214 = vst [vmem:[%s2281_s21 + $0x50] sm:$0xff] %v213_v10  ;;  %216 = vst [vmem:[%s2281_s21 + $0x58] sm:$0xff] %v215_v11  ;;  %v219_v13 = vld [vmem:[%s2276_s20 + $0x108] sm:$0xff]  ;;  %v221_v14 = vld [vmem:[%s2276_s20 + $0x110] sm:$0xff] }
  0x38   : > { %218 = vst [vmem:[%s2281_s21 + $0x60] sm:$0xff] %v217_v12  ;;  %220 = vst [vmem:[%s2281_s21 + $0x68] sm:$0xff] %v219_v13  ;;  %v223_v15 = vld [vmem:[%s2276_s20 + $0x168] sm:$0xff]  ;;  %v225_v16 = vld [vmem:[%s2276_s20 + $0x170] sm:$0xff] }
  0x39   : > { %222 = vst [vmem:[%s2281_s21 + $0x70] sm:$0xff] %v221_v14  ;;  %v227_v17 = vld [vmem:[%s2276_s20 + $0x178] sm:$0xff]  ;;  %224 = vst [vmem:[%s2281_s21 + $0x78] sm:$0xff] %v223_v15  ;;  %v229_v18 = vld [vmem:[%s2276_s20 + $0x180] sm:$0xff] }
  0x3a   : > { %226 = vst [vmem:[%s2281_s21 + $0x80] sm:$0xff] %v225_v16  ;;  %228 = vst [vmem:[%s2281_s21 + $0x88] sm:$0xff] %v227_v17  ;;  %v231_v19 = vld [vmem:[%s2276_s20 + $0x188] sm:$0xff] }
  0x3b   : > { %230 = vst [vmem:[%s2281_s21 + $0x90] sm:$0xff] %v229_v18  ;;  %232 = vst [vmem:[%s2281_s21 + $0x98] sm:$0xff] %v231_v19 }
  0x3c PF: > { %p4601_p4 = scmp.ne.s32.totalorder %s4598_s24, 0 }
  0x3e   : > { %241 = sbr.rel (%p4601_p4) target bundleno = 804 (0x324), region = 55 }
  0x43   : > { %s244_s17 = sand.u32 1, %s2155_s15   ;;  %p4602_p6 = scmp.eq.s32.totalorder %s2223_s18, 0 }
  0x44   : > { %s2029_s23 = smul.u32 160, %s244_s17 }
  0x46   : > { %s2323_s25 = scalar_lea.vmem [#allocation2], %s2029_s23 }
  0x47   : > { %2146 = dma.done.wait (%p4602_p6), [#allocation4], 16   ;;  %p4603_p7 = pmov %p4602_p6 }
  0x48   : > { %p4604_p9 = pmov %p4602_p6 }
  0x49   : > { %2148 = vsyncadd (%p4603_p7), [#allocation4], 4294967280 }
  0x4a   : > { %2150 = dma.done.wait (%p4604_p9), [#allocation6], 16   ;;  %p4605_p11 = pmov %p4602_p6 }
  0x4c   : > { %2152 = vsyncadd (%p4605_p11), [#allocation6], 4294967280 }
  0x4d   : > { %258 = sfence }
  0x4e   : > { %v2334_v20 = vld [vmem:[%s2323_s25 + $0x10] sm:$0xff]  ;;  %v2337_v21 = vld [vmem:[%s2323_s25] sm:$0xff]  ;;  %s2167_s15 = smov 127   ;;  %v2344_v22 = vld [vmem:[%s2323_s25 + $0x18] sm:$0xff]  ;;  %s2168_s24 = smov 126  }
  0x4f   : > { %322 = vrot.lane.b32.xlu1 %v2334_v20, %s2167_s15  ;;  %318 = vrot.lane.b32.xlu0 %v2337_v21, %s2167_s15  ;;  %v2347_v23 = vld [vmem:[%s2323_s25 + $0x8] sm:$0xff]  ;;  %v2354_v24 = vld [vmem:[%s2323_s25 + $0x20] sm:$0xff]  ;;  %s2169_s26 = smov 125   ;;  %s2170_s27 = smov 106  }
  0x50   : > { %s2171_s28 = smov 105   ;;  %s2172_s29 = smov 104   ;;  %v2529_v41 = vld [vmem:[%s2323_s25 + $0x28] sm:$0xff]  ;;  %v2540_v44 = vld [vmem:[%s2323_s25 + $0x38] sm:$0xff]  ;;  %v2543_v45 = vld [vmem:[%s2323_s25 + $0x30] sm:$0xff] }
  0x51   : > { %s2173_s30 = smov 103   ;;  %s4581_s5 = smov 84   ;;  %v2554_v48 = vld [vmem:[%s2323_s25 + $0x48] sm:$0xff]  ;;  %v2557_v49 = vld [vmem:[%s2323_s25 + $0x40] sm:$0xff] }
  0x52   : > { %s2175_s6 = smov 83   ;;  %s2176_s7 = smov 82  }
  0x53   : > { %324 = vrot.lane.b32.xlu1 %v2344_v22, %s2167_s15  ;;  %320 = vrot.lane.b32.xlu0 %v2347_v23, %s2167_s15  ;;  %s2177_s8 = smov 81   ;;  %s2178_s9 = smov 62  }
  0x54   : > { %s2179_s10 = smov 61   ;;  %s2180_s11 = smov 60  }
  0x55   : > { %s2181_s12 = smov 59   ;;  %s293_s13 = sld [smem:[#allocation3]] }
  0x56   : > { %s283_s14 = sld [smem:[#allocation5]]  ;;  %p278_p1 = scmp.lt.s32.totalorder %s2223_s18, 2 }
  0x57   : > { %344 = vrot.lane.b32.xlu1 %v2337_v21, %s2168_s24  ;;  %326 = vrot.lane.b32.xlu0 %v2354_v24, %s2167_s15  ;;  %s1946_s20 = sld [smem:[#allocation3 + $0x1]] }
  0x58   : > { %s3029_s21 = sld [smem:[#allocation3 + $0x2]]  ;;  %s4838_s18 = smov (!%p278_p1, %s2223_s18), 2 }
  0x59   : > { %s3035_s17 = sld [smem:[#allocation3 + $0x3]] }
  0x5a   : > { %s3038_s23 = sld [smem:[#allocation3 + $0x4]] }
  0x5b   : > { %348 = vrot.lane.b32.xlu1 %v2334_v20, %s2168_s24  ;;  %346 = vrot.lane.b32.xlu0 %v2347_v23, %s2168_s24 }
  0x5f   : > { %352 = vrot.lane.b32.xlu1 %v2354_v24, %s2168_s24  ;;  %350 = vrot.lane.b32.xlu0 %v2344_v22, %s2168_s24 }
  0x63   : > { %370 = vrot.lane.b32.xlu1 %v2347_v23, %s2169_s26  ;;  %368 = vrot.lane.b32.xlu0 %v2337_v21, %s2169_s26 }
  0x67   : > { %374 = vrot.lane.b32.xlu1 %v2344_v22, %s2169_s26  ;;  %372 = vrot.lane.b32.xlu0 %v2334_v20, %s2169_s26 }
  0x6b   : > { %392 = vrot.lane.b32.xlu1 %v2337_v21, %s2170_s27  ;;  %376 = vrot.lane.b32.xlu0 %v2354_v24, %s2169_s26 }
  0x6f   : > { %396 = vrot.lane.b32.xlu1 %v2334_v20, %s2170_s27  ;;  %394 = vrot.lane.b32.xlu0 %v2347_v23, %s2170_s27 }
  0x73   : > { %400 = vrot.lane.b32.xlu1 %v2354_v24, %s2170_s27  ;;  %398 = vrot.lane.b32.xlu0 %v2344_v22, %s2170_s27 }
  0x77   : > { %418 = vrot.lane.b32.xlu1 %v2347_v23, %s2171_s28  ;;  %416 = vrot.lane.b32.xlu0 %v2337_v21, %s2171_s28 }
  0x7b   : > { %422 = vrot.lane.b32.xlu1 %v2344_v22, %s2171_s28  ;;  %420 = vrot.lane.b32.xlu0 %v2334_v20, %s2171_s28 }
  0x7f   : > { %440 = vrot.lane.b32.xlu1 %v2337_v21, %s2172_s29  ;;  %424 = vrot.lane.b32.xlu0 %v2354_v24, %s2171_s28 }
  0x83   : > { %444 = vrot.lane.b32.xlu1 %v2334_v20, %s2172_s29  ;;  %442 = vrot.lane.b32.xlu0 %v2347_v23, %s2172_s29 }
  0x87   : > { %448 = vrot.lane.b32.xlu1 %v2354_v24, %s2172_s29  ;;  %446 = vrot.lane.b32.xlu0 %v2344_v22, %s2172_s29 }
  0x8b   : > { %466 = vrot.lane.b32.xlu1 %v2347_v23, %s2173_s30  ;;  %464 = vrot.lane.b32.xlu0 %v2337_v21, %s2173_s30 }
  0x8f   : > { %470 = vrot.lane.b32.xlu1 %v2344_v22, %s2173_s30  ;;  %468 = vrot.lane.b32.xlu0 %v2334_v20, %s2173_s30 }
  0x93   : > { %488 = vrot.lane.b32.xlu1 %v2337_v21, %s4581_s5  ;;  %472 = vrot.lane.b32.xlu0 %v2354_v24, %s2173_s30 }
  0x97   : > { %492 = vrot.lane.b32.xlu1 %v2334_v20, %s4581_s5  ;;  %490 = vrot.lane.b32.xlu0 %v2347_v23, %s4581_s5 }
  0x9b   : > { %496 = vrot.lane.b32.xlu1 %v2354_v24, %s4581_s5  ;;  %494 = vrot.lane.b32.xlu0 %v2344_v22, %s4581_s5 }
  0x9f   : > { %514 = vrot.lane.b32.xlu1 %v2347_v23, %s2175_s6  ;;  %512 = vrot.lane.b32.xlu0 %v2337_v21, %s2175_s6 }
  0xa3   : > { %518 = vrot.lane.b32.xlu1 %v2344_v22, %s2175_s6  ;;  %516 = vrot.lane.b32.xlu0 %v2334_v20, %s2175_s6 }
  0xa7   : > { %536 = vrot.lane.b32.xlu1 %v2337_v21, %s2176_s7  ;;  %520 = vrot.lane.b32.xlu0 %v2354_v24, %s2175_s6 }
  0xab   : > { %540 = vrot.lane.b32.xlu1 %v2334_v20, %s2176_s7  ;;  %538 = vrot.lane.b32.xlu0 %v2347_v23, %s2176_s7 }
  0xaf   : > { %544 = vrot.lane.b32.xlu1 %v2354_v24, %s2176_s7  ;;  %542 = vrot.lane.b32.xlu0 %v2344_v22, %s2176_s7 }
  0xb3   : > { %562 = vrot.lane.b32.xlu1 %v2347_v23, %s2177_s8  ;;  %560 = vrot.lane.b32.xlu0 %v2337_v21, %s2177_s8 }
  0xb7   : > { %566 = vrot.lane.b32.xlu1 %v2344_v22, %s2177_s8  ;;  %564 = vrot.lane.b32.xlu0 %v2334_v20, %s2177_s8 }
  0xbb   : > { %584 = vrot.lane.b32.xlu1 %v2337_v21, %s2178_s9  ;;  %568 = vrot.lane.b32.xlu0 %v2354_v24, %s2177_s8 }
  0xbf   : > { %588 = vrot.lane.b32.xlu1 %v2334_v20, %s2178_s9  ;;  %586 = vrot.lane.b32.xlu0 %v2347_v23, %s2178_s9 }
  0xc1   : > { %v2464_v25 = vpop.permute.xlu1 %322  ;;  %v2466_v26 = vpop.permute.xlu0 %318 }
  0xc3   : > { %592 = vrot.lane.b32.xlu1 %v2354_v24, %s2178_s9  ;;  %590 = vrot.lane.b32.xlu0 %v2344_v22, %s2178_s9 }
  0xc5   : > { %v2472_v27 = vpop.permute.xlu1 %324  ;;  %v2474_v28 = vpop.permute.xlu0 %320 }
  0xc7   : > { %610 = vrot.lane.b32.xlu1 %v2347_v23, %s2179_s10  ;;  %608 = vrot.lane.b32.xlu0 %v2337_v21, %s2179_s10 }
  0xc9   : > { %v2480_v29 = vpop.permute.xlu1 %344  ;;  %v2482_v30 = vpop.permute.xlu0 %326 }
  0xcb   : > { %614 = vrot.lane.b32.xlu1 %v2344_v22, %s2179_s10  ;;  %612 = vrot.lane.b32.xlu0 %v2334_v20, %s2179_s10 }
  0xcd   : > { %v2488_v31 = vpop.permute.xlu1 %348  ;;  %v2490_v32 = vpop.permute.xlu0 %346 }
  0xcf   : > { %632 = vrot.lane.b32.xlu1 %v2337_v21, %s2180_s11  ;;  %616 = vrot.lane.b32.xlu0 %v2354_v24, %s2179_s10 }
  0xd1   : > { %v2496_v33 = vpop.permute.xlu1 %352  ;;  %v2498_v34 = vpop.permute.xlu0 %350 }
  0xd3   : > { %636 = vrot.lane.b32.xlu1 %v2334_v20, %s2180_s11  ;;  %634 = vrot.lane.b32.xlu0 %v2347_v23, %s2180_s11 }
  0xd5   : > { %v2504_v35 = vpop.permute.xlu1 %370  ;;  %v2506_v36 = vpop.permute.xlu0 %368 }
  0xd7   : > { %640 = vrot.lane.b32.xlu1 %v2354_v24, %s2180_s11  ;;  %638 = vrot.lane.b32.xlu0 %v2344_v22, %s2180_s11 }
  0xd9   : > { %v2512_v37 = vpop.permute.xlu1 %374  ;;  %v2514_v38 = vpop.permute.xlu0 %372 }
  0xdb   : > { %658 = vrot.lane.b32.xlu1 %v2347_v23, %s2181_s12  ;;  %656 = vrot.lane.b32.xlu0 %v2337_v21, %s2181_s12 }
  0xdd   : > { %v2520_v39 = vpop.permute.xlu1 %392  ;;  %v2522_v40 = vpop.permute.xlu0 %376 }
  0xdf   : > { %662 = vrot.lane.b32.xlu1 %v2344_v22, %s2181_s12  ;;  %660 = vrot.lane.b32.xlu0 %v2334_v20, %s2181_s12 }
  0xe1   : > { %v2531_v42 = vpop.permute.xlu1 %396  ;;  %v2533_v43 = vpop.permute.xlu0 %394 }
  0xe3   : > { %711 = vrot.lane.b32.xlu1 %v2529_v41, %s2167_s15  ;;  %664 = vrot.lane.b32.xlu0 %v2354_v24, %s2181_s12 }
  0xe5   : > { %v2545_v46 = vpop.permute.xlu1 %400  ;;  %v2547_v47 = vpop.permute.xlu0 %398 }
  0xe7   : > { %715 = vrot.lane.b32.xlu1 %v2540_v44, %s2167_s15  ;;  %713 = vrot.lane.b32.xlu0 %v2543_v45, %s2167_s15 }
  0xe9   : > { %v2559_v50 = vpop.permute.xlu1 %418  ;;  %v2561_v51 = vpop.permute.xlu0 %416 }
  0xeb   : > { %719 = vrot.lane.b32.xlu1 %v2554_v48, %s2167_s15  ;;  %717 = vrot.lane.b32.xlu0 %v2557_v49, %s2167_s15 }
  0xed   : > { %v2567_v52 = vpop.permute.xlu1 %422  ;;  %v2569_v53 = vpop.permute.xlu0 %420 }
  0xef   : > { %736 = vrot.lane.b32.xlu1 %v2543_v45, %s2168_s24  ;;  %734 = vrot.lane.b32.xlu0 %v2529_v41, %s2168_s24 }
  0xf1   : > { %v2575_v54 = vpop.permute.xlu1 %440  ;;  %v2577_v55 = vpop.permute.xlu0 %424 }
  0xf3   : > { %740 = vrot.lane.b32.xlu1 %v2557_v49, %s2168_s24  ;;  %738 = vrot.lane.b32.xlu0 %v2540_v44, %s2168_s24 }
  0xf5   : > { %v2583_v56 = vpop.permute.xlu1 %444  ;;  %v2585_v57 = vpop.permute.xlu0 %442 }
  0xf7   : > { %757 = vrot.lane.b32.xlu1 %v2529_v41, %s2169_s26  ;;  %742 = vrot.lane.b32.xlu0 %v2554_v48, %s2168_s24 }
  0xf9   : > { %v2591_v58 = vpop.permute.xlu1 %448  ;;  %v2593_v59 = vpop.permute.xlu0 %446 }
  0xfb   : > { %761 = vrot.lane.b32.xlu1 %v2540_v44, %s2169_s26  ;;  %759 = vrot.lane.b32.xlu0 %v2543_v45, %s2169_s26 }
  0xfd   : > { %v2599_v60 = vpop.permute.xlu1 %466  ;;  %v2601_v61 = vpop.permute.xlu0 %464 }
  0xff   : > { %765 = vrot.lane.b32.xlu1 %v2554_v48, %s2169_s26  ;;  %763 = vrot.lane.b32.xlu0 %v2557_v49, %s2169_s26 }
 0x101   : > { %v2607_v62 = vpop.permute.xlu1 %470  ;;  %v2609_v63 = vpop.permute.xlu0 %468 }
 0x103   : > { %782 = vrot.lane.b32.xlu1 %v2543_v45, %s2170_s27  ;;  %780 = vrot.lane.b32.xlu0 %v2529_v41, %s2170_s27 }
 0x105   : > { %v2615_v0 = vpop.permute.xlu1 %488  ;;  %v2617_v1 = vpop.permute.xlu0 %472 }
 0x107   : > { %786 = vrot.lane.b32.xlu1 %v2557_v49, %s2170_s27  ;;  %784 = vrot.lane.b32.xlu0 %v2540_v44, %s2170_s27 }
 0x109   : > { %v2623_v2 = vpop.permute.xlu1 %492  ;;  %v2625_v3 = vpop.permute.xlu0 %490 }
 0x10b   : > { %803 = vrot.lane.b32.xlu1 %v2529_v41, %s2171_s28  ;;  %788 = vrot.lane.b32.xlu0 %v2554_v48, %s2170_s27 }
 0x10d   : > { %v2631_v4 = vpop.permute.xlu1 %496  ;;  %v2633_v5 = vpop.permute.xlu0 %494 }
 0x10f   : > { %807 = vrot.lane.b32.xlu1 %v2540_v44, %s2171_s28  ;;  %805 = vrot.lane.b32.xlu0 %v2543_v45, %s2171_s28 }
 0x111   : > { %v2639_v6 = vpop.permute.xlu1 %514  ;;  %v2641_v7 = vpop.permute.xlu0 %512 }
 0x113   : > { %811 = vrot.lane.b32.xlu1 %v2554_v48, %s2171_s28  ;;  %809 = vrot.lane.b32.xlu0 %v2557_v49, %s2171_s28 }
 0x115   : > { %v2647_v8 = vpop.permute.xlu1 %518  ;;  %v2649_v9 = vpop.permute.xlu0 %516 }
 0x116   : > { %4606 = vst [vmem:[#allocation9_spill] sm:$0xff] %v2647_v8 }
 0x117   : > { %828 = vrot.lane.b32.xlu1 %v2543_v45, %s2172_s29  ;;  %826 = vrot.lane.b32.xlu0 %v2529_v41, %s2172_s29 }
 0x119   : > { %v2655_v10 = vpop.permute.xlu1 %536  ;;  %v2657_v11 = vpop.permute.xlu0 %520 }
 0x11a   : > { %4607 = vst [vmem:[#allocation10_spill] sm:$0xff] %v2655_v10  ;;  %4608 = vst [vmem:[#allocation11_spill] sm:$0xff] %v2657_v11 }
 0x11b   : > { %832 = vrot.lane.b32.xlu1 %v2557_v49, %s2172_s29  ;;  %830 = vrot.lane.b32.xlu0 %v2540_v44, %s2172_s29 }
 0x11d   : > { %v2663_v12 = vpop.permute.xlu1 %540  ;;  %v2665_v13 = vpop.permute.xlu0 %538 }
 0x11e   : > { %4609 = vst [vmem:[#allocation12_spill] sm:$0xff] %v2663_v12  ;;  %4610 = vst [vmem:[#allocation13_spill] sm:$0xff] %v2665_v13 }
 0x11f   : > { %849 = vrot.lane.b32.xlu1 %v2529_v41, %s2173_s30  ;;  %834 = vrot.lane.b32.xlu0 %v2554_v48, %s2172_s29 }
 0x121   : > { %v2671_v14 = vpop.permute.xlu1 %544  ;;  %v2673_v15 = vpop.permute.xlu0 %542 }
 0x122   : > { %4611 = vst [vmem:[#allocation14_spill] sm:$0xff] %v2671_v14  ;;  %4612 = vst [vmem:[#allocation15_spill] sm:$0xff] %v2673_v15  ;;  %v309_v14 = vstv %s293_s13  ;;  %s3046_s13 = sld [smem:[#allocation3 + $0x5]] }
 0x123   : > { %853 = vrot.lane.b32.xlu1 %v2540_v44, %s2173_s30  ;;  %851 = vrot.lane.b32.xlu0 %v2543_v45, %s2173_s30  ;;  %v311_v12 = vmul.f32 %v309_v14, %v2347_v23  ;;  %v313_v10 = vmul.f32 %v309_v14, %v2344_v22 }
 0x125   : > { %v2679_v16 = vpop.permute.xlu1 %562  ;;  %v2681_v17 = vpop.permute.xlu0 %560 }
 0x126   : > { %4613 = vst [vmem:[#allocation16_spill] sm:$0xff] %v2679_v16  ;;  %4614 = vst [vmem:[#allocation17_spill] sm:$0xff] %v2681_v17 }
 0x127   : > { %857 = vrot.lane.b32.xlu1 %v2554_v48, %s2173_s30  ;;  %855 = vrot.lane.b32.xlu0 %v2557_v49, %s2173_s30 }
 0x129   : > { %v2687_v18 = vpop.permute.xlu1 %566  ;;  %v2689_v19 = vpop.permute.xlu0 %564 }
 0x12a   : > { %4615 = vst [vmem:[#allocation18_spill] sm:$0xff] %v2687_v18  ;;  %4616 = vst [vmem:[#allocation19_spill] sm:$0xff] %v2689_v19 }
 0x12b   : > { %874 = vrot.lane.b32.xlu1 %v2543_v45, %s4581_s5  ;;  %872 = vrot.lane.b32.xlu0 %v2529_v41, %s4581_s5 }
 0x12d   : > { %v2695_v24 = vpop.permute.xlu1 %584  ;;  %v2697_v16 = vpop.permute.xlu0 %568 }
 0x12e   : > { %4617 = vst [vmem:[#allocation20_spill] sm:$0xff] %v2695_v24  ;;  %4618 = vst [vmem:[#allocation21_spill] sm:$0xff] %v2697_v16 }
 0x12f   : > { %878 = vrot.lane.b32.xlu1 %v2557_v49, %s4581_s5  ;;  %876 = vrot.lane.b32.xlu0 %v2540_v44, %s4581_s5 }
 0x131   : > { %v2703_v17 = vpop.permute.xlu1 %588  ;;  %v2705_v18 = vpop.permute.xlu0 %586 }
 0x132   : > { %4619 = vst [vmem:[#allocation22_spill] sm:$0xff] %v2703_v17  ;;  %4620 = vst [vmem:[#allocation23_spill] sm:$0xff] %v2705_v18 }
 0x133   : > { %895 = vrot.lane.b32.xlu1 %v2529_v41, %s2175_s6  ;;  %880 = vrot.lane.b32.xlu0 %v2554_v48, %s4581_s5 }
 0x135   : > { %v2711_v19 = vpop.permute.xlu1 %592  ;;  %v2713_v24 = vpop.permute.xlu0 %590 }
 0x136   : > { %4621 = vst [vmem:[#allocation24_spill] sm:$0xff] %v2711_v19  ;;  %4622 = vst [vmem:[#allocation25_spill] sm:$0xff] %v2713_v24 }
 0x137   : > { %899 = vrot.lane.b32.xlu1 %v2540_v44, %s2175_s6  ;;  %897 = vrot.lane.b32.xlu0 %v2543_v45, %s2175_s6 }
 0x139   : > { %v2719_v16 = vpop.permute.xlu1 %610  ;;  %v2721_v17 = vpop.permute.xlu0 %608 }
 0x13a   : > { %4623 = vst [vmem:[#allocation26_spill] sm:$0xff] %v2719_v16  ;;  %4624 = vst [vmem:[#allocation27_spill] sm:$0xff] %v2721_v17 }
 0x13b   : > { %903 = vrot.lane.b32.xlu1 %v2554_v48, %s2175_s6  ;;  %901 = vrot.lane.b32.xlu0 %v2557_v49, %s2175_s6 }
 0x13d   : > { %v2727_v18 = vpop.permute.xlu1 %614  ;;  %v2729_v19 = vpop.permute.xlu0 %612 }
 0x13e   : > { %4625 = vst [vmem:[#allocation28_spill] sm:$0xff] %v2727_v18  ;;  %4626 = vst [vmem:[#allocation29_spill] sm:$0xff] %v2729_v19 }
 0x13f   : > { %920 = vrot.lane.b32.xlu1 %v2543_v45, %s2176_s7  ;;  %918 = vrot.lane.b32.xlu0 %v2529_v41, %s2176_s7 }
 0x141   : > { %v2735_v24 = vpop.permute.xlu1 %632  ;;  %v2737_v16 = vpop.permute.xlu0 %616 }
 0x142   : > { %4627 = vst [vmem:[#allocation30_spill] sm:$0xff] %v2735_v24  ;;  %4628 = vst [vmem:[#allocation31_spill] sm:$0xff] %v2737_v16 }
 0x143   : > { %924 = vrot.lane.b32.xlu1 %v2557_v49, %s2176_s7  ;;  %922 = vrot.lane.b32.xlu0 %v2540_v44, %s2176_s7 }
 0x145   : > { %v2743_v17 = vpop.permute.xlu1 %636  ;;  %v2745_v18 = vpop.permute.xlu0 %634 }
 0x146   : > { %4629 = vst [vmem:[#allocation32_spill] sm:$0xff] %v2743_v17  ;;  %4630 = vst [vmem:[#allocation33_spill] sm:$0xff] %v2745_v18 }
 0x147   : > { %941 = vrot.lane.b32.xlu1 %v2529_v41, %s2177_s8  ;;  %926 = vrot.lane.b32.xlu0 %v2554_v48, %s2176_s7 }
 0x149   : > { %v2751_v19 = vpop.permute.xlu1 %640  ;;  %v2753_v24 = vpop.permute.xlu0 %638 }
 0x14a   : > { %4631 = vst [vmem:[#allocation34_spill] sm:$0xff] %v2751_v19  ;;  %4632 = vst [vmem:[#allocation35_spill] sm:$0xff] %v2753_v24 }
 0x14b   : > { %945 = vrot.lane.b32.xlu1 %v2540_v44, %s2177_s8  ;;  %943 = vrot.lane.b32.xlu0 %v2543_v45, %s2177_s8 }
 0x14d   : > { %v2759_v16 = vpop.permute.xlu1 %658  ;;  %v2761_v17 = vpop.permute.xlu0 %656 }
 0x14e   : > { %4633 = vst [vmem:[#allocation36_spill] sm:$0xff] %v2759_v16  ;;  %4634 = vst [vmem:[#allocation37_spill] sm:$0xff] %v2761_v17 }
 0x14f   : > { %949 = vrot.lane.b32.xlu1 %v2554_v48, %s2177_s8  ;;  %947 = vrot.lane.b32.xlu0 %v2557_v49, %s2177_s8 }
 0x151   : > { %v2767_v18 = vpop.permute.xlu1 %662  ;;  %v2769_v19 = vpop.permute.xlu0 %660 }
 0x152   : > { %4635 = vst [vmem:[#allocation38_spill] sm:$0xff] %v2767_v18  ;;  %4636 = vst [vmem:[#allocation39_spill] sm:$0xff] %v2769_v19 }
 0x153   : > { %966 = vrot.lane.b32.xlu1 %v2543_v45, %s2178_s9  ;;  %964 = vrot.lane.b32.xlu0 %v2529_v41, %s2178_s9 }
 0x155   : > { %v2775_v24 = vpop.permute.xlu1 %711  ;;  %v2777_v16 = vpop.permute.xlu0 %664 }
 0x156   : > { %4637 = vst [vmem:[#allocation40_spill] sm:$0xff] %v2775_v24  ;;  %4638 = vst [vmem:[#allocation41_spill] sm:$0xff] %v2777_v16 }
 0x157   : > { %970 = vrot.lane.b32.xlu1 %v2557_v49, %s2178_s9  ;;  %968 = vrot.lane.b32.xlu0 %v2540_v44, %s2178_s9 }
 0x159   : > { %v2783_v17 = vpop.permute.xlu1 %715  ;;  %v2785_v18 = vpop.permute.xlu0 %713 }
 0x15a   : > { %4639 = vst [vmem:[#allocation42_spill] sm:$0xff] %v2783_v17  ;;  %4640 = vst [vmem:[#allocation43_spill] sm:$0xff] %v2785_v18 }
 0x15b   : > { %987 = vrot.lane.b32.xlu1 %v2529_v41, %s2179_s10  ;;  %972 = vrot.lane.b32.xlu0 %v2554_v48, %s2178_s9 }
 0x15d   : > { %v2791_v19 = vpop.permute.xlu1 %719  ;;  %v2793_v24 = vpop.permute.xlu0 %717 }
 0x15e   : > { %4641 = vst [vmem:[#allocation44_spill] sm:$0xff] %v2791_v19  ;;  %4642 = vst [vmem:[#allocation45_spill] sm:$0xff] %v2793_v24 }
 0x15f   : > { %991 = vrot.lane.b32.xlu1 %v2540_v44, %s2179_s10  ;;  %989 = vrot.lane.b32.xlu0 %v2543_v45, %s2179_s10 }
 0x161   : > { %v2799_v16 = vpop.permute.xlu1 %736  ;;  %v2801_v17 = vpop.permute.xlu0 %734 }
 0x162   : > { %4643 = vst [vmem:[#allocation46_spill] sm:$0xff] %v2799_v16  ;;  %4644 = vst [vmem:[#allocation47_spill] sm:$0xff] %v2801_v17 }
 0x163   : > { %995 = vrot.lane.b32.xlu1 %v2554_v48, %s2179_s10  ;;  %993 = vrot.lane.b32.xlu0 %v2557_v49, %s2179_s10 }
 0x165   : > { %v2807_v18 = vpop.permute.xlu1 %740  ;;  %v2809_v19 = vpop.permute.xlu0 %738 }
 0x166   : > { %4645 = vst [vmem:[#allocation48_spill] sm:$0xff] %v2807_v18  ;;  %4646 = vst [vmem:[#allocation49_spill] sm:$0xff] %v2809_v19 }
 0x167   : > { %1012 = vrot.lane.b32.xlu1 %v2543_v45, %s2180_s11  ;;  %1010 = vrot.lane.b32.xlu0 %v2529_v41, %s2180_s11 }
 0x169   : > { %v2815_v24 = vpop.permute.xlu1 %757  ;;  %v2817_v17 = vpop.permute.xlu0 %742 }
 0x16a   : > { %4647 = vst [vmem:[#allocation50_spill] sm:$0xff] %v2815_v24  ;;  %4648 = vst [vmem:[#allocation51_spill] sm:$0xff] %v2817_v17 }
 0x16b   : > { %1016 = vrot.lane.b32.xlu1 %v2557_v49, %s2180_s11  ;;  %1014 = vrot.lane.b32.xlu0 %v2540_v44, %s2180_s11 }
 0x16d   : > { %v2823_v18 = vpop.permute.xlu1 %761  ;;  %v2825_v19 = vpop.permute.xlu0 %759 }
 0x16e   : > { %4649 = vst [vmem:[#allocation52_spill] sm:$0xff] %v2823_v18  ;;  %4650 = vst [vmem:[#allocation53_spill] sm:$0xff] %v2825_v19 }
 0x16f   : > { %1033 = vrot.lane.b32.xlu1 %v2529_v41, %s2181_s12  ;;  %1018 = vrot.lane.b32.xlu0 %v2554_v48, %s2180_s11  ;;  %v2848_v41 = vld [vmem:[%s2323_s25 + $0x58] sm:$0xff] }
 0x171   : > { %v2831_v24 = vpop.permute.xlu1 %765  ;;  %v2833_v17 = vpop.permute.xlu0 %763 }
 0x172   : > { %4651 = vst [vmem:[#allocation54_spill] sm:$0xff] %v2831_v24  ;;  %4652 = vst [vmem:[#allocation55_spill] sm:$0xff] %v2833_v17  ;;  %v2851_v24 = vld [vmem:[%s2323_s25 + $0x50] sm:$0xff] }
 0x173   : > { %1037 = vrot.lane.b32.xlu1 %v2540_v44, %s2181_s12  ;;  %1035 = vrot.lane.b32.xlu0 %v2543_v45, %s2181_s12  ;;  %v2862_v45 = vld [vmem:[%s2323_s25 + $0x68] sm:$0xff] }
 0x175   : > { %v2839_v18 = vpop.permute.xlu1 %782  ;;  %v2841_v19 = vpop.permute.xlu0 %780 }
 0x176   : > { %4653 = vst [vmem:[#allocation56_spill] sm:$0xff] %v2839_v18  ;;  %4654 = vst [vmem:[#allocation57_spill] sm:$0xff] %v2841_v19 }
 0x177   : > { %1041 = vrot.lane.b32.xlu1 %v2554_v48, %s2181_s12  ;;  %1039 = vrot.lane.b32.xlu0 %v2557_v49, %s2181_s12  ;;  %v2865_v48 = vld [vmem:[%s2323_s25 + $0x60] sm:$0xff] }
 0x179   : > { %v2853_v17 = vpop.permute.xlu1 %786  ;;  %v2855_v44 = vpop.permute.xlu0 %784 }
 0x17a   : > { %4655 = vst [vmem:[#allocation58_spill] sm:$0xff] %v2853_v17  ;;  %4656 = vst [vmem:[#allocation59_spill] sm:$0xff] %v2855_v44  ;;  %v2876_v44 = vld [vmem:[%s2323_s25 + $0x70] sm:$0xff] }
 0x17b   : > { %1089 = vrot.lane.b32.xlu1 %v2848_v41, %s2167_s15  ;;  %1087 = vrot.lane.b32.xlu0 %v2851_v24, %s2167_s15 }
 0x17d   : > { %v2867_v19 = vpop.permute.xlu1 %803  ;;  %v2869_v49 = vpop.permute.xlu0 %788 }
 0x17e   : > { %4657 = vst [vmem:[#allocation60_spill] sm:$0xff] %v2867_v19  ;;  %4658 = vst [vmem:[#allocation61_spill] sm:$0xff] %v2869_v49 }
 0x17f   : > { %1093 = vrot.lane.b32.xlu1 %v2862_v45, %s2167_s15  ;;  %1091 = vrot.lane.b32.xlu0 %v2865_v48, %s2167_s15 }
 0x181   : > { %v2878_v17 = vpop.permute.xlu1 %807  ;;  %v2880_v18 = vpop.permute.xlu0 %805 }
 0x182   : > { %4659 = vst [vmem:[#allocation62_spill] sm:$0xff] %v2878_v17  ;;  %4660 = vst [vmem:[#allocation63_spill] sm:$0xff] %v2880_v18 }
 0x183   : > { %1110 = vrot.lane.b32.xlu1 %v2851_v24, %s2168_s24  ;;  %1095 = vrot.lane.b32.xlu0 %v2876_v44, %s2167_s15 }
 0x185   : > { %v2886_v19 = vpop.permute.xlu1 %811  ;;  %v2888_v49 = vpop.permute.xlu0 %809 }
 0x186   : > { %4661 = vst [vmem:[#allocation64_spill] sm:$0xff] %v2886_v19  ;;  %4662 = vst [vmem:[#allocation65_spill] sm:$0xff] %v2888_v49 }
 0x187   : > { %1114 = vrot.lane.b32.xlu1 %v2865_v48, %s2168_s24  ;;  %1112 = vrot.lane.b32.xlu0 %v2848_v41, %s2168_s24 }
 0x189   : > { %v2894_v16 = vpop.permute.xlu1 %828  ;;  %v2896_v17 = vpop.permute.xlu0 %826 }
 0x18a   : > { %4663 = vst [vmem:[#allocation66_spill] sm:$0xff] %v2894_v16  ;;  %4664 = vst [vmem:[#allocation67_spill] sm:$0xff] %v2896_v17 }
 0x18b   : > { %1118 = vrot.lane.b32.xlu1 %v2876_v44, %s2168_s24  ;;  %1116 = vrot.lane.b32.xlu0 %v2862_v45, %s2168_s24 }
 0x18d   : > { %v2902_v18 = vpop.permute.xlu1 %832  ;;  %v2904_v19 = vpop.permute.xlu0 %830 }
 0x18e   : > { %4665 = vst [vmem:[#allocation68_spill] sm:$0xff] %v2902_v18  ;;  %4666 = vst [vmem:[#allocation69_spill] sm:$0xff] %v2904_v19 }
 0x18f   : > { %1135 = vrot.lane.b32.xlu1 %v2848_v41, %s2169_s26  ;;  %1133 = vrot.lane.b32.xlu0 %v2851_v24, %s2169_s26 }
 0x191   : > { %v2910_v49 = vpop.permute.xlu1 %849  ;;  %v2912_v16 = vpop.permute.xlu0 %834 }
 0x192   : > { %4667 = vst [vmem:[#allocation70_spill] sm:$0xff] %v2910_v49  ;;  %4668 = vst [vmem:[#allocation71_spill] sm:$0xff] %v2912_v16 }
 0x193   : > { %1139 = vrot.lane.b32.xlu1 %v2862_v45, %s2169_s26  ;;  %1137 = vrot.lane.b32.xlu0 %v2865_v48, %s2169_s26 }
 0x195   : > { %v2918_v17 = vpop.permute.xlu1 %853  ;;  %v2920_v18 = vpop.permute.xlu0 %851 }
 0x196   : > { %4669 = vst [vmem:[#allocation72_spill] sm:$0xff] %v2918_v17  ;;  %4670 = vst [vmem:[#allocation73_spill] sm:$0xff] %v2920_v18 }
 0x197   : > { %1156 = vrot.lane.b32.xlu1 %v2851_v24, %s2170_s27  ;;  %1141 = vrot.lane.b32.xlu0 %v2876_v44, %s2169_s26 }
 0x199   : > { %v2926_v19 = vpop.permute.xlu1 %857  ;;  %v2928_v49 = vpop.permute.xlu0 %855 }
 0x19a   : > { %4671 = vst [vmem:[#allocation74_spill] sm:$0xff] %v2926_v19  ;;  %4672 = vst [vmem:[#allocation75_spill] sm:$0xff] %v2928_v49 }
 0x19b   : > { %1160 = vrot.lane.b32.xlu1 %v2865_v48, %s2170_s27  ;;  %1158 = vrot.lane.b32.xlu0 %v2848_v41, %s2170_s27 }
 0x19d   : > { %v2934_v16 = vpop.permute.xlu1 %874  ;;  %v2936_v17 = vpop.permute.xlu0 %872 }
 0x19e   : > { %4673 = vst [vmem:[#allocation76_spill] sm:$0xff] %v2934_v16  ;;  %4674 = vst [vmem:[#allocation77_spill] sm:$0xff] %v2936_v17 }
 0x19f   : > { %1164 = vrot.lane.b32.xlu1 %v2876_v44, %s2170_s27  ;;  %1162 = vrot.lane.b32.xlu0 %v2862_v45, %s2170_s27 }
 0x1a1   : > { %v2942_v18 = vpop.permute.xlu1 %878  ;;  %v2944_v19 = vpop.permute.xlu0 %876 }
 0x1a2   : > { %4675 = vst [vmem:[#allocation78_spill] sm:$0xff] %v2942_v18  ;;  %4676 = vst [vmem:[#allocation79_spill] sm:$0xff] %v2944_v19 }
 0x1a3   : > { %1181 = vrot.lane.b32.xlu1 %v2848_v41, %s2171_s28  ;;  %1179 = vrot.lane.b32.xlu0 %v2851_v24, %s2171_s28 }
 0x1a5   : > { %v2950_v49 = vpop.permute.xlu1 %895  ;;  %v2952_v16 = vpop.permute.xlu0 %880 }
 0x1a6   : > { %4677 = vst [vmem:[#allocation80_spill] sm:$0xff] %v2950_v49  ;;  %4678 = vst [vmem:[#allocation81_spill] sm:$0xff] %v2952_v16 }
 0x1a7   : > { %1185 = vrot.lane.b32.xlu1 %v2862_v45, %s2171_s28  ;;  %1183 = vrot.lane.b32.xlu0 %v2865_v48, %s2171_s28 }
 0x1a9   : > { %v2958_v17 = vpop.permute.xlu1 %899  ;;  %v2960_v18 = vpop.permute.xlu0 %897 }
 0x1aa   : > { %4679 = vst [vmem:[#allocation82_spill] sm:$0xff] %v2958_v17  ;;  %4680 = vst [vmem:[#allocation83_spill] sm:$0xff] %v2960_v18 }
 0x1ab   : > { %1202 = vrot.lane.b32.xlu1 %v2851_v24, %s2172_s29  ;;  %1187 = vrot.lane.b32.xlu0 %v2876_v44, %s2171_s28 }
 0x1ad   : > { %v2966_v19 = vpop.permute.xlu1 %903  ;;  %v2968_v49 = vpop.permute.xlu0 %901 }
 0x1ae   : > { %4681 = vst [vmem:[#allocation84_spill] sm:$0xff] %v2966_v19  ;;  %4682 = vst [vmem:[#allocation85_spill] sm:$0xff] %v2968_v49 }
 0x1af   : > { %1206 = vrot.lane.b32.xlu1 %v2865_v48, %s2172_s29  ;;  %1204 = vrot.lane.b32.xlu0 %v2848_v41, %s2172_s29 }
 0x1b1   : > { %v2974_v16 = vpop.permute.xlu1 %920  ;;  %v2976_v17 = vpop.permute.xlu0 %918 }
 0x1b2   : > { %4683 = vst [vmem:[#allocation86_spill] sm:$0xff] %v2974_v16  ;;  %4684 = vst [vmem:[#allocation87_spill] sm:$0xff] %v2976_v17 }
 0x1b3   : > { %1210 = vrot.lane.b32.xlu1 %v2876_v44, %s2172_s29  ;;  %1208 = vrot.lane.b32.xlu0 %v2862_v45, %s2172_s29 }
 0x1b5   : > { %v2982_v18 = vpop.permute.xlu1 %924  ;;  %v2984_v19 = vpop.permute.xlu0 %922 }
 0x1b6   : > { %4685 = vst [vmem:[#allocation88_spill] sm:$0xff] %v2982_v18  ;;  %4686 = vst [vmem:[#allocation89_spill] sm:$0xff] %v2984_v19 }
 0x1b7   : > { %1227 = vrot.lane.b32.xlu1 %v2848_v41, %s2173_s30  ;;  %1225 = vrot.lane.b32.xlu0 %v2851_v24, %s2173_s30 }
 0x1b9   : > { %v2990_v49 = vpop.permute.xlu1 %941  ;;  %v2992_v16 = vpop.permute.xlu0 %926 }
 0x1ba   : > { %4687 = vst [vmem:[#allocation90_spill] sm:$0xff] %v2990_v49  ;;  %4688 = vst [vmem:[#allocation91_spill] sm:$0xff] %v2992_v16 }
 0x1bb   : > { %1231 = vrot.lane.b32.xlu1 %v2862_v45, %s2173_s30  ;;  %1229 = vrot.lane.b32.xlu0 %v2865_v48, %s2173_s30 }
 0x1bd   : > { %v2998_v17 = vpop.permute.xlu1 %945  ;;  %v3000_v18 = vpop.permute.xlu0 %943 }
 0x1be   : > { %4689 = vst [vmem:[#allocation92_spill] sm:$0xff] %v2998_v17  ;;  %4690 = vst [vmem:[#allocation93_spill] sm:$0xff] %v3000_v18  ;;  %v4576_v17 = vlaneseq }
 0x1bf   : > { %1248 = vrot.lane.b32.xlu1 %v2851_v24, %s4581_s5  ;;  %1233 = vrot.lane.b32.xlu0 %v2876_v44, %s2173_s30 }
 0x1c1   : > { %v3006_v19 = vpop.permute.xlu1 %949  ;;  %v3008_v49 = vpop.permute.xlu0 %947 }
 0x1c2   : > { %4691 = vst [vmem:[#allocation94_spill] sm:$0xff] %v3006_v19  ;;  %4692 = vst [vmem:[#allocation95_spill] sm:$0xff] %v3008_v49  ;;  %v3023_v49 = vand.u32 127, %v4576_v17 }
 0x1c3   : > { %1252 = vrot.lane.b32.xlu1 %v2865_v48, %s4581_s5  ;;  %1250 = vrot.lane.b32.xlu0 %v2848_v41, %s4581_s5 }
 0x1c4   : > { %vm330_vm0 = vcmp.lt.s32.totalorder %v3023_v49, 127  ;;  %vm354_vm1 = vcmp.lt.s32.totalorder %v3023_v49, 126  ;;  %vm378_vm2 = vcmp.lt.s32.totalorder %v3023_v49, 125  ;;  %vm402_vm3 = vcmp.lt.s32.totalorder %v3023_v49, 106 }
 0x1c5   : > { %v3014_v16 = vpop.permute.xlu1 %966  ;;  %v3016_v18 = vpop.permute.xlu0 %964  ;;  %v334_v22 = vsel %vm330_vm0, %v2466_v26, %v2474_v28  ;;  %v331_v11 = vsel %vm330_vm0, %v2472_v27, %v2482_v30  ;;  %vm426_vm4 = vcmp.lt.s32.totalorder %v3023_v49, 105  ;;  %vm450_vm5 = vcmp.lt.s32.totalorder %v3023_v49, 104 }
 0x1c6   : > { %4693 = vst [vmem:[#allocation96_spill] sm:$0xff] %v3014_v16  ;;  %4694 = vst [vmem:[#allocation97_spill] sm:$0xff] %v3016_v18  ;;  %v310_v18 = vmul.f32 %v309_v14, %v2337_v21  ;;  %v286_v16 = vstv %s283_s14  ;;  %v333_v21 = vsel %vm330_vm0, %v2474_v28, %v2464_v25  ;;  %v359_v28 = vstv %s3029_s21  ;;  %s3079_s14 = sld [smem:[#allocation3 + $0x7]] }
 0x1c7   : > { %1256 = vrot.lane.b32.xlu1 %v2876_v44, %s4581_s5  ;;  %1254 = vrot.lane.b32.xlu0 %v2862_v45, %s4581_s5  ;;  %s3050_s5 = sld [smem:[#allocation3 + $0x6]]  ;;  %v315_v8 = vadd.f32 %v311_v12, %v286_v16  ;;  %v317_v26 = vadd.f32 %v313_v10, %v286_v16  ;;  %v357_v10 = vsel %vm354_vm1, %v2490_v32, %v2488_v31  ;;  %vm474_vm6 = vcmp.lt.s32.totalorder %v3023_v49, 103 }
 0x1c8   : > { %v314_v13 = vadd.f32 %v310_v18, %v286_v16  ;;  %v358_v12 = vsel %vm354_vm1, %v2480_v29, %v2490_v32  ;;  %v355_v29 = vsel %vm354_vm1, %v2498_v34, %v2496_v33  ;;  %v381_v33 = vsel %vm378_vm2, %v2504_v35, %v2514_v38  ;;  %s3165_s21 = sld [smem:[#allocation3 + $0xa]] }
 0x1c9   : > { %v3025_v19 = vpop.permute.xlu1 %970  ;;  %v3027_v15 = vpop.permute.xlu0 %968  ;;  %vm498_vm7 = vcmp.lt.s32.totalorder %v3023_v49, 84  ;;  %vm522_vm8 = vcmp.lt.s32.totalorder %v3023_v49, 83  ;;  %vm546_vm9 = vcmp.lt.s32.totalorder %v3023_v49, 82  ;;  %vm570_vm10 = vcmp.lt.s32.totalorder %v3023_v49, 81 }
 0x1ca   : > { %4695 = vst [vmem:[#allocation98_spill] sm:$0xff] %v3025_v19  ;;  %4696 = vst [vmem:[#allocation99_spill] sm:$0xff] %v3027_v15  ;;  %v312_v15 = vmul.f32 %v309_v14, %v2334_v20  ;;  %v332_v20 = vsel %vm330_vm0, %v2464_v25, %v2472_v27  ;;  %v383_v27 = vstv %s3035_s17  ;;  %s3190_s17 = sld [smem:[#allocation3 + $0xb]]  ;;  %vm594_vm11 = vcmp.lt.s32.totalorder %v3023_v49, 62 }
 0x1cb   : > { %1273 = vrot.lane.b32.xlu1 %v2848_v41, %s2175_s6  ;;  %1271 = vrot.lane.b32.xlu0 %v2851_v24, %s2175_s6  ;;  %vm618_vm12 = vcmp.lt.s32.totalorder %v3023_v49, 61  ;;  %vm642_vm13 = vcmp.lt.s32.totalorder %v3023_v49, 60  ;;  %vm666_vm14 = vcmp.lt.s32.totalorder %v3023_v49, 59 }
 0x1cd   : > { %v3040_v17 = vpop.permute.xlu1 %987  ;;  %v3042_v19 = vpop.permute.xlu0 %972  ;;  %v3118_v32 = vstv %s3050_s5  ;;  %s3134_s5 = sld [smem:[#allocation3 + $0x9]] }
 0x1ce   : > { %4697 = vst [vmem:[#allocation100_spill] sm:$0xff] %v3040_v17  ;;  %4698 = vst [vmem:[#allocation101_spill] sm:$0xff] %v3042_v19  ;;  %v335_v17 = vstv %s1946_s20  ;;  %v316_v19 = vadd.f32 %v312_v15, %v286_v16  ;;  %v356_v16 = vsel %vm354_vm1, %v2488_v31, %v2498_v34  ;;  %v382_v31 = vsel %vm378_vm2, %v2506_v36, %v2504_v35  ;;  %s3120_s20 = sld [smem:[#allocation3 + $0x8]] }
 0x1cf   : > { %1277 = vrot.lane.b32.xlu1 %v2862_v45, %s2175_s6  ;;  %1275 = vrot.lane.b32.xlu0 %v2865_v48, %s2175_s6  ;;  %v338_v25 = vmul.f32 %v335_v17, %v332_v20  ;;  %v336_v15 = vmul.f32 %v335_v17, %v334_v22  ;;  %v337_v18 = vmul.f32 %v335_v17, %v333_v21 }
 0x1d0   : > { %v339_v30 = vmul.f32 %v335_v17, %v331_v11  ;;  %v407_v11 = vstv %s3038_s23  ;;  %v3106_v17 = vstv %s3046_s13  ;;  %v379_v35 = vsel %vm378_vm2, %v2512_v37, %v2522_v40  ;;  %s3225_s23 = sld [smem:[#allocation3 + $0xc]] }
 0x1d1   : > { %v3069_v23 = vpop.permute.xlu1 %991  ;;  %v3071_v14 = vpop.permute.xlu0 %989  ;;  %v342_v22 = vadd.f32 %v338_v25, %v316_v19  ;;  %v360_v19 = vmul.f32 %v359_v28, %v358_v12  ;;  %v361_v25 = vmul.f32 %v359_v28, %v357_v10  ;;  %v340_v34 = vadd.f32 %v336_v15, %v314_v13  ;;  %s3269_s13 = sld [smem:[#allocation3 + $0xd]] }
 0x1d2   : > { %4699 = vst [vmem:[#allocation102_spill] sm:$0xff] %v3069_v23  ;;  %4700 = vst [vmem:[#allocation103_spill] sm:$0xff] %v3071_v14  ;;  %v341_v36 = vadd.f32 %v337_v18, %v315_v8  ;;  %v380_v23 = vsel %vm378_vm2, %v2514_v38, %v2512_v37  ;;  %v363_v12 = vmul.f32 %v359_v28, %v355_v29 }
 0x1d3   : > { %1294 = vrot.lane.b32.xlu1 %v2851_v24, %s2176_s7  ;;  %1279 = vrot.lane.b32.xlu0 %v2876_v44, %s2175_s6  ;;  %v406_v8 = vsel %vm402_vm3, %v2520_v39, %v2533_v43  ;;  %v385_v38 = vmul.f32 %v383_v27, %v381_v33  ;;  %v405_v13 = vsel %vm402_vm3, %v2533_v43, %v2531_v42 }
 0x1d4   : > { %v364_v37 = vadd.f32 %v360_v19, %v340_v34  ;;  %v365_v39 = vadd.f32 %v361_v25, %v341_v36  ;;  %v386_v15 = vmul.f32 %v383_v27, %v380_v23  ;;  %v387_v43 = vmul.f32 %v383_v27, %v379_v35 }
 0x1d5   : > { %v3099_v20 = vpop.permute.xlu1 %995  ;;  %v3101_v21 = vpop.permute.xlu0 %993  ;;  %v408_v18 = vmul.f32 %v407_v11, %v406_v8  ;;  %v3188_v19 = vstv %s3120_s20  ;;  %v454_v36 = vsel %vm450_vm5, %v2575_v54, %v2585_v57  ;;  %v452_v54 = vsel %vm450_vm5, %v2583_v56, %v2593_v59  ;;  %s3388_s20 = sld [smem:[#allocation3 + $0xf]] }
 0x1d6   : > { %4701 = vst [vmem:[#allocation104_spill] sm:$0xff] %v3099_v20  ;;  %4702 = vst [vmem:[#allocation105_spill] sm:$0xff] %v3101_v21  ;;  %v362_v20 = vmul.f32 %v359_v28, %v356_v16  ;;  %v343_v21 = vadd.f32 %v339_v30, %v317_v26  ;;  %v384_v16 = vmul.f32 %v383_v27, %v382_v31  ;;  %v3158_v28 = vstv %s3079_s14  ;;  %s3310_s14 = sld [smem:[#allocation3 + $0xe]] }
 0x1d7   : > { %1298 = vrot.lane.b32.xlu1 %v2865_v48, %s2176_s7  ;;  %1296 = vrot.lane.b32.xlu0 %v2848_v41, %s2176_s7  ;;  %v404_v26 = vsel %vm402_vm3, %v2531_v42, %v2547_v47  ;;  %v403_v42 = vsel %vm402_vm3, %v2547_v47, %v2545_v46  ;;  %v430_v30 = vsel %vm426_vm4, %v2561_v51, %v2559_v50 }
 0x1d8   : > { %v366_v40 = vadd.f32 %v362_v20, %v342_v22  ;;  %v409_v20 = vmul.f32 %v407_v11, %v405_v13  ;;  %v410_v22 = vmul.f32 %v407_v11, %v404_v26  ;;  %v428_v27 = vsel %vm426_vm4, %v2569_v53, %v2567_v52 }
 0x1d9   : > { %v3136_v14 = vpop.permute.xlu1 %1012  ;;  %v3138_v10 = vpop.permute.xlu0 %1010  ;;  %v429_v46 = vsel %vm426_vm4, %v2559_v50, %v2569_v53  ;;  %v367_v47 = vadd.f32 %v363_v12, %v343_v21  ;;  %v388_v31 = vadd.f32 %v384_v16, %v364_v37  ;;  %v389_v51 = vadd.f32 %v385_v38, %v365_v39 }
 0x1da   : > { %v390_v25 = vadd.f32 %v386_v15, %v366_v40  ;;  %v411_v33 = vmul.f32 %v407_v11, %v403_v42  ;;  %v432_v34 = vmul.f32 %v3106_v17, %v430_v30  ;;  %v427_v50 = vsel %vm426_vm4, %v2567_v52, %v2577_v55 }
 0x1db   : > { %1302 = vrot.lane.b32.xlu1 %v2876_v44, %s2176_s7  ;;  %1300 = vrot.lane.b32.xlu0 %v2862_v45, %s2176_s7  ;;  %v433_v53 = vmul.f32 %v3106_v17, %v429_v46  ;;  %v434_v21 = vmul.f32 %v3106_v17, %v428_v27  ;;  %v3209_v12 = vstv %s3134_s5  ;;  %v391_v35 = vadd.f32 %v387_v43, %v367_v47  ;;  %s3422_s5 = sld [smem:[#allocation3 + $0x10]] }
 0x1dc   : > { %v412_v52 = vadd.f32 %v408_v18, %v388_v31  ;;  %v413_v55 = vadd.f32 %v409_v20, %v389_v51  ;;  %v414_v8 = vadd.f32 %v410_v22, %v390_v25  ;;  %v435_v38 = vmul.f32 %v3106_v17, %v427_v50 }
 0x1dd   : > { %v3175_v29 = vpop.permute.xlu1 %1016  ;;  %v3177_v23 = vpop.permute.xlu0 %1014  ;;  %v453_v13 = vsel %vm450_vm5, %v2585_v57, %v2583_v56  ;;  %v415_v17 = vadd.f32 %v411_v33, %v391_v35  ;;  %v456_v37 = vmul.f32 %v3118_v32, %v454_v36  ;;  %v3233_v57 = vstv %s3165_s21  ;;  %v4703_v35 = vld [vmem:[#allocation9_spill] sm:$0xff]  ;;  %s3476_s21 = sld [smem:[#allocation3 + $0x11]] }
 0x1de   : > { %v436_v26 = vadd.f32 %v432_v34, %v412_v52  ;;  %v437_v39 = vadd.f32 %v433_v53, %v413_v55  ;;  %v438_v40 = vadd.f32 %v434_v21, %v414_v8  ;;  %v451_v56 = vsel %vm450_vm5, %v2593_v59, %v2591_v58  ;;  %v4704_v55 = vld [vmem:[#allocation11_spill] sm:$0xff] }
 0x1df   : > { %1319 = vrot.lane.b32.xlu1 %v2848_v41, %s2177_s8  ;;  %1317 = vrot.lane.b32.xlu0 %v2851_v24, %s2177_s8  ;;  %v478_v15 = vsel %vm474_vm6, %v2601_v61, %v2599_v60  ;;  %v457_v42 = vmul.f32 %v3118_v32, %v453_v13  ;;  %v458_v30 = vmul.f32 %v3118_v32, %v452_v54  ;;  %v3267_v27 = vstv %s3190_s17  ;;  %s3496_s17 = sld [smem:[#allocation3 + $0x12]] }
 0x1e0   : > { %v476_v20 = vsel %vm474_vm6, %v2609_v63, %v2607_v62  ;;  %v477_v58 = vsel %vm474_vm6, %v2599_v60, %v2609_v63  ;;  %v439_v59 = vadd.f32 %v435_v38, %v415_v17  ;;  %v475_v61 = vsel %vm474_vm6, %v2607_v62, %v2617_v1 }
 0x1e1   : > { %v3211_v11 = vpop.permute.xlu1 %1033  ;;  %v3213_v16 = vpop.permute.xlu0 %1018  ;;  %v502_v22 = vsel %vm498_vm7, %v2615_v0, %v2625_v3  ;;  %v460_v60 = vadd.f32 %v456_v37, %v436_v26  ;;  %v459_v63 = vmul.f32 %v3118_v32, %v451_v56  ;;  %v480_v62 = vmul.f32 %v3158_v28, %v478_v15  ;;  %v4705_v26 = vld [vmem:[#allocation13_spill] sm:$0xff]  ;;  %v4706_v37 = vld [vmem:[#allocation10_spill] sm:$0xff]  ;;  %v4707_v56 = vld [vmem:[#allocation12_spill] sm:$0xff] }
 0x1e2   : > { %v501_v0 = vsel %vm498_vm7, %v2625_v3, %v2623_v2  ;;  %v481_v1 = vmul.f32 %v3158_v28, %v477_v58  ;;  %v482_v46 = vmul.f32 %v3158_v28, %v476_v20  ;;  %v499_v47 = vsel %vm498_vm7, %v2633_v5, %v2631_v4 }
 0x1e3   : > { %1323 = vrot.lane.b32.xlu1 %v2862_v45, %s2177_s8  ;;  %1321 = vrot.lane.b32.xlu0 %v2865_v48, %s2177_s8  ;;  %v500_v32 = vsel %vm498_vm7, %v2623_v2, %v2633_v5  ;;  %v461_v3 = vadd.f32 %v457_v42, %v437_v39  ;;  %v462_v25 = vadd.f32 %v458_v30, %v438_v40  ;;  %v3308_v5 = vstv %s3225_s23  ;;  %s3505_s23 = sld [smem:[#allocation3 + $0x13]] }
 0x1e4   : > { %v483_v33 = vmul.f32 %v3158_v28, %v475_v61  ;;  %v504_v34 = vmul.f32 %v3188_v19, %v502_v22  ;;  %v505_v50 = vmul.f32 %v3188_v19, %v501_v0  ;;  %v526_v4 = vsel %vm522_vm8, %v2641_v7, %v2639_v6  ;;  %v4708_v22 = vld [vmem:[#allocation14_spill] sm:$0xff]  ;;  %v4710_v0 = vld [vmem:[#allocation16_spill] sm:$0xff] }
 0x1e5   : > { %v3243_v43 = vpop.permute.xlu1 %1037  ;;  %v3245_v18 = vpop.permute.xlu0 %1035  ;;  %v525_v2 = vsel %vm522_vm8, %v2639_v6, %v2649_v9  ;;  %v463_v28 = vadd.f32 %v459_v63, %v439_v59  ;;  %v484_v53 = vadd.f32 %v480_v62, %v460_v60  ;;  %v506_v21 = vmul.f32 %v3188_v19, %v500_v32  ;;  %v4709_v60 = vld [vmem:[#allocation15_spill] sm:$0xff] }
 0x1e6   : > { %v507_v7 = vmul.f32 %v3188_v19, %v499_v47  ;;  %v485_v6 = vadd.f32 %v481_v1, %v461_v3  ;;  %v486_v36 = vadd.f32 %v482_v46, %v462_v25  ;;  %v524_v52 = vsel %vm522_vm8, %v2649_v9, %v4703_v35  ;;  %v4711_v1 = vld [vmem:[#allocation17_spill] sm:$0xff] }
 0x1e7   : > { %1340 = vrot.lane.b32.xlu1 %v2851_v24, %s2178_s9  ;;  %1325 = vrot.lane.b32.xlu0 %v2876_v44, %s2177_s8  ;;  %v523_v8 = vsel %vm522_vm8, %v4703_v35, %v4704_v55  ;;  %v487_v54 = vadd.f32 %v483_v33, %v463_v28  ;;  %v528_v19 = vmul.f32 %v3209_v12, %v526_v4  ;;  %v3342_v42 = vstv %s3269_s13  ;;  %v4712_v33 = vld [vmem:[#allocation19_spill] sm:$0xff]  ;;  %s3514_s13 = sld [smem:[#allocation3 + $0x14]] }
 0x1e8   : > { %v529_v17 = vmul.f32 %v3209_v12, %v525_v2  ;;  %v550_v39 = vsel %vm546_vm9, %v4706_v37, %v4705_v26  ;;  %v508_v9 = vadd.f32 %v504_v34, %v484_v53  ;;  %v509_v40 = vadd.f32 %v505_v50, %v485_v6  ;;  %v4713_v50 = vld [vmem:[#allocation18_spill] sm:$0xff]  ;;  %v4714_v2 = vld [vmem:[#allocation21_spill] sm:$0xff]  ;;  %v4715_v53 = vld [vmem:[#allocation23_spill] sm:$0xff] }
 0x1e9   : > { %v3292_v31 = vpop.permute.xlu1 %1041  ;;  %v3294_v51 = vpop.permute.xlu0 %1039  ;;  %v549_v15 = vsel %vm546_vm9, %v4705_v26, %v4707_v56  ;;  %v510_v30 = vadd.f32 %v506_v21, %v486_v36  ;;  %v511_v20 = vadd.f32 %v507_v7, %v487_v54  ;;  %v530_v58 = vmul.f32 %v3209_v12, %v524_v52  ;;  %v4716_v21 = vld [vmem:[#allocation20_spill] sm:$0xff] }
 0x1ea   : > { %v531_v59 = vmul.f32 %v3209_v12, %v523_v8  ;;  %v552_v61 = vmul.f32 %v3233_v57, %v550_v39  ;;  %v547_v63 = vsel %vm546_vm9, %v4709_v60, %v4708_v22  ;;  %v548_v62 = vsel %vm546_vm9, %v4707_v56, %v4709_v60 }
 0x1eb   : > { %1344 = vrot.lane.b32.xlu1 %v2865_v48, %s2178_s9  ;;  %1342 = vrot.lane.b32.xlu0 %v2848_v41, %s2178_s9  ;;  %v574_v46 = vsel %vm570_vm10, %v4711_v1, %v4710_v0  ;;  %v532_v32 = vadd.f32 %v528_v19, %v508_v9  ;;  %v533_v3 = vadd.f32 %v529_v17, %v509_v40  ;;  %v3386_v6 = vstv %s3310_s14  ;;  %v4717_v17 = vld [vmem:[#allocation22_spill] sm:$0xff]  ;;  %v4722_v1 = vld [vmem:[#allocation28_spill] sm:$0xff]  ;;  %s3539_s14 = sld [smem:[#allocation3 + $0x15]] }
 0x1ec   : > { %v553_v25 = vmul.f32 %v3233_v57, %v549_v15  ;;  %v573_v34 = vsel %vm570_vm10, %v4710_v0, %v4712_v33  ;;  %v572_v4 = vsel %vm570_vm10, %v4712_v33, %v4713_v50  ;;  %v571_v28 = vsel %vm570_vm10, %v4713_v50, %v4714_v2  ;;  %v4718_v15 = vld [vmem:[#allocation24_spill] sm:$0xff] }
 0x1ed   : > { %v3327_v38 = vpop.permute.xlu1 %1089  ;;  %v3329_v13 = vpop.permute.xlu0 %1087  ;;  %v598_v7 = vsel %vm594_vm11, %v4716_v21, %v4715_v53  ;;  %v534_v36 = vadd.f32 %v530_v58, %v510_v30  ;;  %v554_v35 = vmul.f32 %v3233_v57, %v548_v62  ;;  %v555_v52 = vmul.f32 %v3233_v57, %v547_v63  ;;  %v4719_v30 = vld [vmem:[#allocation25_spill] sm:$0xff] }
 0x1ee   : > { %v576_v55 = vmul.f32 %v3267_v27, %v574_v46  ;;  %v535_v8 = vadd.f32 %v531_v59, %v511_v20  ;;  %v556_v54 = vadd.f32 %v552_v61, %v532_v32  ;;  %v577_v19 = vmul.f32 %v3267_v27, %v573_v34  ;;  %v4720_v59 = vld [vmem:[#allocation26_spill] sm:$0xff]  ;;  %v4721_v61 = vld [vmem:[#allocation27_spill] sm:$0xff]  ;;  %v4723_v46 = vld [vmem:[#allocation29_spill] sm:$0xff] }
 0x1ef   : > { %1348 = vrot.lane.b32.xlu1 %v2876_v44, %s2178_s9  ;;  %1346 = vrot.lane.b32.xlu0 %v2862_v45, %s2178_s9  ;;  %v597_v26 = vsel %vm594_vm11, %v4715_v53, %v4717_v17  ;;  %v557_v9 = vadd.f32 %v553_v25, %v533_v3  ;;  %v578_v40 = vmul.f32 %v3267_v27, %v572_v4  ;;  %v4724_v25 = vld [vmem:[#allocation31_spill] sm:$0xff] }
 0x1f0   : > { %v579_v57 = vmul.f32 %v3267_v27, %v571_v28  ;;  %v600_v56 = vmul.f32 %v3308_v5, %v598_v7  ;;  %v595_v20 = vsel %vm594_vm11, %v4719_v30, %v4718_v15  ;;  %v596_v58 = vsel %vm594_vm11, %v4717_v17, %v4719_v30  ;;  %v4727_v17 = vld [vmem:[#allocation32_spill] sm:$0xff]  ;;  %v4731_v30 = vld [vmem:[#allocation37_spill] sm:$0xff] }
 0x1f1   : > { %v3364_v12 = vpop.permute.xlu1 %1093  ;;  %v3366_v47 = vpop.permute.xlu0 %1091  ;;  %v622_v22 = vsel %vm618_vm12, %v4721_v61, %v4720_v59  ;;  %v558_v27 = vadd.f32 %v554_v35, %v534_v36  ;;  %v559_v60 = vadd.f32 %v555_v52, %v535_v8  ;;  %v580_v63 = vadd.f32 %v576_v55, %v556_v54  ;;  %v4725_v36 = vld [vmem:[#allocation33_spill] sm:$0xff]  ;;  %v4726_v35 = vld [vmem:[#allocation30_spill] sm:$0xff]  ;;  %v4730_v15 = vld [vmem:[#allocation36_spill] sm:$0xff] }
 0x1f2   : > { %v601_v62 = vmul.f32 %v3308_v5, %v597_v26  ;;  %v581_v0 = vadd.f32 %v577_v19, %v557_v9  ;;  %v620_v32 = vsel %vm618_vm12, %v4723_v46, %v4722_v1  ;;  %v621_v3 = vsel %vm618_vm12, %v4720_v59, %v4723_v46  ;;  %v4728_v9 = vld [vmem:[#allocation34_spill] sm:$0xff]  ;;  %v4734_v46 = vld [vmem:[#allocation41_spill] sm:$0xff] }
 0x1f3   : > { %1365 = vrot.lane.b32.xlu1 %v2848_v41, %s2179_s10  ;;  %1363 = vrot.lane.b32.xlu0 %v2851_v24, %s2179_s10  ;;  %v619_v33 = vsel %vm618_vm12, %v4722_v1, %v4724_v25  ;;  %v582_v4 = vadd.f32 %v578_v40, %v558_v27  ;;  %v602_v2 = vmul.f32 %v3308_v5, %v596_v58  ;;  %v671_v55 = vstv %s3388_s20  ;;  %v4729_v40 = vld [vmem:[#allocation35_spill] sm:$0xff]  ;;  %s3590_s20 = sld [smem:[#allocation3 + $0x16]] }
 0x1f4   : > { %v603_v28 = vmul.f32 %v3308_v5, %v595_v20  ;;  %v624_v53 = vmul.f32 %v3342_v42, %v622_v22  ;;  %v583_v21 = vadd.f32 %v579_v57, %v559_v60  ;;  %v604_v7 = vadd.f32 %v600_v56, %v580_v63  ;;  %v4732_v63 = vld [vmem:[#allocation38_spill] sm:$0xff] }
 0x1f5   : > { %v3402_v37 = vpop.permute.xlu1 %1110  ;;  %v3404_v39 = vpop.permute.xlu0 %1095  ;;  %v646_v52 = vsel %vm642_vm13, %v4726_v35, %v4725_v36  ;;  %v605_v8 = vadd.f32 %v601_v62, %v581_v0  ;;  %v625_v5 = vmul.f32 %v3342_v42, %v621_v3  ;;  %v626_v54 = vmul.f32 %v3342_v42, %v620_v32  ;;  %v4733_v62 = vld [vmem:[#allocation39_spill] sm:$0xff] }
 0x1f6   : > { %v627_v19 = vmul.f32 %v3342_v42, %v619_v33  ;;  %v645_v26 = vsel %vm642_vm13, %v4725_v36, %v4727_v17  ;;  %v643_v57 = vsel %vm642_vm13, %v4729_v40, %v4728_v9  ;;  %v644_v56 = vsel %vm642_vm13, %v4727_v17, %v4729_v40 }
 0x1f7   : > { %1369 = vrot.lane.b32.xlu1 %v2862_v45, %s2179_s10  ;;  %1367 = vrot.lane.b32.xlu0 %v2865_v48, %s2179_s10  ;;  %v670_v42 = vsel %vm666_vm14, %v4731_v30, %v4730_v15  ;;  %v606_v59 = vadd.f32 %v602_v2, %v582_v4  ;;  %v607_v61 = vadd.f32 %v603_v28, %v583_v21  ;;  %v702_v60 = vstv %s3422_s5  ;;  %s3613_s5 = sld [smem:[#allocation3 + $0x17]] }
 0x1f8   : > { %v628_v22 = vadd.f32 %v624_v53, %v604_v7  ;;  %v648_v27 = vmul.f32 %v3386_v6, %v646_v52  ;;  %v668_v0 = vsel %vm666_vm14, %v4733_v62, %v4732_v63  ;;  %v669_v1 = vsel %vm666_vm14, %v4730_v15, %v4733_v62 }
 0x1f9   : > { %v3441_v34 = vpop.permute.xlu1 %1114  ;;  %v3443_v50 = vpop.permute.xlu0 %1112  ;;  %v667_v32 = vsel %vm666_vm14, %v4732_v63, %v4734_v46  ;;  %v649_v3 = vmul.f32 %v3386_v6, %v645_v26  ;;  %v650_v25 = vmul.f32 %v3386_v6, %v644_v56  ;;  %v651_v33 = vmul.f32 %v3386_v6, %v643_v57  ;;  %v2090_v26 = vld [vmem:[%s2323_s25 + $0x28] sm:$0xff]  ;;  %v2091_v6 = vld [vmem:[%s2323_s25 + $0x30] sm:$0xff]  ;;  %v2092_v57 = vld [vmem:[%s2323_s25 + $0x38] sm:$0xff] }
 0x1fa   : > { %v672_v4 = vmul.f32 %v671_v55, %v670_v42  ;;  %v629_v2 = vadd.f32 %v625_v5, %v605_v8  ;;  %v630_v28 = vadd.f32 %v626_v54, %v606_v59  ;;  %v631_v53 = vadd.f32 %v627_v19, %v607_v61  ;;  %v2093_v19 = vld [vmem:[%s2323_s25 + $0x40] sm:$0xff]  ;;  %v4735_v42 = vld [vmem:[#allocation42_spill] sm:$0xff]  ;;  %v4736_v59 = vld [vmem:[#allocation43_spill] sm:$0xff] }
 0x1fb   : > { %1386 = vrot.lane.b32.xlu1 %v2851_v24, %s2180_s11  ;;  %1371 = vrot.lane.b32.xlu0 %v2876_v44, %s2179_s10  ;;  %v652_v36 = vadd.f32 %v648_v27, %v628_v22  ;;  %v673_v35 = vmul.f32 %v671_v55, %v669_v1  ;;  %v674_v52 = vmul.f32 %v671_v55, %v668_v0  ;;  %v725_v30 = vstv %s3476_s21  ;;  %v4737_v22 = vld [vmem:[#allocation40_spill] sm:$0xff]  ;;  %s3641_s21 = sld [smem:[#allocation3 + $0x18]] }
 0x1fc   : > { %v675_v17 = vmul.f32 %v671_v55, %v667_v32  ;;  %v703_v9 = vmul.f32 %v2090_v26, %v702_v60  ;;  %v704_v40 = vmul.f32 %v2091_v6, %v702_v60  ;;  %v705_v56 = vmul.f32 %v2092_v57, %v702_v60 }
 0x1fd   : > { %v3478_v20 = vpop.permute.xlu1 %1118  ;;  %v3480_v58 = vpop.permute.xlu0 %1116  ;;  %v653_v8 = vadd.f32 %v649_v3, %v629_v2  ;;  %v654_v5 = vadd.f32 %v650_v25, %v630_v28  ;;  %v655_v54 = vadd.f32 %v651_v33, %v631_v53  ;;  %v676_v55 = vadd.f32 %v672_v4, %v652_v36  ;;  %v4739_v28 = vld [vmem:[#allocation44_spill] sm:$0xff] }
 0x1fe   : > { %v706_v15 = vmul.f32 %v2093_v19, %v702_v60  ;;  %v723_v61 = vsel %vm330_vm0, %v4736_v59, %v4735_v42  ;;  %v724_v27 = vsel %vm330_vm0, %v4737_v22, %v4736_v59  ;;  %v4738_v60 = vld [vmem:[#allocation45_spill] sm:$0xff]  ;;  %v748_v3 = vstv %s3496_s17  ;;  %v4749_v22 = vld [vmem:[#allocation50_spill] sm:$0xff]  ;;  %s3679_s17 = sld [smem:[#allocation3 + $0x19]] }
 0x1ff   : > { %1390 = vrot.lane.b32.xlu1 %v2865_v48, %s2180_s11  ;;  %1388 = vrot.lane.b32.xlu0 %v2848_v41, %s2180_s11  ;;  %v677_v0 = vadd.f32 %v673_v35, %v653_v8  ;;  %v678_v1 = vadd.f32 %v674_v52, %v654_v5  ;;  %v679_v46 = vadd.f32 %v675_v17, %v655_v54  ;;  %v771_v2 = vstv %s3505_s23  ;;  %v4740_v35 = vld [vmem:[#allocation46_spill] sm:$0xff]  ;;  %v4741_v52 = vld [vmem:[#allocation47_spill] sm:$0xff]  ;;  %v4745_v5 = vld [vmem:[#allocation48_spill] sm:$0xff]  ;;  %s3689_s23 = sld [smem:[#allocation3 + $0x1a]] }
 0x200   : > { %v722_v32 = vsel %vm330_vm0, %v4735_v42, %v4738_v60  ;;  %v707_v25 = vadd.f32 %v703_v9, %v676_v55  ;;  %v726_v33 = vmul.f32 %v725_v30, %v724_v27  ;;  %v727_v4 = vmul.f32 %v725_v30, %v723_v61  ;;  %v4746_v55 = vld [vmem:[#allocation51_spill] sm:$0xff]  ;;  %v4747_v42 = vld [vmem:[#allocation52_spill] sm:$0xff]  ;;  %v4748_v59 = vld [vmem:[#allocation53_spill] sm:$0xff] }
 0x201   : > { %v3507_v21 = vpop.permute.xlu1 %1135  ;;  %v3509_v7 = vpop.permute.xlu0 %1133  ;;  %v721_v53 = vsel %vm330_vm0, %v4738_v60, %v4739_v28  ;;  %v728_v36 = vmul.f32 %v725_v30, %v722_v32  ;;  %v747_v17 = vsel %vm354_vm1, %v4741_v52, %v4740_v35  ;;  %v708_v6 = vadd.f32 %v704_v40, %v677_v0 }
 0x202   : > { %v709_v57 = vadd.f32 %v705_v56, %v678_v1  ;;  %v710_v8 = vadd.f32 %v706_v15, %v679_v46  ;;  %v744_v19 = vsel %vm354_vm1, %v4745_v5, %v4746_v55  ;;  %v769_v61 = vsel %vm378_vm2, %v4748_v59, %v4747_v42  ;;  %v3584_v46 = vld [vmem:[%s2323_s25 + $0x78] sm:$0xff] }
 0x203   : > { %1394 = vrot.lane.b32.xlu1 %v2876_v44, %s2180_s11  ;;  %1392 = vrot.lane.b32.xlu0 %v2862_v45, %s2180_s11  ;;  %v770_v40 = vsel %vm378_vm2, %v4749_v22, %v4748_v59  ;;  %v794_v56 = vstv %s3514_s13  ;;  %v730_v15 = vadd.f32 %v726_v33, %v707_v25  ;;  %v729_v27 = vmul.f32 %v725_v30, %v721_v53  ;;  %v4753_v53 = vld [vmem:[#allocation54_spill] sm:$0xff]  ;;  %s3743_s13 = sld [smem:[#allocation3 + $0x1c]] }
 0x204   : > { %v749_v0 = vmul.f32 %v748_v3, %v747_v17  ;;  %v731_v60 = vadd.f32 %v727_v4, %v708_v6  ;;  %v732_v32 = vadd.f32 %v728_v36, %v709_v57  ;;  %v752_v30 = vmul.f32 %v748_v3, %v744_v19  ;;  %v4754_v36 = vld [vmem:[#allocation56_spill] sm:$0xff]  ;;  %v4755_v17 = vld [vmem:[#allocation57_spill] sm:$0xff]  ;;  %v4757_v6 = vld [vmem:[#allocation59_spill] sm:$0xff] }
 0x205   : > { %v3530_v63 = vpop.permute.xlu1 %1139  ;;  %v3532_v62 = vpop.permute.xlu0 %1137  ;;  %v772_v25 = vmul.f32 %v771_v2, %v770_v40  ;;  %v773_v33 = vmul.f32 %v771_v2, %v769_v61  ;;  %v3620_v59 = vld [vmem:[%s2323_s25 + $0x88] sm:$0xff]  ;;  %v3623_v61 = vld [vmem:[%s2323_s25 + $0x80] sm:$0xff] }
 0x206   : > { %v753_v55 = vadd.f32 %v749_v0, %v730_v15 }
 0x207   : > { %1411 = vrot.lane.b32.xlu1 %v2848_v41, %s2181_s12  ;;  %1409 = vrot.lane.b32.xlu0 %v2851_v24, %s2181_s12  ;;  %v4742_v41 = vld [vmem:[#allocation49_spill] sm:$0xff] }
 0x208   : > { %v746_v24 = vsel %vm354_vm1, %v4740_v35, %v4742_v41  ;;  %v745_v54 = vsel %vm354_vm1, %v4742_v41, %v4745_v5  ;;  %v4750_v35 = vld [vmem:[#allocation55_spill] sm:$0xff]  ;;  %v793_v41 = vsel %vm402_vm3, %v4755_v17, %v4754_v36  ;;  %v817_v5 = vstv %s3539_s14  ;;  %v4760_v17 = vld [vmem:[#allocation60_spill] sm:$0xff]  ;;  %s3775_s14 = sld [smem:[#allocation3 + $0x1d]] }
 0x209   : > { %v3558_v26 = vpop.permute.xlu1 %1156  ;;  %v3560_v9 = vpop.permute.xlu0 %1141  ;;  %v750_v1 = vmul.f32 %v748_v3, %v746_v24  ;;  %v751_v28 = vmul.f32 %v748_v3, %v745_v54  ;;  %v768_v52 = vsel %vm378_vm2, %v4747_v42, %v4750_v35  ;;  %v767_v4 = vsel %vm378_vm2, %v4750_v35, %v4753_v53  ;;  %v4756_v24 = vld [vmem:[#allocation58_spill] sm:$0xff]  ;;  %v4758_v35 = vld [vmem:[#allocation61_spill] sm:$0xff] }
 0x20a   : > { %4743 = vst [vmem:[#allocation9_spill] sm:$0xff] %v3558_v26  ;;  %4744 = vst [vmem:[#allocation11_spill] sm:$0xff] %v3560_v9  ;;  %v791_v57 = vsel %vm402_vm3, %v4757_v6, %v4756_v24  ;;  %v792_v3 = vsel %vm402_vm3, %v4754_v36, %v4757_v6  ;;  %v733_v54 = vadd.f32 %v729_v27, %v710_v8  ;;  %v4759_v36 = vld [vmem:[#allocation63_spill] sm:$0xff]  ;;  %v4764_v6 = vld [vmem:[#allocation65_spill] sm:$0xff] }
 0x20b   : > { %1415 = vrot.lane.b32.xlu1 %v2862_v45, %s2181_s12  ;;  %1413 = vrot.lane.b32.xlu0 %v2865_v48, %s2181_s12  ;;  %v754_v19 = vadd.f32 %v750_v1, %v731_v60  ;;  %v774_v42 = vmul.f32 %v771_v2, %v768_v52  ;;  %v755_v22 = vadd.f32 %v751_v28, %v732_v32  ;;  %v4809_v26 = vld [vmem:[#allocation98_spill] sm:$0xff] }
 0x20c   : > { %v775_v40 = vmul.f32 %v771_v2, %v767_v4  ;;  %v790_v53 = vsel %vm402_vm3, %v4756_v24, %v4758_v35  ;;  %v795_v27 = vmul.f32 %v794_v56, %v793_v41  ;;  %v796_v0 = vmul.f32 %v794_v56, %v792_v3  ;;  %v4763_v2 = vld [vmem:[#allocation62_spill] sm:$0xff] }
 0x20d   : > { %v3592_v45 = vpop.permute.xlu1 %1160  ;;  %v3594_v48 = vpop.permute.xlu0 %1158  ;;  %v797_v1 = vmul.f32 %v794_v56, %v791_v57  ;;  %v815_v60 = vsel %vm426_vm4, %v4759_v36, %v4763_v2  ;;  %v756_v32 = vadd.f32 %v752_v30, %v733_v54  ;;  %v776_v28 = vadd.f32 %v772_v25, %v753_v55  ;;  %v3652_v30 = vld [vmem:[%s2323_s25 + $0x98] sm:$0xff]  ;;  %v3655_v25 = vld [vmem:[%s2323_s25 + $0x90] sm:$0xff] }
 0x20e   : > { %4751 = vst [vmem:[#allocation13_spill] sm:$0xff] %v3592_v45  ;;  %4752 = vst [vmem:[#allocation10_spill] sm:$0xff] %v3594_v48  ;;  %v777_v52 = vadd.f32 %v773_v33, %v754_v19  ;;  %v778_v4 = vadd.f32 %v774_v42, %v755_v22  ;;  %v798_v41 = vmul.f32 %v794_v56, %v790_v53  ;;  %v4765_v54 = vld [vmem:[#allocation64_spill] sm:$0xff]  ;;  %v840_v19 = vstv %s3590_s20  ;;  %s3785_s20 = sld [smem:[#allocation3 + $0x1e]] }
 0x20f   : > { %1463 = vrot.lane.b32.xlu1 %v3584_v46, %s2167_s15  ;;  %1417 = vrot.lane.b32.xlu0 %v2876_v44, %s2181_s12  ;;  %v816_v44 = vsel %vm426_vm4, %v4760_v17, %v4759_v36  ;;  %v814_v57 = vsel %vm426_vm4, %v4763_v2, %v4764_v6  ;;  %v779_v33 = vadd.f32 %v775_v40, %v756_v32  ;;  %v4768_v36 = vld [vmem:[#allocation66_spill] sm:$0xff]  ;;  %v4769_v17 = vld [vmem:[#allocation67_spill] sm:$0xff]  ;;  %v4770_v2 = vld [vmem:[#allocation68_spill] sm:$0xff] }
 0x210   : > { %v818_v24 = vmul.f32 %v817_v5, %v816_v44  ;;  %v819_v3 = vmul.f32 %v817_v5, %v815_v60  ;;  %v813_v55 = vsel %vm426_vm4, %v4764_v6, %v4765_v54  ;;  %v799_v22 = vadd.f32 %v795_v27, %v776_v28  ;;  %v4771_v60 = vld [vmem:[#allocation69_spill] sm:$0xff]  ;;  %v4772_v28 = vld [vmem:[#allocation71_spill] sm:$0xff]  ;;  %v4788_v45 = vld [vmem:[#allocation80_spill] sm:$0xff] }
 0x211   : > { %v3633_v8 = vpop.permute.xlu1 %1164  ;;  %v3635_v15 = vpop.permute.xlu0 %1162  ;;  %v800_v35 = vadd.f32 %v796_v0, %v777_v52  ;;  %v801_v53 = vadd.f32 %v797_v1, %v778_v4  ;;  %v839_v44 = vsel %vm450_vm5, %v4769_v17, %v4768_v36  ;;  %v820_v40 = vmul.f32 %v817_v5, %v814_v57  ;;  %v4774_v17 = vld [vmem:[#allocation73_spill] sm:$0xff] }
 0x212   : > { %4761 = vst [vmem:[#allocation12_spill] sm:$0xff] %v3633_v8  ;;  %4762 = vst [vmem:[#allocation14_spill] sm:$0xff] %v3635_v15  ;;  %v837_v32 = vsel %vm450_vm5, %v4771_v60, %v4770_v2  ;;  %v838_v6 = vsel %vm450_vm5, %v4768_v36, %v4771_v60  ;;  %v863_v54 = vstv %s3613_s5  ;;  %v802_v27 = vadd.f32 %v798_v41, %v779_v33  ;;  %v4773_v36 = vld [vmem:[#allocation72_spill] sm:$0xff]  ;;  %v4787_v15 = vld [vmem:[#allocation83_spill] sm:$0xff]  ;;  %s3835_s5 = sld [smem:[#allocation3 + $0x20]] }
 0x213   : > { %1467 = vrot.lane.b32.xlu1 %v3620_v59, %s2167_s15  ;;  %1465 = vrot.lane.b32.xlu0 %v3623_v61, %s2167_s15  ;;  %v822_v0 = vadd.f32 %v818_v24, %v799_v22  ;;  %v821_v1 = vmul.f32 %v817_v5, %v813_v55  ;;  %v836_v52 = vsel %vm450_vm5, %v4770_v2, %v4772_v28  ;;  %v4778_v22 = vld [vmem:[#allocation74_spill] sm:$0xff]  ;;  %v4779_v2 = vld [vmem:[#allocation75_spill] sm:$0xff]  ;;  %v909_v8 = vstv %s3679_s17  ;;  %s3908_s17 = sld [smem:[#allocation3 + $0x23]] }
 0x214   : > { %v823_v4 = vadd.f32 %v819_v3, %v800_v35  ;;  %v841_v57 = vmul.f32 %v840_v19, %v839_v44  ;;  %v861_v60 = vsel %vm474_vm6, %v4774_v17, %v4773_v36  ;;  %v842_v33 = vmul.f32 %v840_v19, %v838_v6 }
 0x215   : > { %v3662_v56 = vpop.permute.xlu1 %1181  ;;  %v3664_v42 = vpop.permute.xlu0 %1179  ;;  %v843_v55 = vmul.f32 %v840_v19, %v837_v32  ;;  %v859_v3 = vsel %vm474_vm6, %v4779_v2, %v4778_v22  ;;  %v860_v35 = vsel %vm474_vm6, %v4773_v36, %v4779_v2  ;;  %v824_v44 = vadd.f32 %v820_v40, %v801_v53  ;;  %v4782_v53 = vld [vmem:[#allocation79_spill] sm:$0xff]  ;;  %v4783_v22 = vld [vmem:[#allocation78_spill] sm:$0xff] }
 0x216   : > { %4766 = vst [vmem:[#allocation15_spill] sm:$0xff] %v3662_v56  ;;  %4767 = vst [vmem:[#allocation16_spill] sm:$0xff] %v3664_v42  ;;  %v4775_v42 = vld [vmem:[#allocation70_spill] sm:$0xff]  ;;  %v844_v28 = vmul.f32 %v840_v19, %v836_v52  ;;  %v886_v56 = vstv %s3641_s21  ;;  %v825_v32 = vadd.f32 %v821_v1, %v802_v27  ;;  %v865_v36 = vmul.f32 %v863_v54, %v861_v60  ;;  %s3901_s21 = sld [smem:[#allocation3 + $0x22]] }
 0x217   : > { %1471 = vrot.lane.b32.xlu1 %v3652_v30, %s2167_s15  ;;  %1469 = vrot.lane.b32.xlu0 %v3655_v25, %s2167_s15  ;;  %v862_v41 = vsel %vm474_vm6, %v4775_v42, %v4774_v17  ;;  %v4780_v42 = vld [vmem:[#allocation76_spill] sm:$0xff]  ;;  %v4781_v17 = vld [vmem:[#allocation77_spill] sm:$0xff]  ;;  %s3716_s15 = sld [smem:[#allocation3 + $0x1b]]  ;;  %v866_v40 = vmul.f32 %v863_v54, %v860_v35  ;;  %v867_v52 = vmul.f32 %v863_v54, %v859_v3 }
 0x218   : > { %v864_v6 = vmul.f32 %v863_v54, %v862_v41  ;;  %v884_v19 = vsel %vm498_vm7, %v4780_v42, %v4782_v53  ;;  %v883_v2 = vsel %vm498_vm7, %v4782_v53, %v4783_v22  ;;  %v845_v41 = vadd.f32 %v841_v57, %v822_v0 }
 0x219   : > { %v3699_v5 = vpop.permute.xlu1 %1185  ;;  %v3701_v24 = vpop.permute.xlu0 %1183  ;;  %v848_v54 = vadd.f32 %v844_v28, %v825_v32  ;;  %v888_v3 = vmul.f32 %v886_v56, %v884_v19  ;;  %v908_v53 = vsel %vm522_vm8, %v4788_v45, %v4787_v15  ;;  %v4789_v28 = vld [vmem:[#allocation82_spill] sm:$0xff] }
 0x21a   : > { %4776 = vst [vmem:[#allocation17_spill] sm:$0xff] %v3699_v5  ;;  %4777 = vst [vmem:[#allocation19_spill] sm:$0xff] %v3701_v24  ;;  %v885_v24 = vsel %vm498_vm7, %v4781_v17, %v4780_v42  ;;  %v4784_v17 = vld [vmem:[#allocation81_spill] sm:$0xff]  ;;  %v846_v5 = vadd.f32 %v842_v33, %v823_v4  ;;  %v847_v42 = vadd.f32 %v843_v55, %v824_v44 }
 0x21b   : > { %1488 = vrot.lane.b32.xlu1 %v3623_v61, %s2168_s24  ;;  %1486 = vrot.lane.b32.xlu0 %v3584_v46, %s2168_s24  ;;  %v882_v27 = vsel %vm498_vm7, %v4783_v22, %v4784_v17  ;;  %v887_v35 = vmul.f32 %v886_v56, %v885_v24  ;;  %v868_v0 = vadd.f32 %v864_v6, %v845_v41  ;;  %v932_v24 = vstv %s3689_s23  ;;  %v4793_v6 = vld [vmem:[#allocation85_spill] sm:$0xff]  ;;  %s3918_s23 = sld [smem:[#allocation3 + $0x24]] }
 0x21c   : > { %v889_v4 = vmul.f32 %v886_v56, %v883_v2  ;;  %v890_v57 = vmul.f32 %v886_v56, %v882_v27  ;;  %v869_v33 = vadd.f32 %v865_v36, %v846_v5  ;;  %v870_v55 = vadd.f32 %v866_v40, %v847_v42  ;;  %v4794_v40 = vld [vmem:[#allocation86_spill] sm:$0xff]  ;;  %v4796_v2 = vld [vmem:[#allocation89_spill] sm:$0xff] }
 0x21d   : > { %v3734_v1 = vpop.permute.xlu1 %1202  ;;  %v3736_v60 = vpop.permute.xlu0 %1187  ;;  %v871_v44 = vadd.f32 %v867_v52, %v848_v54  ;;  %v907_v45 = vsel %vm522_vm8, %v4787_v15, %v4789_v28  ;;  %v891_v22 = vadd.f32 %v887_v35, %v868_v0  ;;  %v910_v17 = vmul.f32 %v909_v8, %v908_v53  ;;  %v4795_v52 = vld [vmem:[#allocation87_spill] sm:$0xff]  ;;  %v4797_v54 = vld [vmem:[#allocation88_spill] sm:$0xff] }
 0x21e   : > { %4785 = vst [vmem:[#allocation18_spill] sm:$0xff] %v3734_v1  ;;  %4786 = vst [vmem:[#allocation21_spill] sm:$0xff] %v3736_v60  ;;  %v4792_v1 = vld [vmem:[#allocation84_spill] sm:$0xff]  ;;  %v906_v5 = vsel %vm522_vm8, %v4789_v28, %v4793_v6  ;;  %v892_v36 = vadd.f32 %v888_v3, %v869_v33  ;;  %v931_v15 = vsel %vm546_vm9, %v4795_v52, %v4794_v40  ;;  %v955_v41 = vstv %s3716_s15  ;;  %v4798_v33 = vld [vmem:[#allocation91_spill] sm:$0xff]  ;;  %s3924_s15 = sld [smem:[#allocation3 + $0x25]] }
 0x21f   : > { %1492 = vrot.lane.b32.xlu1 %v3655_v25, %s2168_s24  ;;  %1490 = vrot.lane.b32.xlu0 %v3620_v59, %s2168_s24  ;;  %v905_v56 = vsel %vm522_vm8, %v4793_v6, %v4792_v1  ;;  %v930_v27 = vsel %vm546_vm9, %v4794_v40, %v4796_v2  ;;  %v893_v1 = vadd.f32 %v889_v4, %v870_v55  ;;  %v4799_v6 = vld [vmem:[#allocation93_spill] sm:$0xff]  ;;  %v4800_v40 = vld [vmem:[#allocation90_spill] sm:$0xff] }
 0x220   : > { %v894_v42 = vadd.f32 %v890_v57, %v871_v44  ;;  %v911_v35 = vmul.f32 %v909_v8, %v907_v45  ;;  %v929_v3 = vsel %vm546_vm9, %v4796_v2, %v4797_v54  ;;  %v912_v53 = vmul.f32 %v909_v8, %v906_v5  ;;  %v4803_v2 = vld [vmem:[#allocation92_spill] sm:$0xff]  ;;  %v4804_v5 = vld [vmem:[#allocation94_spill] sm:$0xff] }
 0x221   : > { %v3754_v32 = vpop.permute.xlu1 %1206  ;;  %v3756_v19 = vpop.permute.xlu0 %1204  ;;  %v913_v0 = vmul.f32 %v909_v8, %v905_v56  ;;  %v928_v28 = vsel %vm546_vm9, %v4797_v54, %v4798_v33  ;;  %v954_v4 = vsel %vm570_vm10, %v4800_v40, %v4799_v6  ;;  %v914_v44 = vadd.f32 %v910_v17, %v891_v22  ;;  %v4805_v54 = vld [vmem:[#allocation95_spill] sm:$0xff] }
 0x222   : > { %4790 = vst [vmem:[#allocation23_spill] sm:$0xff] %v3754_v32  ;;  %4791 = vst [vmem:[#allocation20_spill] sm:$0xff] %v3756_v19  ;;  %v933_v45 = vmul.f32 %v932_v24, %v931_v15  ;;  %v934_v52 = vmul.f32 %v932_v24, %v930_v27  ;;  %v953_v8 = vsel %vm570_vm10, %v4799_v6, %v4803_v2  ;;  %v4806_v15 = vld [vmem:[#allocation96_spill] sm:$0xff]  ;;  %v4807_v27 = vld [vmem:[#allocation97_spill] sm:$0xff] }
 0x223   : > { %1509 = vrot.lane.b32.xlu1 %v3584_v46, %s2169_s26  ;;  %1494 = vrot.lane.b32.xlu0 %v3652_v30, %s2168_s24  ;;  %v935_v56 = vmul.f32 %v932_v24, %v929_v3  ;;  %v951_v33 = vsel %vm570_vm10, %v4805_v54, %v4804_v5  ;;  %v952_v40 = vsel %vm570_vm10, %v4803_v2, %v4805_v54  ;;  %s3812_s24 = sld [smem:[#allocation3 + $0x1f]]  ;;  %v4808_v6 = vld [vmem:[#allocation99_spill] sm:$0xff] }
 0x224   : > { %v936_v22 = vmul.f32 %v932_v24, %v928_v28  ;;  %v956_v17 = vmul.f32 %v955_v41, %v954_v4  ;;  %v977_v3 = vsel %vm594_vm11, %v4807_v27, %v4806_v15  ;;  %v976_v2 = vsel %vm594_vm11, %v4806_v15, %v4808_v6 }
 0x225   : > { %v3795_v57 = vpop.permute.xlu1 %1210  ;;  %v3797_v55 = vpop.permute.xlu0 %1208  ;;  %v915_v5 = vadd.f32 %v911_v35, %v892_v36  ;;  %v916_v54 = vadd.f32 %v912_v53, %v893_v1  ;;  %v957_v32 = vmul.f32 %v955_v41, %v953_v8  ;;  %v937_v28 = vadd.f32 %v933_v45, %v914_v44  ;;  %v4810_v44 = vld [vmem:[#allocation101_spill] sm:$0xff]  ;;  %v4812_v8 = vld [vmem:[#allocation100_spill] sm:$0xff] }
 0x226   : > { %4801 = vst [vmem:[#allocation22_spill] sm:$0xff] %v3795_v57  ;;  %4802 = vst [vmem:[#allocation24_spill] sm:$0xff] %v3797_v55  ;;  %v978_v57 = vstv %s3743_s13  ;;  %v917_v55 = vadd.f32 %v913_v0, %v894_v42  ;;  %v958_v4 = vmul.f32 %v955_v41, %v952_v40  ;;  %v959_v60 = vmul.f32 %v955_v41, %v951_v33  ;;  %s3985_s13 = sld [smem:[#allocation3 + $0x27]] }
 0x227   : > { %1513 = vrot.lane.b32.xlu1 %v3620_v59, %s2169_s26  ;;  %1511 = vrot.lane.b32.xlu0 %v3623_v61, %s2169_s26  ;;  %v975_v27 = vsel %vm594_vm11, %v4808_v6, %v4809_v26  ;;  %v938_v48 = vadd.f32 %v934_v52, %v915_v5  ;;  %v979_v9 = vmul.f32 %v978_v57, %v977_v3  ;;  %v1001_v36 = vstv %s3775_s14  ;;  %v4811_v52 = vld [vmem:[#allocation103_spill] sm:$0xff]  ;;  %s4044_s14 = sld [smem:[#allocation3 + $0x29]] }
 0x228   : > { %v980_v15 = vmul.f32 %v978_v57, %v976_v2  ;;  %v939_v1 = vadd.f32 %v935_v56, %v916_v54  ;;  %v940_v42 = vadd.f32 %v936_v22, %v917_v55  ;;  %v960_v41 = vadd.f32 %v956_v17, %v937_v28  ;;  %v4813_v22 = vld [vmem:[#allocation102_spill] sm:$0xff]  ;;  %v4815_v2 = vld [vmem:[#allocation104_spill] sm:$0xff] }
 0x229   : > { %v3826_v19 = vpop.permute.xlu1 %1227  ;;  %v3828_v24 = vpop.permute.xlu0 %1225  ;;  %v1024_v35 = vstv %s3785_s20  ;;  %v961_v53 = vadd.f32 %v957_v32, %v938_v48  ;;  %v981_v0 = vmul.f32 %v978_v57, %v975_v27  ;;  %v974_v45 = vsel %vm594_vm11, %v4809_v26, %v4810_v44  ;;  %v4814_v32 = vld [vmem:[#allocation105_spill] sm:$0xff]  ;;  %s4087_s20 = sld [smem:[#allocation3 + $0x2a]] }
 0x22a   : > { %v1000_v33 = vsel %vm618_vm12, %v4812_v8, %v4811_v52  ;;  %v962_v55 = vadd.f32 %v958_v4, %v939_v1  ;;  %v963_v56 = vadd.f32 %v959_v60, %v940_v42  ;;  %v999_v48 = vsel %vm618_vm12, %v4811_v52, %v4813_v22 }
 0x22b   : > { %1517 = vrot.lane.b32.xlu1 %v3652_v30, %s2169_s26  ;;  %1515 = vrot.lane.b32.xlu0 %v3655_v25, %s2169_s26  ;;  %v998_v26 = vsel %vm618_vm12, %v4813_v22, %v4814_v32  ;;  %v983_v17 = vadd.f32 %v979_v9, %v960_v41  ;;  %v984_v6 = vadd.f32 %v980_v15, %v961_v53  ;;  %v1047_v54 = vstv %s3812_s24  ;;  %s3883_s26 = sld [smem:[#allocation3 + $0x21]] }
 0x22c   : > { %v997_v5 = vsel %vm618_vm12, %v4814_v32, %v4815_v2  ;;  %v982_v60 = vmul.f32 %v978_v57, %v974_v45  ;;  %v1002_v28 = vmul.f32 %v1001_v36, %v1000_v33  ;;  %v1023_v9 = vsel %vm642_vm13, %v3138_v10, %v3136_v14  ;;  %s4140_s24 = sld [smem:[#allocation3 + $0x2c]] }
 0x22d   : > { %v3850_v40 = vpop.permute.xlu1 %1231  ;;  %v3852_v3 = vpop.permute.xlu0 %1229  ;;  %v1022_v4 = vsel %vm642_vm13, %v3136_v14, %v3177_v23  ;;  %v985_v27 = vadd.f32 %v981_v0, %v962_v55  ;;  %v1003_v15 = vmul.f32 %v1001_v36, %v999_v48  ;;  %v1004_v1 = vmul.f32 %v1001_v36, %v998_v26 }
 0x22e   : > { %v1021_v57 = vsel %vm642_vm13, %v3177_v23, %v3175_v29  ;;  %v1005_v10 = vmul.f32 %v1001_v36, %v997_v5  ;;  %v1020_v14 = vsel %vm642_vm13, %v3175_v29, %v3213_v16  ;;  %v1045_v53 = vsel %vm666_vm14, %v3245_v18, %v3243_v43 }
 0x22f   : > { %1534 = vrot.lane.b32.xlu1 %v3623_v61, %s2170_s27  ;;  %1532 = vrot.lane.b32.xlu0 %v3584_v46, %s2170_s27  ;;  %v1046_v23 = vsel %vm666_vm14, %v3211_v11, %v3245_v18  ;;  %v1025_v0 = vmul.f32 %v1024_v35, %v1023_v9  ;;  %v1026_v44 = vmul.f32 %v1024_v35, %v1022_v4  ;;  %v1078_v29 = vstv %s3835_s5  ;;  %s4191_s5 = sld [smem:[#allocation3 + $0x2d]] }
 0x230   : > { %v1044_v36 = vsel %vm666_vm14, %v3243_v43, %v3294_v51  ;;  %v986_v16 = vadd.f32 %v982_v60, %v963_v56  ;;  %v1006_v11 = vadd.f32 %v1002_v28, %v983_v17  ;;  %v1027_v18 = vmul.f32 %v1024_v35, %v1021_v57  ;;  %v2095_v28 = vld [vmem:[%s2323_s25 + $0x58] sm:$0xff] }
 0x231   : > { %v3885_v42 = vpop.permute.xlu1 %1248  ;;  %v3887_v41 = vpop.permute.xlu0 %1233  ;;  %v1043_v45 = vsel %vm666_vm14, %v3294_v51, %v3292_v31  ;;  %v1007_v43 = vadd.f32 %v1003_v15, %v984_v6  ;;  %v1028_v52 = vmul.f32 %v1024_v35, %v1020_v14  ;;  %v1048_v8 = vmul.f32 %v1047_v54, %v1046_v23  ;;  %v2094_v51 = vld [vmem:[%s2323_s25 + $0x50] sm:$0xff]  ;;  %v2096_v15 = vld [vmem:[%s2323_s25 + $0x60] sm:$0xff] }
 0x232   : > { %v1049_v33 = vmul.f32 %v1047_v54, %v1045_v53  ;;  %v1008_v56 = vadd.f32 %v1004_v1, %v985_v27  ;;  %v1009_v48 = vadd.f32 %v1005_v10, %v986_v16  ;;  %v1050_v32 = vmul.f32 %v1047_v54, %v1044_v36  ;;  %v2097_v53 = vld [vmem:[%s2323_s25 + $0x68] sm:$0xff] }
 0x233   : > { %1538 = vrot.lane.b32.xlu1 %v3655_v25, %s2170_s27  ;;  %1536 = vrot.lane.b32.xlu0 %v3620_v59, %s2170_s27  ;;  %v1029_v26 = vadd.f32 %v1025_v0, %v1006_v11  ;;  %v1030_v17 = vadd.f32 %v1026_v44, %v1007_v43  ;;  %v1051_v2 = vmul.f32 %v1047_v54, %v1043_v45  ;;  %v1101_v10 = vstv %s3883_s26  ;;  %s2001_s26 = sld [smem:[#allocation3 + $0x2e]] }
 0x234   : > { %v1031_v31 = vadd.f32 %v1027_v18, %v1008_v56  ;;  %v1079_v35 = vmul.f32 %v2094_v51, %v1078_v29  ;;  %v1032_v6 = vadd.f32 %v1028_v52, %v1009_v48  ;;  %v1080_v54 = vmul.f32 %v2095_v28, %v1078_v29  ;;  %v4818_v28 = vld [vmem:[#allocation9_spill] sm:$0xff] }
 0x235   : > { %v3920_v55 = vpop.permute.xlu1 %1252  ;;  %v3922_v22 = vpop.permute.xlu0 %1250  ;;  %v1052_v5 = vadd.f32 %v1048_v8, %v1029_v26  ;;  %v1053_v60 = vadd.f32 %v1049_v33, %v1030_v17  ;;  %v1081_v1 = vmul.f32 %v2096_v15, %v1078_v29  ;;  %v1100_v14 = vsel %vm330_vm0, %v3329_v13, %v3327_v38 }
 0x236   : > { %v1054_v27 = vadd.f32 %v1050_v32, %v1031_v31  ;;  %v1055_v57 = vadd.f32 %v1051_v2, %v1032_v6  ;;  %v1082_v23 = vmul.f32 %v2097_v53, %v1078_v29  ;;  %v1124_v0 = vstv %s3901_s21  ;;  %s2008_s21 = sld [smem:[#allocation3 + $0x30]] }
 0x237   : > { %1555 = vrot.lane.b32.xlu1 %v3584_v46, %s2171_s28  ;;  %1540 = vrot.lane.b32.xlu0 %v3652_v30, %s2170_s27  ;;  %s3943_s27 = sld [smem:[#allocation3 + $0x26]]  ;;  %v1147_v44 = vstv %s3908_s17  ;;  %v3952_v36 = vstv %s3918_s23  ;;  %v1083_v16 = vadd.f32 %v1079_v35, %v1052_v5  ;;  %v1084_v11 = vadd.f32 %v1080_v54, %v1053_v60  ;;  %v4817_v60 = vld [vmem:[#allocation10_spill] sm:$0xff] }
 0x238   : > { %v1098_v13 = vsel %vm330_vm0, %v3366_v47, %v3364_v12  ;;  %v1099_v29 = vsel %vm330_vm0, %v3327_v38, %v3366_v47  ;;  %v1102_v43 = vmul.f32 %v1101_v10, %v1100_v14  ;;  %v1085_v52 = vadd.f32 %v1081_v1, %v1054_v27  ;;  %v4819_v14 = vld [vmem:[#allocation13_spill] sm:$0xff]  ;;  %s2016_s17 = sld [smem:[#allocation3 + $0x38]] }
 0x239   : > { %v3932_v9 = vpop.permute.xlu1 %1256  ;;  %v3934_v4 = vpop.permute.xlu0 %1254  ;;  %v1097_v8 = vsel %vm330_vm0, %v3364_v12, %v3404_v39  ;;  %v1123_v33 = vsel %vm354_vm1, %v3402_v37, %v3443_v50  ;;  %v1086_v56 = vadd.f32 %v1082_v23, %v1055_v57  ;;  %v1122_v38 = vsel %vm354_vm1, %v3443_v50, %v3441_v34  ;;  %s2017_s23 = sld [smem:[#allocation3 + $0x39]] }
 0x23a   : > { %v1121_v47 = vsel %vm354_vm1, %v3441_v34, %v3480_v58  ;;  %v3983_v48 = vstv %s3924_s15  ;;  %v1103_v12 = vmul.f32 %v1101_v10, %v1099_v29  ;;  %v1104_v37 = vmul.f32 %v1101_v10, %v1098_v13  ;;  %v4820_v29 = vld [vmem:[#allocation14_spill] sm:$0xff]  ;;  %s2018_s15 = sld [smem:[#allocation3 + $0x3a]] }
 0x23b   : > { %1559 = vrot.lane.b32.xlu1 %v3620_v59, %s2171_s28  ;;  %1557 = vrot.lane.b32.xlu0 %v3623_v61, %s2171_s28  ;;  %v1120_v39 = vsel %vm354_vm1, %v3480_v58, %v3478_v20  ;;  %v1146_v34 = vsel %vm378_vm2, %v3509_v7, %v3507_v21  ;;  %v1105_v50 = vmul.f32 %v1101_v10, %v1097_v8  ;;  %v4816_v7 = vld [vmem:[#allocation11_spill] sm:$0xff]  ;;  %v4821_v8 = vld [vmem:[#allocation12_spill] sm:$0xff] }
 0x23c   : > { %v1125_v32 = vmul.f32 %v1124_v0, %v1123_v33  ;;  %v1144_v26 = vsel %vm378_vm2, %v3532_v62, %v3530_v63  ;;  %v1145_v17 = vsel %vm378_vm2, %v3507_v21, %v3532_v62  ;;  %v1106_v58 = vadd.f32 %v1102_v43, %v1083_v16 }
 0x23d   : > { %v3962_v18 = vpop.permute.xlu1 %1273  ;;  %v3964_v45 = vpop.permute.xlu0 %1271  ;;  %v1126_v31 = vmul.f32 %v1124_v0, %v1122_v38  ;;  %v1127_v51 = vmul.f32 %v1124_v0, %v1121_v47  ;;  %v1143_v35 = vsel %vm378_vm2, %v3530_v63, %v4816_v7  ;;  %v1128_v6 = vmul.f32 %v1124_v0, %v1120_v39  ;;  %v4823_v39 = vld [vmem:[#allocation16_spill] sm:$0xff] }
 0x23e   : > { %v1148_v5 = vmul.f32 %v1147_v44, %v1146_v34  ;;  %v1169_v54 = vsel %vm402_vm3, %v4818_v28, %v4817_v60  ;;  %v1216_v21 = vstv %s3943_s27  ;;  %v1107_v62 = vadd.f32 %v1103_v12, %v1084_v11  ;;  %v4827_v28 = vld [vmem:[#allocation20_spill] sm:$0xff]  ;;  %s2019_s27 = sld [smem:[#allocation3 + $0x3b]] }
 0x23f   : > { %1563 = vrot.lane.b32.xlu1 %v3652_v30, %s2171_s28  ;;  %1561 = vrot.lane.b32.xlu0 %v3655_v25, %s2171_s28  ;;  %s4020_s28 = sld [smem:[#allocation3 + $0x28]]  ;;  %v1108_v27 = vadd.f32 %v1104_v37, %v1085_v52  ;;  %v1149_v63 = vmul.f32 %v1147_v44, %v1145_v17  ;;  %v1150_v15 = vmul.f32 %v1147_v44, %v1144_v26  ;;  %v4822_v37 = vld [vmem:[#allocation15_spill] sm:$0xff]  ;;  %v4824_v26 = vld [vmem:[#allocation17_spill] sm:$0xff] }
 0x240   : > { %v1109_v1 = vadd.f32 %v1105_v50, %v1086_v56  ;;  %v1129_v57 = vadd.f32 %v1125_v32, %v1106_v58  ;;  %v1151_v10 = vmul.f32 %v1147_v44, %v1143_v35  ;;  %v1168_v53 = vsel %vm402_vm3, %v4817_v60, %v4819_v14  ;;  %v4825_v17 = vld [vmem:[#allocation19_spill] sm:$0xff] }
 0x241   : > { %v4007_v2 = vpop.permute.xlu1 %1277  ;;  %v4009_v20 = vpop.permute.xlu0 %1275  ;;  %v1130_v16 = vadd.f32 %v1126_v31, %v1107_v62  ;;  %v1131_v13 = vadd.f32 %v1127_v51, %v1108_v27  ;;  %v1171_v11 = vmul.f32 %v3952_v36, %v1169_v54  ;;  %v1167_v43 = vsel %vm402_vm3, %v4819_v14, %v4820_v29  ;;  %v4828_v54 = vld [vmem:[#allocation18_spill] sm:$0xff] }
 0x242   : > { %v1132_v52 = vadd.f32 %v1128_v6, %v1109_v1  ;;  %v1152_v44 = vadd.f32 %v1148_v5, %v1129_v57  ;;  %v1166_v33 = vsel %vm402_vm3, %v4820_v29, %v4821_v8  ;;  %v1239_v56 = vstv %s3985_s13  ;;  %v4826_v5 = vld [vmem:[#allocation21_spill] sm:$0xff]  ;;  %v4830_v1 = vld [vmem:[#allocation24_spill] sm:$0xff]  ;;  %s2020_s13 = sld [smem:[#allocation3 + $0x3c]] }
 0x243   : > { %1580 = vrot.lane.b32.xlu1 %v3623_v61, %s2172_s29  ;;  %1578 = vrot.lane.b32.xlu0 %v3584_v46, %s2172_s29  ;;  %v1153_v38 = vadd.f32 %v1149_v63, %v1130_v16  ;;  %v1154_v47 = vadd.f32 %v1150_v15, %v1131_v13  ;;  %v1172_v12 = vmul.f32 %v3952_v36, %v1168_v53  ;;  %v4829_v63 = vld [vmem:[#allocation23_spill] sm:$0xff]  ;;  %v4831_v16 = vld [vmem:[#allocation22_spill] sm:$0xff] }
 0x244   : > { %v1192_v34 = vsel %vm426_vm4, %v4823_v39, %v4822_v37  ;;  %v1155_v50 = vadd.f32 %v1151_v10, %v1132_v52  ;;  %v1173_v32 = vmul.f32 %v3952_v36, %v1167_v43  ;;  %v1190_v58 = vsel %vm426_vm4, %v4825_v17, %v4824_v26 }
 0x245   : > { %v4030_v23 = vpop.permute.xlu1 %1294  ;;  %v4032_v0 = vpop.permute.xlu0 %1279  ;;  %v1191_v31 = vsel %vm426_vm4, %v4822_v37, %v4825_v17  ;;  %v1175_v35 = vadd.f32 %v1171_v11, %v1152_v44  ;;  %v1174_v6 = vmul.f32 %v3952_v36, %v1166_v33  ;;  %v1189_v60 = vsel %vm426_vm4, %v4824_v26, %v4826_v5 }
 0x246   : > { %v1215_v62 = vsel %vm450_vm5, %v4828_v54, %v4827_v28  ;;  %v1194_v27 = vmul.f32 %v3983_v48, %v1192_v34  ;;  %v1214_v15 = vsel %vm450_vm5, %v4827_v28, %v4829_v63  ;;  %v1213_v36 = vsel %vm450_vm5, %v4829_v63, %v4830_v1 }
 0x247   : > { %1584 = vrot.lane.b32.xlu1 %v3655_v25, %s2172_s29  ;;  %1582 = vrot.lane.b32.xlu0 %v3620_v59, %s2172_s29  ;;  %v1262_v57 = vstv %s4020_s28  ;;  %v1176_v10 = vadd.f32 %v1172_v12, %v1153_v38  ;;  %v1195_v14 = vmul.f32 %v3983_v48, %v1191_v31  ;;  %v1196_v53 = vmul.f32 %v3983_v48, %v1190_v58  ;;  %s2021_s28 = sld [smem:[#allocation3 + $0x3d]] }
 0x248   : > { %v1212_v13 = vsel %vm450_vm5, %v4830_v1, %v4831_v16  ;;  %v1177_v11 = vadd.f32 %v1173_v32, %v1154_v47  ;;  %v1197_v29 = vmul.f32 %v3983_v48, %v1189_v60  ;;  %v1217_v43 = vmul.f32 %v1216_v21, %v1215_v62 }
 0x249   : > { %v4064_v51 = vpop.permute.xlu1 %1298  ;;  %v4066_v7 = vpop.permute.xlu0 %1296  ;;  %v1238_v52 = vsel %vm474_vm6, %v3828_v24, %v3826_v19  ;;  %v1218_v33 = vmul.f32 %v1216_v21, %v1214_v15  ;;  %v1219_v38 = vmul.f32 %v1216_v21, %v1213_v36  ;;  %v1236_v12 = vsel %vm474_vm6, %v3852_v3, %v3850_v40 }
 0x24a   : > { %v1237_v48 = vsel %vm474_vm6, %v3826_v19, %v3852_v3  ;;  %v1178_v47 = vadd.f32 %v1174_v6, %v1155_v50  ;;  %v1198_v37 = vadd.f32 %v1194_v27, %v1175_v35  ;;  %v1220_v39 = vmul.f32 %v1216_v21, %v1212_v13 }
 0x24b   : > { %1601 = vrot.lane.b32.xlu1 %v3584_v46, %s2173_s30  ;;  %1586 = vrot.lane.b32.xlu0 %v3652_v30, %s2172_s29  ;;  %v1285_v34 = vstv %s4044_s14  ;;  %s4117_s29 = sld [smem:[#allocation3 + $0x2b]]  ;;  %v1199_v24 = vadd.f32 %v1195_v14, %v1176_v10  ;;  %v1200_v32 = vadd.f32 %v1196_v53, %v1177_v11  ;;  %v1240_v26 = vmul.f32 %v1239_v56, %v1238_v52 }
 0x24c   : > { %v1235_v19 = vsel %vm474_vm6, %v3850_v40, %v3887_v41  ;;  %v1201_v3 = vadd.f32 %v1197_v29, %v1178_v47  ;;  %v1241_v21 = vmul.f32 %v1239_v56, %v1237_v48  ;;  %v1242_v50 = vmul.f32 %v1239_v56, %v1236_v12  ;;  %s2022_s14 = sld [smem:[#allocation3 + $0x3e]] }
 0x24d   : > { %v1303_v44 = vpop.permute.xlu1 %1302  ;;  %v1301_v8 = vpop.permute.xlu0 %1300  ;;  %v1260_v17 = vsel %vm498_vm7, %v3922_v22, %v3920_v55  ;;  %v1221_v35 = vadd.f32 %v1217_v43, %v1198_v37  ;;  %v1222_v6 = vadd.f32 %v1218_v33, %v1199_v24  ;;  %v1223_v5 = vadd.f32 %v1219_v38, %v1200_v32 }
 0x24e   : > { %v1259_v60 = vsel %vm498_vm7, %v3920_v55, %v3934_v4  ;;  %v1224_v28 = vadd.f32 %v1220_v39, %v1201_v3  ;;  %v1243_v40 = vmul.f32 %v1239_v56, %v1235_v19  ;;  %v1258_v41 = vsel %vm498_vm7, %v3934_v4, %v3932_v9 }
 0x24f   : > { %1605 = vrot.lane.b32.xlu1 %v3620_v59, %s2173_s30  ;;  %1603 = vrot.lane.b32.xlu0 %v3623_v61, %s2173_s30  ;;  %v1308_v54 = vstv %s4087_s20  ;;  %v1244_v62 = vadd.f32 %v1240_v26, %v1221_v35  ;;  %v1261_v55 = vsel %vm498_vm7, %v3885_v42, %v3922_v22  ;;  %v1264_v56 = vmul.f32 %v1262_v57, %v1260_v17  ;;  %s2023_s20 = sld [smem:[#allocation3 + $0x3f]] }
 0x250   : > { %v1283_v9 = vsel %vm522_vm8, %v3962_v18, %v4009_v20  ;;  %v1245_v4 = vadd.f32 %v1241_v21, %v1222_v6  ;;  %v1246_v27 = vadd.f32 %v1242_v50, %v1223_v5  ;;  %v1265_v63 = vmul.f32 %v1262_v57, %v1259_v60 }
 0x251   : > { %v1320_v58 = vpop.permute.xlu1 %1319  ;;  %v1318_v31 = vpop.permute.xlu0 %1317  ;;  %v1282_v15 = vsel %vm522_vm8, %v4009_v20, %v4007_v2  ;;  %v1266_v10 = vmul.f32 %v1262_v57, %v1258_v41  ;;  %v1281_v42 = vsel %vm522_vm8, %v4007_v2, %v4032_v0  ;;  %v1306_v22 = vsel %vm546_vm9, %v4066_v7, %v4064_v51 }
 0x252   : > { %v1247_v53 = vadd.f32 %v1243_v40, %v1224_v28  ;;  %v1263_v16 = vmul.f32 %v1262_v57, %v1261_v55  ;;  %v1287_v13 = vmul.f32 %v1285_v34, %v1283_v9  ;;  %v1331_v20 = vstv %s4117_s29  ;;  %s4481_s29 = sld [smem:[#allocation5 + $0x1]] }
 0x253   : > { %1609 = vrot.lane.b32.xlu1 %v3652_v30, %s2173_s30  ;;  %1607 = vrot.lane.b32.xlu0 %v3655_v25, %s2173_s30  ;;  %s4832_s30 = smov 84   ;;  %v1268_v11 = vadd.f32 %v1264_v56, %v1245_v4  ;;  %v1284_v2 = vsel %vm522_vm8, %v3964_v45, %v3962_v18  ;;  %v1288_v0 = vmul.f32 %v1285_v34, %v1282_v15 }
 0x254   : > { %v1289_v57 = vmul.f32 %v1285_v34, %v1281_v42  ;;  %v1310_v43 = vmul.f32 %v1308_v54, %v1306_v22  ;;  %v1304_v52 = vsel %vm546_vm9, %v1301_v8, %v1303_v44  ;;  %v1305_v33 = vsel %vm546_vm9, %v4064_v51, %v1301_v8 }
 0x255   : > { %v1324_v1 = vpop.permute.xlu1 %1323  ;;  %v1322_v36 = vpop.permute.xlu0 %1321  ;;  %v1269_v48 = vadd.f32 %v1265_v63, %v1246_v27  ;;  %v1270_v47 = vadd.f32 %v1266_v10, %v1247_v53  ;;  %v1307_v18 = vsel %vm546_vm9, %v4030_v23, %v4066_v7  ;;  %v1286_v37 = vmul.f32 %v1285_v34, %v1284_v2 }
 0x256   : > { %v1328_v14 = vsel %vm570_vm10, %v1322_v36, %v1324_v1  ;;  %v1329_v29 = vsel %vm570_vm10, %v1320_v58, %v1322_v36  ;;  %v1291_v39 = vadd.f32 %v1287_v13, %v1268_v11  ;;  %v1354_v51 = vstv %s4140_s24 }
 0x257   : > { %1626 = vrot.lane.b32.xlu1 %v3623_v61, %s4832_s30  ;;  %1624 = vrot.lane.b32.xlu0 %v3584_v46, %s4832_s30  ;;  %v1333_v24 = vmul.f32 %v1331_v20, %v1329_v29  ;;  %v1267_v44 = vadd.f32 %v1263_v16, %v1244_v62  ;;  %v1292_v8 = vadd.f32 %v1288_v0, %v1269_v48  ;;  %v1377_v36 = vstv %s4191_s5  ;;  %s2026_s5 = sshll.u32 %s4838_s18, 5 }
 0x258   : > { %v1311_v32 = vmul.f32 %v1308_v54, %v1305_v33  ;;  %v1312_v26 = vmul.f32 %v1308_v54, %v1304_v52  ;;  %v1293_v23 = vadd.f32 %v1289_v57, %v1270_v47  ;;  %v1309_v7 = vmul.f32 %v1308_v54, %v1307_v18 }
 0x259   : > { %v1341_v38 = vpop.permute.xlu1 %1340  ;;  %v1326_v12 = vpop.permute.xlu0 %1325  ;;  %v1314_v19 = vadd.f32 %v1310_v43, %v1291_v39  ;;  %v1330_v34 = vsel %vm570_vm10, %v1318_v31, %v1320_v58  ;;  %v1334_v50 = vmul.f32 %v1331_v20, %v1328_v14  ;;  %v1290_v5 = vadd.f32 %v1286_v37, %v1267_v44 }
 0x25a   : > { %v1327_v45 = vsel %vm570_vm10, %v1324_v1, %v1326_v12  ;;  %v1315_v58 = vadd.f32 %v1311_v32, %v1292_v8  ;;  %v1316_v31 = vadd.f32 %v1312_v26, %v1293_v23  ;;  %v1332_v41 = vmul.f32 %v1331_v20, %v1330_v34 }
 0x25b   : > { %1630 = vrot.lane.b32.xlu1 %v3655_v25, %s4832_s30  ;;  %1628 = vrot.lane.b32.xlu0 %v3620_v59, %s4832_s30  ;;  %v1335_v17 = vmul.f32 %v1331_v20, %v1327_v45  ;;  %v1337_v60 = vadd.f32 %v1333_v24, %v1314_v19  ;;  %v1313_v40 = vadd.f32 %v1309_v7, %v1290_v5  ;;  %v1400_v45 = vstv %s2001_s26 }
 0x25c   : > { %v1338_v56 = vadd.f32 %v1334_v50, %v1315_v58 }
 0x25d   : > { %v1345_v3 = vpop.permute.xlu1 %1344  ;;  %v1343_v21 = vpop.permute.xlu0 %1342  ;;  %v1339_v9 = vadd.f32 %v1335_v17, %v1316_v31  ;;  %v1336_v10 = vadd.f32 %v1332_v41, %v1313_v40 }
 0x25e   : > { %v1352_v35 = vsel %vm594_vm11, %v1343_v21, %v1345_v3  ;;  %v1353_v6 = vsel %vm594_vm11, %v1341_v38, %v1343_v21 }
 0x25f   : > { %v1356_v28 = vmul.f32 %v1354_v51, %v1352_v35  ;;  %1647 = vrot.lane.b32.xlu1 %v3584_v46, %s2175_s6  ;;  %1632 = vrot.lane.b32.xlu0 %v3652_v30, %s4832_s30  ;;  %v1355_v63 = vmul.f32 %v1354_v51, %v1353_v6 }
 0x261   : > { %v1360_v54 = vadd.f32 %v1356_v28, %v1337_v60  ;;  %v1349_v62 = vpop.permute.xlu1 %1348  ;;  %v1347_v55 = vpop.permute.xlu0 %1346  ;;  %v1359_v13 = vadd.f32 %v1355_v63, %v1336_v10 }
 0x262   : > { %v1350_v4 = vsel %vm594_vm11, %v1347_v55, %v1349_v62  ;;  %v1351_v27 = vsel %vm594_vm11, %v1345_v3, %v1347_v55 }
 0x263   : > { %v1357_v15 = vmul.f32 %v1354_v51, %v1351_v27  ;;  %v1358_v1 = vmul.f32 %v1354_v51, %v1350_v4  ;;  %1651 = vrot.lane.b32.xlu1 %v3620_v59, %s2175_s6  ;;  %1649 = vrot.lane.b32.xlu0 %v3623_v61, %s2175_s6 }
 0x265   : > { %v1361_v42 = vadd.f32 %v1357_v15, %v1338_v56  ;;  %v1362_v22 = vadd.f32 %v1358_v1, %v1339_v9  ;;  %v1366_v14 = vpop.permute.xlu1 %1365  ;;  %v1364_v53 = vpop.permute.xlu0 %1363  ;;  %v4261_v56 = vld [vmem:[%s2323_s25 + $0x78] sm:$0xff]  ;;  %v1454_v9 = vstv %s2008_s21  ;;  %s282_s21 = scalar_lea.vmem %s4524_s4, %s2026_s5 }
 0x266   : > { %v1376_v16 = vsel %vm618_vm12, %v1364_v53, %v1366_v14 }
 0x267   : > { %v1378_v20 = vmul.f32 %v1377_v36, %v1376_v16  ;;  %1655 = vrot.lane.b32.xlu1 %v3652_v30, %s2175_s6  ;;  %1653 = vrot.lane.b32.xlu0 %v3655_v25, %s2175_s6  ;;  %s2002_s6 = sld [smem:[#allocation3 + $0x2f]] }
 0x269   : > { %v1382_v11 = vadd.f32 %v1378_v20, %v1359_v13  ;;  %v1370_v2 = vpop.permute.xlu1 %1369  ;;  %v1368_v0 = vpop.permute.xlu0 %1367  ;;  %v4274_v13 = vld [vmem:[%s2323_s25 + $0x88] sm:$0xff] }
 0x26a   : > { %v1374_v29 = vsel %vm618_vm12, %v1368_v0, %v1370_v2  ;;  %v1375_v57 = vsel %vm618_vm12, %v1366_v14, %v1368_v0  ;;  %v1457_v20 = vmul.f32 %v4274_v13, %v1454_v9 }
 0x26b   : > { %v1379_v43 = vmul.f32 %v1377_v36, %v1375_v57  ;;  %v1380_v52 = vmul.f32 %v1377_v36, %v1374_v29  ;;  %1672 = vrot.lane.b32.xlu1 %v3623_v61, %s2176_s7  ;;  %1670 = vrot.lane.b32.xlu0 %v3584_v46, %s2176_s7 }
 0x26d   : > { %v1383_v33 = vadd.f32 %v1379_v43, %v1360_v54  ;;  %v1384_v38 = vadd.f32 %v1380_v52, %v1361_v42  ;;  %v1387_v12 = vpop.permute.xlu1 %1386  ;;  %v1372_v48 = vpop.permute.xlu0 %1371  ;;  %v1456_v42 = vmul.f32 %v3623_v61, %v1454_v9 }
 0x26e   : > { %v1373_v47 = vsel %vm618_vm12, %v1370_v2, %v1372_v48 }
 0x26f   : > { %v1381_v18 = vmul.f32 %v1377_v36, %v1373_v47  ;;  %1676 = vrot.lane.b32.xlu1 %v3655_v25, %s2176_s7  ;;  %1674 = vrot.lane.b32.xlu0 %v3620_v59, %s2176_s7  ;;  %v1455_v36 = vmul.f32 %v4261_v56, %v1454_v9 }
 0x271   : > { %v1385_v37 = vadd.f32 %v1381_v18, %v1362_v22  ;;  %v1391_v39 = vpop.permute.xlu1 %1390  ;;  %v1389_v24 = vpop.permute.xlu0 %1388 }
 0x272   : > { %v1398_v51 = vsel %vm642_vm13, %v1389_v24, %v1391_v39  ;;  %v1399_v44 = vsel %vm642_vm13, %v1387_v12, %v1389_v24 }
 0x273   : > { %v1401_v8 = vmul.f32 %v1400_v45, %v1399_v44  ;;  %v1402_v32 = vmul.f32 %v1400_v45, %v1398_v51  ;;  %1693 = vrot.lane.b32.xlu1 %v3584_v46, %s2177_s8  ;;  %1678 = vrot.lane.b32.xlu0 %v3652_v30, %s2176_s7  ;;  %v1423_v46 = vstv %s2002_s6  ;;  %s2009_s7 = sld [smem:[#allocation3 + $0x31]] }
 0x275   : > { %v1405_v26 = vadd.f32 %v1401_v8, %v1382_v11  ;;  %v1406_v23 = vadd.f32 %v1402_v32, %v1383_v33  ;;  %v1395_v7 = vpop.permute.xlu1 %1394  ;;  %v1393_v19 = vpop.permute.xlu0 %1392 }
 0x276   : > { %v1396_v34 = vsel %vm642_vm13, %v1393_v19, %v1395_v7  ;;  %v1397_v3 = vsel %vm642_vm13, %v1391_v39, %v1393_v19 }
 0x277   : > { %v1403_v21 = vmul.f32 %v1400_v45, %v1397_v3  ;;  %v1404_v50 = vmul.f32 %v1400_v45, %v1396_v34  ;;  %1697 = vrot.lane.b32.xlu1 %v3620_v59, %s2177_s8  ;;  %1695 = vrot.lane.b32.xlu0 %v3623_v61, %s2177_s8 }
 0x279   : > { %v1407_v17 = vadd.f32 %v1403_v21, %v1384_v38  ;;  %v1408_v35 = vadd.f32 %v1404_v50, %v1385_v37  ;;  %v1412_v6 = vpop.permute.xlu1 %1411  ;;  %v1410_v5 = vpop.permute.xlu0 %1409  ;;  %v1477_v22 = vstv %s2009_s7 }
 0x27a   : > { %v1422_v60 = vsel %vm666_vm14, %v1410_v5, %v1412_v6 }
 0x27b   : > { %v1424_v28 = vmul.f32 %v1423_v46, %v1422_v60  ;;  %1701 = vrot.lane.b32.xlu1 %v3652_v30, %s2177_s8  ;;  %1699 = vrot.lane.b32.xlu0 %v3655_v25, %s2177_s8  ;;  %s2010_s8 = sld [smem:[#allocation3 + $0x32]] }
 0x27d   : > { %v1428_v58 = vadd.f32 %v1424_v28, %v1405_v26  ;;  %v1416_v31 = vpop.permute.xlu1 %1415  ;;  %v1414_v40 = vpop.permute.xlu0 %1413  ;;  %v2101_v26 = vld [vmem:[%s2323_s25 + $0x98] sm:$0xff] }
 0x27e   : > { %v1420_v41 = vsel %vm666_vm14, %v1414_v40, %v1416_v31  ;;  %v1421_v54 = vsel %vm666_vm14, %v1412_v6, %v1414_v40 }
 0x27f   : > { %v1425_v62 = vmul.f32 %v1423_v46, %v1421_v54  ;;  %v1426_v55 = vmul.f32 %v1423_v46, %v1420_v41  ;;  %1718 = vrot.lane.b32.xlu1 %v3623_v61, %s2178_s9  ;;  %1716 = vrot.lane.b32.xlu0 %v4261_v56, %s2178_s9  ;;  %v1459_v11 = vadd.f32 %v1455_v36, %v1428_v58 }
 0x281   : > { %v1429_v4 = vadd.f32 %v1425_v62, %v1406_v23  ;;  %v1430_v27 = vadd.f32 %v1426_v55, %v1407_v17  ;;  %v1464_v63 = vpop.permute.xlu1 %1463  ;;  %v1418_v15 = vpop.permute.xlu0 %1417  ;;  %v1500_v37 = vstv %s2010_s8  ;;  %v2102_v23 = vld [vmem:[%s2323_s25 + $0x90] sm:$0xff] }
 0x282   : > { %v1419_v1 = vsel %vm666_vm14, %v1416_v31, %v1418_v15 }
 0x283   : > { %v1427_v10 = vmul.f32 %v1423_v46, %v1419_v1  ;;  %1722 = vrot.lane.b32.xlu1 %v3655_v25, %s2178_s9  ;;  %1720 = vrot.lane.b32.xlu0 %v3620_v59, %s2178_s9  ;;  %v1458_v59 = vmul.f32 %v3655_v25, %v1454_v9  ;;  %v1460_v29 = vadd.f32 %v1456_v42, %v1429_v4 }
 0x284   : > { %v1461_v12 = vadd.f32 %v1457_v20, %v1430_v27 }
 0x285   : > { %v1431_v14 = vadd.f32 %v1427_v10, %v1408_v35  ;;  %v1468_v53 = vpop.permute.xlu1 %1467  ;;  %v1466_v16 = vpop.permute.xlu0 %1465 }
 0x286   : > { %v1475_v2 = vsel %vm330_vm0, %v1466_v16, %v1468_v53  ;;  %v1476_v0 = vsel %vm330_vm0, %v1464_v63, %v1466_v16 }
 0x287   : > { %v1478_v61 = vmul.f32 %v1477_v22, %v1476_v0  ;;  %v1479_v57 = vmul.f32 %v1477_v22, %v1475_v2  ;;  %1739 = vrot.lane.b32.xlu1 %v4261_v56, %s2179_s10  ;;  %1724 = vrot.lane.b32.xlu0 %v3652_v30, %s2178_s9  ;;  %v1462_v47 = vadd.f32 %v1458_v59, %v1431_v14  ;;  %v2100_v30 = vld [vmem:[%s2323_s25 + $0x80] sm:$0xff]  ;;  %s2011_s9 = sld [smem:[#allocation3 + $0x33]] }
 0x288   : > { %s2012_s25 = sld [smem:[#allocation3 + $0x34]] }
 0x289   : > { %v1482_v43 = vadd.f32 %v1478_v61, %v1459_v11  ;;  %v1483_v52 = vadd.f32 %v1479_v57, %v1460_v29  ;;  %v1472_v33 = vpop.permute.xlu1 %1471  ;;  %v1470_v38 = vpop.permute.xlu0 %1469 }
 0x28a   : > { %v1473_v48 = vsel %vm330_vm0, %v1470_v38, %v1472_v33  ;;  %v1474_v25 = vsel %vm330_vm0, %v1468_v53, %v1470_v38 }
 0x28b   : > { %v1480_v18 = vmul.f32 %v1477_v22, %v1474_v25  ;;  %v1481_v45 = vmul.f32 %v1477_v22, %v1473_v48  ;;  %1743 = vrot.lane.b32.xlu1 %v4274_v13, %s2179_s10  ;;  %1741 = vrot.lane.b32.xlu0 %v2100_v30, %s2179_s10 }
 0x28d   : > { %v1484_v39 = vadd.f32 %v1480_v18, %v1461_v12  ;;  %v1485_v24 = vadd.f32 %v1481_v45, %v1462_v47  ;;  %v1489_v51 = vpop.permute.xlu1 %1488  ;;  %v1487_v44 = vpop.permute.xlu0 %1486  ;;  %v1523_v58 = vstv %s2011_s9 }
 0x28e   : > { %v1499_v8 = vsel %vm354_vm1, %v1487_v44, %v1489_v51 }
 0x28f   : > { %v1501_v32 = vmul.f32 %v1500_v37, %v1499_v8  ;;  %1747 = vrot.lane.b32.xlu1 %v2101_v26, %s2179_s10  ;;  %1745 = vrot.lane.b32.xlu0 %v2102_v23, %s2179_s10  ;;  %s2013_s10 = sld [smem:[#allocation3 + $0x35]] }
 0x291   : > { %v1505_v7 = vadd.f32 %v1501_v32, %v1482_v43  ;;  %v1493_v19 = vpop.permute.xlu1 %1492  ;;  %v1491_v34 = vpop.permute.xlu0 %1490 }
 0x292   : > { %v1497_v3 = vsel %vm354_vm1, %v1491_v34, %v1493_v19  ;;  %v1498_v21 = vsel %vm354_vm1, %v1489_v51, %v1491_v34 }
 0x293   : > { %v1502_v50 = vmul.f32 %v1500_v37, %v1498_v21  ;;  %v1503_v46 = vmul.f32 %v1500_v37, %v1497_v3  ;;  %1764 = vrot.lane.b32.xlu1 %v2100_v30, %s2180_s11  ;;  %1762 = vrot.lane.b32.xlu0 %v4261_v56, %s2180_s11 }
 0x295   : > { %v1506_v17 = vadd.f32 %v1502_v50, %v1483_v52  ;;  %v1507_v35 = vadd.f32 %v1503_v46, %v1484_v39  ;;  %v1510_v6 = vpop.permute.xlu1 %1509  ;;  %v1495_v5 = vpop.permute.xlu0 %1494  ;;  %v1569_v25 = vstv %s2013_s10 }
 0x296   : > { %v1496_v60 = vsel %vm354_vm1, %v1493_v19, %v1495_v5 }
 0x297   : > { %v1504_v28 = vmul.f32 %v1500_v37, %v1496_v60  ;;  %1768 = vrot.lane.b32.xlu1 %v2102_v23, %s2180_s11  ;;  %1766 = vrot.lane.b32.xlu0 %v4274_v13, %s2180_s11 }
 0x299   : > { %v1508_v31 = vadd.f32 %v1504_v28, %v1485_v24  ;;  %v1514_v40 = vpop.permute.xlu1 %1513  ;;  %v1512_v41 = vpop.permute.xlu0 %1511 }
 0x29a   : > { %v1521_v54 = vsel %vm378_vm2, %v1512_v41, %v1514_v40  ;;  %v1522_v62 = vsel %vm378_vm2, %v1510_v6, %v1512_v41 }
 0x29b   : > { %v1524_v55 = vmul.f32 %v1523_v58, %v1522_v62  ;;  %v1525_v9 = vmul.f32 %v1523_v58, %v1521_v54  ;;  %1785 = vrot.lane.b32.xlu1 %v4261_v56, %s2181_s12  ;;  %1770 = vrot.lane.b32.xlu0 %v2101_v26, %s2180_s11  ;;  %v1546_v56 = vstv %s2012_s25  ;;  %s2014_s11 = sld [smem:[#allocation3 + $0x36]] }
 0x29d   : > { %v1528_v4 = vadd.f32 %v1524_v55, %v1505_v7  ;;  %v1529_v27 = vadd.f32 %v1525_v9, %v1506_v17  ;;  %v1518_v63 = vpop.permute.xlu1 %1517  ;;  %v1516_v15 = vpop.permute.xlu0 %1515 }
 0x29e   : > { %v1519_v1 = vsel %vm378_vm2, %v1516_v15, %v1518_v63  ;;  %v1520_v36 = vsel %vm378_vm2, %v1514_v40, %v1516_v15 }
 0x29f   : > { %v1526_v10 = vmul.f32 %v1523_v58, %v1520_v36  ;;  %v1527_v42 = vmul.f32 %v1523_v58, %v1519_v1  ;;  %1789 = vrot.lane.b32.xlu1 %v4274_v13, %s2181_s12  ;;  %1787 = vrot.lane.b32.xlu0 %v2100_v30, %s2181_s12 }
 0x2a1   : > { %v1530_v22 = vadd.f32 %v1526_v10, %v1507_v35  ;;  %v1531_v14 = vadd.f32 %v1527_v42, %v1508_v31  ;;  %v1535_v53 = vpop.permute.xlu1 %1534  ;;  %v1533_v16 = vpop.permute.xlu0 %1532  ;;  %v1592_v34 = vstv %s2014_s11 }
 0x2a2   : > { %v1545_v20 = vsel %vm402_vm3, %v1533_v16, %v1535_v53 }
 0x2a3   : > { %v1547_v11 = vmul.f32 %v1546_v56, %v1545_v20  ;;  %1793 = vrot.lane.b32.xlu1 %v2101_v26, %s2181_s12  ;;  %1791 = vrot.lane.b32.xlu0 %v2102_v23, %s2181_s12  ;;  %s2015_s12 = sld [smem:[#allocation3 + $0x37]] }
 0x2a5   : > { %v1551_v2 = vadd.f32 %v1547_v11, %v1528_v4  ;;  %v1539_v0 = vpop.permute.xlu1 %1538  ;;  %v1537_v59 = vpop.permute.xlu0 %1536 }
 0x2a6   : > { %v1543_v13 = vsel %vm402_vm3, %v1537_v59, %v1539_v0  ;;  %v1544_v29 = vsel %vm402_vm3, %v1535_v53, %v1537_v59 }
 0x2a7   : > { %v1548_v61 = vmul.f32 %v1546_v56, %v1544_v29  ;;  %v1549_v57 = vmul.f32 %v1546_v56, %v1543_v13 }
 0x2a9   : > { %v1552_v43 = vadd.f32 %v1548_v61, %v1529_v27  ;;  %v1553_v52 = vadd.f32 %v1549_v57, %v1530_v22  ;;  %v1556_v33 = vpop.permute.xlu1 %1555  ;;  %v1541_v38 = vpop.permute.xlu0 %1540  ;;  %v1615_v27 = vstv %s2015_s12 }
 0x2aa   : > { %v1542_v12 = vsel %vm402_vm3, %v1539_v0, %v1541_v38 }
 0x2ab   : > { %v1550_v48 = vmul.f32 %v1546_v56, %v1542_v12 }
 0x2ad   : > { %v1554_v47 = vadd.f32 %v1550_v48, %v1531_v14  ;;  %v1560_v18 = vpop.permute.xlu1 %1559  ;;  %v1558_v45 = vpop.permute.xlu0 %1557 }
 0x2ae   : > { %v1567_v30 = vsel %vm426_vm4, %v1558_v45, %v1560_v18  ;;  %v1568_v37 = vsel %vm426_vm4, %v1556_v33, %v1558_v45 }
 0x2af   : > { %v1570_v39 = vmul.f32 %v1569_v25, %v1568_v37  ;;  %v1571_v24 = vmul.f32 %v1569_v25, %v1567_v30 }
 0x2b1   : > { %v1574_v51 = vadd.f32 %v1570_v39, %v1551_v2  ;;  %v1575_v44 = vadd.f32 %v1571_v24, %v1552_v43  ;;  %v1564_v8 = vpop.permute.xlu1 %1563  ;;  %v1562_v32 = vpop.permute.xlu0 %1561 }
 0x2b2   : > { %v1565_v26 = vsel %vm426_vm4, %v1562_v32, %v1564_v8  ;;  %v1566_v23 = vsel %vm426_vm4, %v1560_v18, %v1562_v32 }
 0x2b3   : > { %v1572_v7 = vmul.f32 %v1569_v25, %v1566_v23  ;;  %v1573_v19 = vmul.f32 %v1569_v25, %v1565_v26 }
 0x2b5   : > { %v1576_v3 = vadd.f32 %v1572_v7, %v1553_v52  ;;  %v1577_v21 = vadd.f32 %v1573_v19, %v1554_v47  ;;  %v1581_v50 = vpop.permute.xlu1 %1580  ;;  %v1579_v46 = vpop.permute.xlu0 %1578 }
 0x2b6   : > { %v1591_v17 = vsel %vm450_vm5, %v1579_v46, %v1581_v50 }
 0x2b7   : > { %v1593_v35 = vmul.f32 %v1592_v34, %v1591_v17 }
 0x2b9   : > { %v1597_v6 = vadd.f32 %v1593_v35, %v1574_v51  ;;  %v1585_v5 = vpop.permute.xlu1 %1584  ;;  %v1583_v60 = vpop.permute.xlu0 %1582  ;;  %v1661_v35 = vstv %s2017_s23 }
 0x2ba   : > { %v1589_v28 = vsel %vm450_vm5, %v1583_v60, %v1585_v5  ;;  %v1590_v58 = vsel %vm450_vm5, %v1581_v50, %v1583_v60 }
 0x2bb   : > { %v1594_v31 = vmul.f32 %v1592_v34, %v1590_v58  ;;  %v1595_v40 = vmul.f32 %v1592_v34, %v1589_v28 }
 0x2bd   : > { %v1598_v41 = vadd.f32 %v1594_v31, %v1575_v44  ;;  %v1599_v54 = vadd.f32 %v1595_v40, %v1576_v3  ;;  %v1602_v62 = vpop.permute.xlu1 %1601  ;;  %v1587_v55 = vpop.permute.xlu0 %1586  ;;  %v1638_v3 = vstv %s2016_s17 }
 0x2be   : > { %v1588_v9 = vsel %vm450_vm5, %v1585_v5, %v1587_v55  ;;  %v4402_v55 = vstv %s2022_s14 }
 0x2bf   : > { %v1596_v4 = vmul.f32 %v1592_v34, %v1588_v9 }
 0x2c1   : > { %v1600_v63 = vadd.f32 %v1596_v4, %v1577_v21  ;;  %v1606_v15 = vpop.permute.xlu1 %1605  ;;  %v1604_v1 = vpop.permute.xlu0 %1603 }
 0x2c2   : > { %v1613_v36 = vsel %vm474_vm6, %v1604_v1, %v1606_v15  ;;  %v1614_v10 = vsel %vm474_vm6, %v1602_v62, %v1604_v1  ;;  %v4400_v62 = vstv %s2021_s28 }
 0x2c3   : > { %v1616_v42 = vmul.f32 %v1615_v27, %v1614_v10  ;;  %v1617_v56 = vmul.f32 %v1615_v27, %v1613_v36 }
 0x2c5   : > { %v4356_v22 = vadd.f32 %v1616_v42, %v1597_v6  ;;  %v4358_v14 = vadd.f32 %v1617_v56, %v1598_v41  ;;  %v1610_v53 = vpop.permute.xlu1 %1609  ;;  %v1608_v16 = vpop.permute.xlu0 %1607  ;;  %v1684_v6 = vstv %s2018_s15  ;;  %v1707_v41 = vstv %s2019_s27 }
 0x2c6   : > { %v1611_v20 = vsel %vm474_vm6, %v1608_v16, %v1610_v53  ;;  %v1612_v11 = vsel %vm474_vm6, %v1606_v15, %v1608_v16 }
 0x2c7   : > { %v1618_v2 = vmul.f32 %v1615_v27, %v1612_v11  ;;  %v1619_v0 = vmul.f32 %v1615_v27, %v1611_v20  ;;  %v4414_v20 = vstv %s2023_s20  ;;  %v4833_v11 = vlaneseq }
 0x2c9   : > { %v4364_v59 = vadd.f32 %v1618_v2, %v1599_v54  ;;  %v4366_v13 = vadd.f32 %v1619_v0, %v1600_v63  ;;  %v1627_v29 = vpop.permute.xlu1 %1626  ;;  %v1625_v61 = vpop.permute.xlu0 %1624  ;;  %v1730_v54 = vstv %s2020_s13  ;;  %v4417_v2 = vshrl.u32 %v4833_v11, 7 }
 0x2ca   : > { %v1637_v21 = vsel %vm498_vm7, %v1625_v61, %v1627_v29 }
 0x2cb   : > { %v1639_v28 = vmul.f32 %v1638_v3, %v1637_v21 }
 0x2cd   : > { %v1631_v57 = vpop.permute.xlu1 %1630  ;;  %v1629_v43 = vpop.permute.xlu0 %1628  ;;  %v1643_v53 = vadd.f32 %v1639_v28, %v4356_v22 }
 0x2ce   : > { %v1636_v50 = vsel %vm498_vm7, %v1627_v29, %v1629_v43  ;;  %v1635_v46 = vsel %vm498_vm7, %v1629_v43, %v1631_v57 }
 0x2cf   : > { %v1640_v58 = vmul.f32 %v1638_v3, %v1636_v50  ;;  %v1641_v9 = vmul.f32 %v1638_v3, %v1635_v46 }
 0x2d1   : > { %v1648_v52 = vpop.permute.xlu1 %1647  ;;  %v1633_v33 = vpop.permute.xlu0 %1632  ;;  %v1644_v16 = vadd.f32 %v1640_v58, %v4358_v14 }
 0x2d2   : > { %v1634_v17 = vsel %vm498_vm7, %v1631_v57, %v1633_v33  ;;  %v1645_v33 = vadd.f32 %v1641_v9, %v4364_v59 }
 0x2d3   : > { %v1642_v4 = vmul.f32 %v1638_v3, %v1634_v17 }
 0x2d5   : > { %v1652_v38 = vpop.permute.xlu1 %1651  ;;  %v1650_v12 = vpop.permute.xlu0 %1649 }
 0x2d6   : > { %v1659_v31 = vsel %vm522_vm8, %v1650_v12, %v1652_v38  ;;  %v1660_v40 = vsel %vm522_vm8, %v1648_v52, %v1650_v12 }
 0x2d7   : > { %v1662_v15 = vmul.f32 %v1661_v35, %v1660_v40  ;;  %v1663_v1 = vmul.f32 %v1661_v35, %v1659_v31 }
 0x2d9   : > { %v1656_v48 = vpop.permute.xlu1 %1655  ;;  %v1654_v25 = vpop.permute.xlu0 %1653  ;;  %v1666_v12 = vadd.f32 %v1662_v15, %v1643_v53 }
 0x2da   : > { %v1657_v27 = vsel %vm522_vm8, %v1654_v25, %v1656_v48  ;;  %v1658_v63 = vsel %vm522_vm8, %v1652_v38, %v1654_v25  ;;  %v1646_v38 = vadd.f32 %v1642_v4, %v4366_v13  ;;  %v1667_v48 = vadd.f32 %v1663_v1, %v1644_v16 }
 0x2db   : > { %v1664_v0 = vmul.f32 %v1661_v35, %v1658_v63  ;;  %v1665_v29 = vmul.f32 %v1661_v35, %v1657_v27 }
 0x2dd   : > { %v1673_v47 = vpop.permute.xlu1 %1672  ;;  %v1671_v18 = vpop.permute.xlu0 %1670  ;;  %v1668_v3 = vadd.f32 %v1664_v0, %v1645_v33  ;;  %v1669_v21 = vadd.f32 %v1665_v29, %v1646_v38 }
 0x2de   : > { %v1683_v36 = vsel %vm546_vm9, %v1671_v18, %v1673_v47 }
 0x2df   : > { %v1685_v43 = vmul.f32 %v1684_v6, %v1683_v36 }
 0x2e1   : > { %v1677_v45 = vpop.permute.xlu1 %1676  ;;  %v1675_v30 = vpop.permute.xlu0 %1674 }
 0x2e2   : > { %v1682_v10 = vsel %vm546_vm9, %v1673_v47, %v1675_v30  ;;  %v1681_v61 = vsel %vm546_vm9, %v1675_v30, %v1677_v45 }
 0x2e3   : > { %v1686_v52 = vmul.f32 %v1684_v6, %v1682_v10  ;;  %v1687_v18 = vmul.f32 %v1684_v6, %v1681_v61  ;;  %v1819_v61 = vsub.s32 1, %v4417_v2 }
 0x2e5   : > { %v1694_v37 = vpop.permute.xlu1 %1693  ;;  %v1679_v39 = vpop.permute.xlu0 %1678  ;;  %v1690_v50 = vadd.f32 %v1686_v52, %v1667_v48  ;;  %v1691_v31 = vadd.f32 %v1687_v18, %v1668_v3 }
 0x2e6   : > { %v1680_v57 = vsel %vm546_vm9, %v1677_v45, %v1679_v39 }
 0x2e7   : > { %v1688_v30 = vmul.f32 %v1684_v6, %v1680_v57 }
 0x2e9   : > { %v4368_v24 = vpop.permute.xlu1 %1697  ;;  %v1696_v51 = vpop.permute.xlu0 %1695  ;;  %v1692_v40 = vadd.f32 %v1688_v30, %v1669_v21 }
 0x2ea   : > { %v1705_v22 = vsel %vm570_vm10, %v1696_v51, %v4368_v24  ;;  %v1706_v14 = vsel %vm570_vm10, %v1694_v37, %v1696_v51 }
 0x2eb   : > { %v1708_v39 = vmul.f32 %v1707_v41, %v1706_v14  ;;  %v1709_v59 = vmul.f32 %v1707_v41, %v1705_v22 }
 0x2ed   : > { %v4370_v44 = vpop.permute.xlu1 %1701  ;;  %v4372_v8 = vpop.permute.xlu0 %1699 }
 0x2ee   : > { %v1703_v45 = vsel %vm570_vm10, %v4372_v8, %v4370_v44  ;;  %v1704_v37 = vsel %vm570_vm10, %v4368_v24, %v4372_v8  ;;  %v1689_v44 = vadd.f32 %v1685_v43, %v1666_v12 }
 0x2ef   : > { %v1710_v46 = vmul.f32 %v1707_v41, %v1704_v37  ;;  %v1711_v17 = vmul.f32 %v1707_v41, %v1703_v45  ;;  %v1713_v41 = vadd.f32 %v1709_v59, %v1690_v50  ;;  %v1827_v59 = vsub.s32 3, %v4417_v2 }
 0x2f1   : > { %v4374_v32 = vpop.permute.xlu1 %1718  ;;  %v4376_v26 = vpop.permute.xlu0 %1716  ;;  %v1715_v36 = vadd.f32 %v1711_v17, %v1692_v40 }
 0x2f2   : > { %v1729_v13 = vsel %vm594_vm11, %v4376_v26, %v4374_v32 }
 0x2f3   : > { %v1731_v6 = vmul.f32 %v1730_v54, %v1729_v13 }
 0x2f5   : > { %v4378_v23 = vpop.permute.xlu1 %1722  ;;  %v4380_v7 = vpop.permute.xlu0 %1720 }
 0x2f6   : > { %v1728_v51 = vsel %vm594_vm11, %v4374_v32, %v4380_v7  ;;  %v1727_v24 = vsel %vm594_vm11, %v4380_v7, %v4378_v23  ;;  %v1712_v7 = vadd.f32 %v1708_v39, %v1689_v44 }
 0x2f7   : > { %v1732_v32 = vmul.f32 %v1730_v54, %v1728_v51  ;;  %v1733_v9 = vmul.f32 %v1730_v54, %v1727_v24 }
 0x2f8   : > { %v1735_v10 = vadd.f32 %v1731_v6, %v1712_v7 }
 0x2f9   : > { %v4382_v19 = vpop.permute.xlu1 %1739  ;;  %v4384_v34 = vpop.permute.xlu0 %1724  ;;  %v1736_v53 = vadd.f32 %v1732_v32, %v1713_v41  ;;  %v1837_v32 = vstv %s4481_s29 }
 0x2fa   : > { %v1726_v8 = vsel %vm594_vm11, %v4378_v23, %v4384_v34 }
 0x2fb   : > { %v1734_v4 = vmul.f32 %v1730_v54, %v1726_v8  ;;  %v1714_v54 = vadd.f32 %v1710_v46, %v1691_v31 }
 0x2fd   : > { %v4394_v5 = vpop.permute.xlu1 %1743  ;;  %v1742_v60 = vpop.permute.xlu0 %1741  ;;  %v1737_v57 = vadd.f32 %v1733_v9, %v1714_v54  ;;  %v1738_v43 = vadd.f32 %v1734_v4, %v1715_v36 }
 0x2fe   : > { %v1751_v28 = vsel %vm618_vm12, %v1742_v60, %v4394_v5  ;;  %v1752_v58 = vsel %vm618_vm12, %v4382_v19, %v1742_v60 }
 0x2ff   : > { %v1754_v27 = vmul.f32 %v4400_v62, %v1752_v58  ;;  %v1755_v63 = vmul.f32 %v4400_v62, %v1751_v28 }
 0x301   : > { %v1748_v42 = vpop.permute.xlu1 %1747  ;;  %v1746_v56 = vpop.permute.xlu0 %1745  ;;  %v1758_v52 = vadd.f32 %v1754_v27, %v1735_v10  ;;  %v1759_v22 = vadd.f32 %v1755_v63, %v1736_v53 }
 0x302   : > { %v1749_v15 = vsel %vm618_vm12, %v1746_v56, %v1748_v42  ;;  %v1750_v19 = vsel %vm618_vm12, %v4394_v5, %v1746_v56  ;;  %v1815_v56 = vsub.s32 0, %v4417_v2 }
 0x303   : > { %v1756_v29 = vmul.f32 %v4400_v62, %v1750_v19  ;;  %v1757_v5 = vmul.f32 %v4400_v62, %v1749_v15  ;;  %v285_v62 = vld [vmem:[%s4523_s3] sm:$0xf] }
 0x304   : > { %v1816_v3 = vrot.slane %v285_v62, %v1815_v56  ;;  %v1820_v21 = vrot.slane %v285_v62, %v1819_v61  ;;  %v1828_v58 = vrot.slane %v285_v62, %v1827_v59 }
 0x305   : > { %v1765_v25 = vpop.permute.xlu1 %1764  ;;  %v1763_v47 = vpop.permute.xlu0 %1762  ;;  %v1760_v37 = vadd.f32 %v1756_v29, %v1737_v57  ;;  %v1761_v39 = vadd.f32 %v1757_v5, %v1738_v43 }
 0x306   : > { %v1775_v23 = vsel %vm642_vm13, %v1763_v47, %v1765_v25 }
 0x307   : > { %v1777_v16 = vmul.f32 %v4402_v55, %v1775_v23 }
 0x309   : > { %v1769_v26 = vpop.permute.xlu1 %1768  ;;  %v1767_v35 = vpop.permute.xlu0 %1766  ;;  %v1781_v47 = vadd.f32 %v1777_v16, %v1758_v52 }
 0x30a   : > { %v1774_v34 = vsel %vm642_vm13, %v1765_v25, %v1767_v35  ;;  %v1773_v11 = vsel %vm642_vm13, %v1767_v35, %v1769_v26 }
 0x30b   : > { %v1778_v0 = vmul.f32 %v4402_v55, %v1774_v34  ;;  %v1779_v38 = vmul.f32 %v4402_v55, %v1773_v11 }
 0x30d   : > { %v1786_v60 = vpop.permute.xlu1 %1785  ;;  %v1771_v1 = vpop.permute.xlu0 %1770  ;;  %v1782_v18 = vadd.f32 %v1778_v0, %v1759_v22  ;;  %v1783_v46 = vadd.f32 %v1779_v38, %v1760_v37 }
 0x30e   : > { %v1772_v42 = vsel %vm642_vm13, %v1769_v26, %v1771_v1 }
 0x30f   : > { %v1780_v12 = vmul.f32 %v4402_v55, %v1772_v42  ;;  %v1823_v55 = vsub.s32 2, %v4417_v2 }
 0x311   : > { %v1790_v14 = vpop.permute.xlu1 %1789  ;;  %v1788_v33 = vpop.permute.xlu0 %1787  ;;  %v1784_v17 = vadd.f32 %v1780_v12, %v1761_v39  ;;  %v1824_v28 = vrot.slane %v285_v62, %v1823_v55 }
 0x312   : > { %v1797_v48 = vsel %vm666_vm14, %v1788_v33, %v1790_v14  ;;  %v1798_v25 = vsel %vm666_vm14, %v1786_v60, %v1788_v33 }
 0x313   : > { %v1800_v30 = vmul.f32 %v4414_v20, %v1798_v25  ;;  %v1801_v45 = vmul.f32 %v4414_v20, %v1797_v48 }
 0x315   : > { %v1804_v13 = vadd.f32 %v1800_v30, %v1781_v47  ;;  %v1805_v51 = vadd.f32 %v1801_v45, %v1782_v18  ;;  %v1794_v44 = vpop.permute.xlu1 %1793  ;;  %v1792_v50 = vpop.permute.xlu0 %1791 }
 0x316   : > { %v1795_v24 = vsel %vm666_vm14, %v1792_v50, %v1794_v44  ;;  %v1796_v8 = vsel %vm666_vm14, %v1790_v14, %v1792_v50 }
 0x317   : > { %v1808_v26 = vmax.f32 %v1804_v13, 0.0  ;;  %v1809_v35 = vmax.f32 %v1805_v51, 0.0  ;;  %v1802_v2 = vmul.f32 %v4414_v20, %v1796_v8  ;;  %v1803_v6 = vmul.f32 %v4414_v20, %v1795_v24 }
 0x319   : > { %v1833_v31 = vmul.f32 %v1816_v3, %v1808_v26  ;;  %v1834_v40 = vmul.f32 %v1820_v21, %v1809_v35  ;;  %v1806_v7 = vadd.f32 %v1802_v2, %v1783_v46  ;;  %v1807_v41 = vadd.f32 %v1803_v6, %v1784_v17 }
 0x31b   : > { %v1838_v9 = vadd.f32 %v1837_v32, %v1833_v31  ;;  %v1839_v4 = vadd.f32 %v1837_v32, %v1834_v40  ;;  %v1810_v23 = vmax.f32 %v1806_v7, 0.0  ;;  %v1811_v34 = vmax.f32 %v1807_v41, 0.0 }
 0x31d   : > { %v1842_v49 = vmax.f32 %v1838_v9, 0.0  ;;  %v1843_v27 = vmax.f32 %v1839_v4, 0.0  ;;  %v1835_v63 = vmul.f32 %v1824_v28, %v1810_v23  ;;  %v1836_v20 = vmul.f32 %v1828_v58, %v1811_v34 }
 0x31f   : > { %1846 = vst [vmem:[%s282_s21] sm:$0xff] %v1842_v49  ;;  %1847 = vst [vmem:[%s282_s21 + $0x8] sm:$0xff] %v1843_v27  ;;  %v1840_v15 = vadd.f32 %v1837_v32, %v1835_v63  ;;  %v1841_v19 = vadd.f32 %v1837_v32, %v1836_v20 }
 0x321   : > { %v1844_v60 = vmax.f32 %v1840_v15, 0.0  ;;  %v1845_v1 = vmax.f32 %v1841_v19, 0.0 }
 0x323   : > { %1848 = vst [vmem:[%s282_s21 + $0x10] sm:$0xff] %v1844_v60  ;;  %1849 = vst [vmem:[%s282_s21 + $0x18] sm:$0xff] %v1845_v1 }
 0x324 PF: > { %p13_p2 = scmp.ge.s32.totalorder %s2226_s19, 5   ;;  %s4834_s15 = smov %s2159_s16 }
 0x325   : > { %s4835_s16 = smov %s2236_s22  ;;  %s4836_s17 = smov %s2226_s19 }
 0x326   :  { %15 = sbr.rel (!%p13_p2) target bundleno = 3 (0x3), region = 106 }
 0x32b   :  { %1871 = vsyncpa [#allocation4], 1 }
 0x32c   :  { %1873 = vsyncpa [#allocation4 + $0x1], 1 }
 0x32d   :  { %1874 = vsyncpa [#allocation6], 1 }

</bundles_post_ra>
